<compile_context>
chip_gen: v6e
topology: v6e:2x2x1
jax: 0.10.0
libtpu: 0.0.40
codegen_flags: <defaults>
</compile_context>

<pallas_src>
import functools

import jax
import jax.numpy as jnp
from jax.experimental import pallas as pl
from jax.experimental.pallas import tpu as pltpu

LANE = 128  # TPU lane width


def _ceil_to(x, m):
    return (x + m - 1) // m * m


# ----------------------------------------------------------------------------
# Pallas kernel: one batch element per grid step (grid axis is "parallel").
# ----------------------------------------------------------------------------
def _down_kernel(x_ref, w1_ref, b1_ref, w2_ref, b2_ref, o_ref,
                 pad1, col1, pad2, col2, *, H2, W2, Cin_p, Cout_p):
    bf16 = jnp.bfloat16
    f32 = jnp.float32

    # ---- MaxPool2d(2) -------------------------------------------------------
    # x_ref block: (1, H2, 2, W2, 2*Cin_p) bf16; axis 2 = row parity, last axis
    # packs (col parity, channel).  Pure lane-aligned slices + max, all bf16.
    top = x_ref[0, :, 0, :, :]                       # (H2, W2, 2*Cin_p)
    bot = x_ref[0, :, 1, :, :]
    hmax = jnp.maximum(top, bot)
    pooled = jnp.maximum(hmax[:, :, :Cin_p], hmax[:, :, Cin_p:])   # (H2,W2,Cin_p) bf16

    # ---- padded buffer 1: row-contiguous writes (border included) -----------
    zrow1 = jnp.zeros((1, W2 + 2, Cin_p), bf16)
    zcol1 = jnp.zeros((H2, 1, Cin_p), bf16)
    pad1[0:1] = zrow1
    pad1[H2 + 1:H2 + 2] = zrow1
    pad1[1:H2 + 1] = jnp.concatenate([zcol1, pooled, zcol1], axis=1)

    # ---- Conv1: im2col (H2*W2, 9*Cin_p) -> single MXU matmul ----------------
    for kh in range(3):
        for kw in range(3):
            t = kh * 3 + kw
            col1[:, t * Cin_p:(t + 1) * Cin_p] = (
                pad1[kh:kh + H2, kw:kw + W2, :].reshape(H2 * W2, Cin_p))
    acc1 = jnp.dot(col1[...], w1_ref[...], preferred_element_type=f32)
    # BN scale already folded into w1; only shift + ReLU remain (f32).
    y1 = jnp.maximum(acc1 + b1_ref[...], 0.0)
    y1 = y1.astype(bf16).reshape(H2, W2, Cout_p)     # single cast for conv2

    # ---- padded buffer 2 -----------------------------------------------------
    zrow2 = jnp.zeros((1, W2 + 2, Cout_p), bf16)
    zcol2 = jnp.zeros((H2, 1, Cout_p), bf16)
    pad2[0:1] = zrow2
    pad2[H2 + 1:H2 + 2] = zrow2
    pad2[1:H2 + 1] = jnp.concatenate([zcol2, y1, zcol2], axis=1)

    # ---- Conv2: im2col (H2*W2, 9*Cout_p) -> single MXU matmul ---------------
    for kh in range(3):
        for kw in range(3):
            t = kh * 3 + kw
            col2[:, t * Cout_p:(t + 1) * Cout_p] = (
                pad2[kh:kh + H2, kw:kw + W2, :].reshape(H2 * W2, Cout_p))
    acc2 = jnp.dot(col2[...], w2_ref[...], preferred_element_type=f32)
    y2 = jnp.maximum(acc2 + b2_ref[...], 0.0)        # BN2 shift + ReLU

    # Lane-dense 2-D output store (Cout_p is a multiple of 128).
    o_ref[0] = y2.astype(o_ref.dtype)


# ----------------------------------------------------------------------------
# Wrapper: layout glue + pallas_call
# ----------------------------------------------------------------------------
def down_forward(x_nchw, params, eps=1e-5):
    N, Cin, H, W = x_nchw.shape
    Cout = params["w1"].shape[0]
    assert H % 2 == 0 and W % 2 == 0, "MaxPool2d(2) expects even H, W"
    H2, W2 = H // 2, W // 2
    assert W2 % 8 == 0, "W//2 must be a sublane multiple (holds for U-Net sizes)"

    Cin_p = _ceil_to(Cin, LANE)
    Cout_p = _ceil_to(Cout, LANE)

    # NCHW -> NHWC, zero-pad channels to a lane multiple, cast bf16, then a FREE
    # contiguous reshape exposing the 2x2 pool windows.
    x = jnp.transpose(x_nchw, (0, 2, 3, 1))
    x = jnp.pad(x, ((0, 0), (0, 0), (0, 0), (0, Cin_p - Cin))).astype(jnp.bfloat16)
    xr = x.reshape(N, H2, 2, W2, 2 * Cin_p)

    # Fold conv bias + BatchNorm (eval) into per-channel scale/shift; fold the
    # scale into the im2col weight matrix (f32 fold, then one bf16 cast).
    # Rows ordered (kh, kw, cin); padded channels get zero weights/shift, so the
    # padded output channels come out exactly 0 (relu(0 + 0)).
    def prep(w, bias, gamma, beta, mean, var, Ci, Ci_p):
        scale = gamma / jnp.sqrt(var + eps)                      # (Cout,)
        shift = scale * (bias - mean) + beta                     # (Cout,)
        w_f = w * scale[:, None, None, None]                     # (Cout,Ci,3,3) f32
        w_mat = jnp.transpose(w_f, (2, 3, 1, 0))                 # (3,3,Ci,Cout)
        w_mat = jnp.pad(w_mat, ((0, 0), (0, 0),
                                (0, Ci_p - Ci), (0, Cout_p - Cout)))
        w_mat = w_mat.reshape(9 * Ci_p, Cout_p).astype(jnp.bfloat16)
        shift_p = jnp.pad(shift, (0, Cout_p - Cout)).reshape(1, Cout_p).astype(jnp.float32)
        return w_mat, shift_p

    w1, b1 = prep(params["w1"], params["b1"], params["g1"], params["be1"],
                  params["m1"], params["v1"], Cin, Cin_p)
    w2, b2 = prep(params["w2"], params["b2"], params["g2"], params["be2"],
                  params["m2"], params["v2"], Cout, Cout_p)

    kernel = functools.partial(_down_kernel, H2=H2, W2=W2,
                               Cin_p=Cin_p, Cout_p=Cout_p)

    # Explicit VMEM budget: blocks (double-buffered) + scratch + headroom,
    # capped at 75% of physical VMEM for the current generation.
    scratch_bytes = ((H2 + 2) * (W2 + 2) * (Cin_p + Cout_p)
                     + H2 * W2 * 9 * (Cin_p + Cout_p)) * 2          # bf16
    io_bytes = 2 * (H2 * 2 * W2 * 2 * Cin_p * 2 + H2 * W2 * Cout_p * 4)
    w_bytes = 2 * (9 * Cin_p * Cout_p + 9 * Cout_p * Cout_p) * 2 + 4 * Cout_p * 4
    try:
        cap = int(0.75 * pltpu.get_tpu_info().vmem_capacity_bytes)
    except Exception:
        cap = 96 << 20
    vmem_limit = int(min(max(scratch_bytes + io_bytes + w_bytes + (8 << 20),
                             32 << 20), cap))

    out = pl.pallas_call(
        kernel,
        out_shape=jax.ShapeDtypeStruct((N, H2 * W2, Cout_p), jnp.float32),
        grid_spec=pltpu.PrefetchScalarGridSpec(
            num_scalar_prefetch=0,
            grid=(N,),
            in_specs=[
                pl.BlockSpec((1, H2, 2, W2, 2 * Cin_p), lambda n: (n, 0, 0, 0, 0)),
                pl.BlockSpec((9 * Cin_p, Cout_p), lambda n: (0, 0)),
                pl.BlockSpec((1, Cout_p), lambda n: (0, 0)),
                pl.BlockSpec((9 * Cout_p, Cout_p), lambda n: (0, 0)),
                pl.BlockSpec((1, Cout_p), lambda n: (0, 0)),
            ],
            out_specs=pl.BlockSpec((1, H2 * W2, Cout_p), lambda n: (n, 0, 0)),
            scratch_shapes=[
                pltpu.VMEM((H2 + 2, W2 + 2, Cin_p), jnp.bfloat16),   # pad1
                pltpu.VMEM((H2 * W2, 9 * Cin_p), jnp.bfloat16),      # im2col 1
                pltpu.VMEM((H2 + 2, W2 + 2, Cout_p), jnp.bfloat16),  # pad2
                pltpu.VMEM((H2 * W2, 9 * Cout_p), jnp.bfloat16),     # im2col 2
            ],
        ),
        compiler_params=pltpu.CompilerParams(
            dimension_semantics=("parallel",),       # no cross-iteration state
            vmem_limit_bytes=vmem_limit,
        ),
    )(xr, w1, b1, w2, b2)

    out = out[:, :, :Cout].reshape(N, H2, W2, Cout)  # drop lane padding (free-ish)
    return jnp.transpose(out, (0, 3, 1, 2))          # back to NCHW


# ----------------------------------------------------------------------------
# Pure-JAX reference (for correctness check).
# The kernel feeds bf16 operands to the MXU (f32 accumulation) and folds the BN
# scale into the weights before the bf16 cast; mirror that rounding here so the
# comparison tolerance can stay tight.
# ----------------------------------------------------------------------------
def down_reference(x_nchw, params, eps=1e-5, match_kernel_precision=True):
    f32 = jnp.float32

    def rb(t):
        return (t.astype(jnp.bfloat16).astype(f32)
                if match_kernel_precision else t)

    def rb_w(w, scale):
        # Kernel weight = bf16(w * scale); the reference applies BN normally, so
        # its effective weight must be bf16(w * scale) / scale.
        if not match_kernel_precision:
            return w
        s = scale[:, None, None, None]
        return (w * s).astype(jnp.bfloat16).astype(f32) / s

    N, C, H, W = x_nchw.shape
    xp = rb(x_nchw).reshape(N, C, H // 2, 2, W // 2, 2).max(axis=(3, 5))

    def conv_bn_relu(x, w_eff, b, gamma, beta, mean, var):
        y = jax.lax.conv_general_dilated(
            rb(x), w_eff, (1, 1), "SAME",
            dimension_numbers=("NCHW", "OIHW", "NCHW"),
            precision=jax.lax.Precision.HIGHEST)
        y = y + b[None, :, None, None]
        y = (gamma[None, :, None, None] * (y - mean[None, :, None, None])
             / jnp.sqrt(var[None, :, None, None] + eps) + beta[None, :, None, None])
        return jnp.maximum(y, 0.0)

    s1 = params["g1"] / jnp.sqrt(params["v1"] + eps)
    s2 = params["g2"] / jnp.sqrt(params["v2"] + eps)
    y = conv_bn_relu(xp, rb_w(params["w1"], s1), params["b1"], params["g1"],
                     params["be1"], params["m1"], params["v1"])
    y = conv_bn_relu(y, rb_w(params["w2"], s2), params["b2"], params["g2"],
                     params["be2"], params["m2"], params["v2"])
    return y


# ----------------------------------------------------------------------------
def make_params(key, in_channels, out_channels):
    ks = jax.random.split(key, 10)
    Cout, Cin = out_channels, in_channels
    return {
        "w1": 0.1 * jax.random.normal(ks[0], (Cout, Cin, 3, 3), jnp.float32),
        "b1": 0.1 * jax.random.normal(ks[1], (Cout,), jnp.float32),
        "g1": 1.0 + 0.1 * jax.random.normal(ks[2], (Cout,), jnp.float32),
        "be1": 0.1 * jax.random.normal(ks[3], (Cout,), jnp.float32),
        "m1": 0.05 * jax.random.normal(ks[4], (Cout,), jnp.float32),
        "v1": 1.0 + 0.1 * jax.random.uniform(ks[5], (Cout,), jnp.float32),
        "w2": 0.1 * jax.random.normal(ks[6], (Cout, Cout, 3, 3), jnp.float32),
        "b2": 0.1 * jax.random.normal(ks[7], (Cout,), jnp.float32),
        "g2": 1.0 + 0.1 * jax.random.normal(ks[8], (Cout,), jnp.float32),
        "be2": 0.1 * jax.random.normal(ks[9], (Cout,), jnp.float32),
        "m2": jnp.linspace(-0.1, 0.1, Cout, dtype=jnp.float32),
        "v2": 1.0 + jnp.linspace(0.0, 0.2, Cout, dtype=jnp.float32),
    }


if __name__ == "__main__":
    key = jax.random.PRNGKey(0)
    k_x, k_p = jax.random.split(key)

    N, Cin, Cout, H, W = 2, 4, 8, 16, 16
    x = jax.random.normal(k_x, (N, Cin, H, W), jnp.float32)
    params = make_params(k_p, Cin, Cout)

    out = jax.block_until_ready(down_forward(x, params))
    ref = down_reference(x, params)

    assert out.shape == (N, Cout, H // 2, W // 2), out.shape
    max_err = float(jnp.max(jnp.abs(out - ref)))
    assert jnp.allclose(out, ref, rtol=2e-3, atol=2e-3), max_err

    print("KERNEL_OK")
</pallas_src>

<mosaic_0001>
module attributes {stable_mosaic.version = 11 : i64} {
  func.func @_down_kernel(%arg0: i32, %arg1: memref<1x8x2x8x256xbf16, #tpu.memory_space<vmem>>, %arg2: memref<1152x128xbf16, #tpu.memory_space<vmem>>, %arg3: memref<1x128xf32, #tpu.memory_space<vmem>>, %arg4: memref<1152x128xbf16, #tpu.memory_space<vmem>>, %arg5: memref<1x128xf32, #tpu.memory_space<vmem>>, %arg6: memref<1x64x128xf32, #tpu.memory_space<vmem>>, %arg7: memref<10x10x128xbf16, #tpu.memory_space<vmem>>, %arg8: memref<64x1152xbf16, #tpu.memory_space<vmem>>, %arg9: memref<10x10x128xbf16, #tpu.memory_space<vmem>>, %arg10: memref<64x1152xbf16, #tpu.memory_space<vmem>>) attributes {dimension_semantics = [#tpu.dimension_semantics<parallel>], iteration_bounds = array<i64: 2>, scalar_prefetch = 0 : i64, scratch_operands = 4 : i64, tpu.core_type = #tpu.core_type<tc>, window_params = [{transform_indices = @transform_0, window_bounds = array<i64: 1, 8, 2, 8, 256>}, {pipeline_mode = #tpu.pipeline_mode<synchronous>, transform_indices = @transform_1, window_bounds = array<i64: 1152, 128>}, {pipeline_mode = #tpu.pipeline_mode<synchronous>, transform_indices = @transform_2, window_bounds = array<i64: 1, 128>}, {pipeline_mode = #tpu.pipeline_mode<synchronous>, transform_indices = @transform_3, window_bounds = array<i64: 1152, 128>}, {pipeline_mode = #tpu.pipeline_mode<synchronous>, transform_indices = @transform_4, window_bounds = array<i64: 1, 128>}, {transform_indices = @transform_5, window_bounds = array<i64: 1, 64, 128>}]} {
    %c0 = arith.constant 0 : index
    %c0_0 = arith.constant 0 : index
    %c0_1 = arith.constant 0 : index
    %c0_2 = arith.constant 0 : index
    %c0_3 = arith.constant 0 : index
    %0 = vector.load %arg1[%c0, %c0_0, %c0_1, %c0_2, %c0_3] : memref<1x8x2x8x256xbf16, #tpu.memory_space<vmem>>, vector<1x8x1x8x256xbf16>
    %1 = vector.shape_cast %0 : vector<1x8x1x8x256xbf16> to vector<8x8x256xbf16>
    %c0_4 = arith.constant 0 : index
    %c0_5 = arith.constant 0 : index
    %c1 = arith.constant 1 : index
    %c0_6 = arith.constant 0 : index
    %c0_7 = arith.constant 0 : index
    %2 = vector.load %arg1[%c0_4, %c0_5, %c1, %c0_6, %c0_7] : memref<1x8x2x8x256xbf16, #tpu.memory_space<vmem>>, vector<1x8x1x8x256xbf16>
    %3 = vector.shape_cast %2 : vector<1x8x1x8x256xbf16> to vector<8x8x256xbf16>
    %4 = arith.maximumf %1, %3 : vector<8x8x256xbf16>
    %5 = vector.extract_strided_slice %4 {offsets = [0, 0, 0], sizes = [8, 8, 128], strides = [1, 1, 1]} : vector<8x8x256xbf16> to vector<8x8x128xbf16>
    %6 = vector.extract_strided_slice %4 {offsets = [0, 0, 128], sizes = [8, 8, 128], strides = [1, 1, 1]} : vector<8x8x256xbf16> to vector<8x8x128xbf16>
    %7 = arith.maximumf %5, %6 : vector<8x8x128xbf16>
    %cst = arith.constant 0.000000e+00 : bf16
    %8 = vector.broadcast %cst : bf16 to vector<1x10x128xbf16>
    %cst_8 = arith.constant 0.000000e+00 : bf16
    %9 = vector.broadcast %cst_8 : bf16 to vector<8x1x128xbf16>
    %c0_9 = arith.constant 0 : index
    %c0_10 = arith.constant 0 : index
    %c0_11 = arith.constant 0 : index
    %10 = vector.load %arg7[%c0_9, %c0_10, %c0_11] : memref<10x10x128xbf16, #tpu.memory_space<vmem>>, vector<1x10x128xbf16>
    tpu.vector_store %arg7[%c0_9, %c0_10, %c0_11], %8 {strides = array<i32>} : memref<10x10x128xbf16, #tpu.memory_space<vmem>>, vector<1x10x128xbf16>,
    %c9 = arith.constant 9 : index
    %c0_12 = arith.constant 0 : index
    %c0_13 = arith.constant 0 : index
    %11 = vector.load %arg7[%c9, %c0_12, %c0_13] : memref<10x10x128xbf16, #tpu.memory_space<vmem>>, vector<1x10x128xbf16>
    tpu.vector_store %arg7[%c9, %c0_12, %c0_13], %8 {strides = array<i32>} : memref<10x10x128xbf16, #tpu.memory_space<vmem>>, vector<1x10x128xbf16>,
    %12 = tpu.concatenate %9, %7, %9 in 1 : vector<8x1x128xbf16>, vector<8x8x128xbf16>, vector<8x1x128xbf16> -> vector<8x10x128xbf16>
    %c1_14 = arith.constant 1 : index
    %c0_15 = arith.constant 0 : index
    %c0_16 = arith.constant 0 : index
    %13 = vector.load %arg7[%c1_14, %c0_15, %c0_16] : memref<10x10x128xbf16, #tpu.memory_space<vmem>>, vector<8x10x128xbf16>
    tpu.vector_store %arg7[%c1_14, %c0_15, %c0_16], %12 {strides = array<i32>} : memref<10x10x128xbf16, #tpu.memory_space<vmem>>, vector<8x10x128xbf16>,
    %c0_17 = arith.constant 0 : index
    %c0_18 = arith.constant 0 : index
    %c0_19 = arith.constant 0 : index
    %14 = vector.load %arg7[%c0_17, %c0_18, %c0_19] : memref<10x10x128xbf16, #tpu.memory_space<vmem>>, vector<8x8x128xbf16>
    %15 = vector.shape_cast %14 : vector<8x8x128xbf16> to vector<64x128xbf16>
    %c0_20 = arith.constant 0 : index
    %c0_21 = arith.constant 0 : index
    %16 = vector.load %arg8[%c0_20, %c0_21] : memref<64x1152xbf16, #tpu.memory_space<vmem>>, vector<64x128xbf16>
    tpu.vector_store %arg8[%c0_20, %c0_21], %15 {strides = array<i32>} : memref<64x1152xbf16, #tpu.memory_space<vmem>>, vector<64x128xbf16>,
    %c0_22 = arith.constant 0 : index
    %c1_23 = arith.constant 1 : index
    %c0_24 = arith.constant 0 : index
    %17 = vector.load %arg7[%c0_22, %c1_23, %c0_24] : memref<10x10x128xbf16, #tpu.memory_space<vmem>>, vector<8x8x128xbf16>
    %18 = vector.shape_cast %17 : vector<8x8x128xbf16> to vector<64x128xbf16>
    %c0_25 = arith.constant 0 : index
    %c128 = arith.constant 128 : index
    %19 = vector.load %arg8[%c0_25, %c128] : memref<64x1152xbf16, #tpu.memory_space<vmem>>, vector<64x128xbf16>
    tpu.vector_store %arg8[%c0_25, %c128], %18 {strides = array<i32>} : memref<64x1152xbf16, #tpu.memory_space<vmem>>, vector<64x128xbf16>,
    %c0_26 = arith.constant 0 : index
    %c2 = arith.constant 2 : index
    %c0_27 = arith.constant 0 : index
    %20 = vector.load %arg7[%c0_26, %c2, %c0_27] : memref<10x10x128xbf16, #tpu.memory_space<vmem>>, vector<8x8x128xbf16>
    %21 = vector.shape_cast %20 : vector<8x8x128xbf16> to vector<64x128xbf16>
    %c0_28 = arith.constant 0 : index
    %c256 = arith.constant 256 : index
    %22 = vector.load %arg8[%c0_28, %c256] : memref<64x1152xbf16, #tpu.memory_space<vmem>>, vector<64x128xbf16>
    tpu.vector_store %arg8[%c0_28, %c256], %21 {strides = array<i32>} : memref<64x1152xbf16, #tpu.memory_space<vmem>>, vector<64x128xbf16>,
    %c1_29 = arith.constant 1 : index
    %c0_30 = arith.constant 0 : index
    %c0_31 = arith.constant 0 : index
    %23 = vector.load %arg7[%c1_29, %c0_30, %c0_31] : memref<10x10x128xbf16, #tpu.memory_space<vmem>>, vector<8x8x128xbf16>
    %24 = vector.shape_cast %23 : vector<8x8x128xbf16> to vector<64x128xbf16>
    %c0_32 = arith.constant 0 : index
    %c384 = arith.constant 384 : index
    %25 = vector.load %arg8[%c0_32, %c384] : memref<64x1152xbf16, #tpu.memory_space<vmem>>, vector<64x128xbf16>
    tpu.vector_store %arg8[%c0_32, %c384], %24 {strides = array<i32>} : memref<64x1152xbf16, #tpu.memory_space<vmem>>, vector<64x128xbf16>,
    %c1_33 = arith.constant 1 : index
    %c1_34 = arith.constant 1 : index
    %c0_35 = arith.constant 0 : index
    %26 = vector.load %arg7[%c1_33, %c1_34, %c0_35] : memref<10x10x128xbf16, #tpu.memory_space<vmem>>, vector<8x8x128xbf16>
    %27 = vector.shape_cast %26 : vector<8x8x128xbf16> to vector<64x128xbf16>
    %c0_36 = arith.constant 0 : index
    %c512 = arith.constant 512 : index
    %28 = vector.load %arg8[%c0_36, %c512] : memref<64x1152xbf16, #tpu.memory_space<vmem>>, vector<64x128xbf16>
    tpu.vector_store %arg8[%c0_36, %c512], %27 {strides = array<i32>} : memref<64x1152xbf16, #tpu.memory_space<vmem>>, vector<64x128xbf16>,
    %c1_37 = arith.constant 1 : index
    %c2_38 = arith.constant 2 : index
    %c0_39 = arith.constant 0 : index
    %29 = vector.load %arg7[%c1_37, %c2_38, %c0_39] : memref<10x10x128xbf16, #tpu.memory_space<vmem>>, vector<8x8x128xbf16>
    %30 = vector.shape_cast %29 : vector<8x8x128xbf16> to vector<64x128xbf16>
    %c0_40 = arith.constant 0 : index
    %c640 = arith.constant 640 : index
    %31 = vector.load %arg8[%c0_40, %c640] : memref<64x1152xbf16, #tpu.memory_space<vmem>>, vector<64x128xbf16>
    tpu.vector_store %arg8[%c0_40, %c640], %30 {strides = array<i32>} : memref<64x1152xbf16, #tpu.memory_space<vmem>>, vector<64x128xbf16>,
    %c2_41 = arith.constant 2 : index
    %c0_42 = arith.constant 0 : index
    %c0_43 = arith.constant 0 : index
    %32 = vector.load %arg7[%c2_41, %c0_42, %c0_43] : memref<10x10x128xbf16, #tpu.memory_space<vmem>>, vector<8x8x128xbf16>
    %33 = vector.shape_cast %32 : vector<8x8x128xbf16> to vector<64x128xbf16>
    %c0_44 = arith.constant 0 : index
    %c768 = arith.constant 768 : index
    %34 = vector.load %arg8[%c0_44, %c768] : memref<64x1152xbf16, #tpu.memory_space<vmem>>, vector<64x128xbf16>
    tpu.vector_store %arg8[%c0_44, %c768], %33 {strides = array<i32>} : memref<64x1152xbf16, #tpu.memory_space<vmem>>, vector<64x128xbf16>,
    %c2_45 = arith.constant 2 : index
    %c1_46 = arith.constant 1 : index
    %c0_47 = arith.constant 0 : index
    %35 = vector.load %arg7[%c2_45, %c1_46, %c0_47] : memref<10x10x128xbf16, #tpu.memory_space<vmem>>, vector<8x8x128xbf16>
    %36 = vector.shape_cast %35 : vector<8x8x128xbf16> to vector<64x128xbf16>
    %c0_48 = arith.constant 0 : index
    %c896 = arith.constant 896 : index
    %37 = vector.load %arg8[%c0_48, %c896] : memref<64x1152xbf16, #tpu.memory_space<vmem>>, vector<64x128xbf16>
    tpu.vector_store %arg8[%c0_48, %c896], %36 {strides = array<i32>} : memref<64x1152xbf16, #tpu.memory_space<vmem>>, vector<64x128xbf16>,
    %c2_49 = arith.constant 2 : index
    %c2_50 = arith.constant 2 : index
    %c0_51 = arith.constant 0 : index
    %38 = vector.load %arg7[%c2_49, %c2_50, %c0_51] : memref<10x10x128xbf16, #tpu.memory_space<vmem>>, vector<8x8x128xbf16>
    %39 = vector.shape_cast %38 : vector<8x8x128xbf16> to vector<64x128xbf16>
    %c0_52 = arith.constant 0 : index
    %c1024 = arith.constant 1024 : index
    %40 = vector.load %arg8[%c0_52, %c1024] : memref<64x1152xbf16, #tpu.memory_space<vmem>>, vector<64x128xbf16>
    tpu.vector_store %arg8[%c0_52, %c1024], %39 {strides = array<i32>} : memref<64x1152xbf16, #tpu.memory_space<vmem>>, vector<64x128xbf16>,
    %c0_53 = arith.constant 0 : index
    %c0_54 = arith.constant 0 : index
    %41 = vector.load %arg8[%c0_53, %c0_54] : memref<64x1152xbf16, #tpu.memory_space<vmem>>, vector<64x1152xbf16>
    %c0_55 = arith.constant 0 : index
    %c0_56 = arith.constant 0 : index
    %42 = vector.load %arg2[%c0_55, %c0_56] : memref<1152x128xbf16, #tpu.memory_space<vmem>>, vector<1152x128xbf16>
    %cst_57 = arith.constant dense<0.000000e+00> : vector<64x128xf32>
    %43 = tpu.matmul %41, %42, %cst_57 {dimension_numbers = #tpu.dot_dimension_numbers<[1], [0], [0], [1], [0, 0, 1, 1], [], []>} : vector<64x1152xbf16>, vector<1152x128xbf16>, vector<64x128xf32> -> vector<64x128xf32>
    %c0_58 = arith.constant 0 : index
    %c0_59 = arith.constant 0 : index
    %44 = vector.load %arg3[%c0_58, %c0_59] : memref<1x128xf32, #tpu.memory_space<vmem>>, vector<1x128xf32>
    %45 = vector.broadcast %44 : vector<1x128xf32> to vector<64x128xf32>
    %46 = arith.addf %43, %45 : vector<64x128xf32>
    %cst_60 = arith.constant 0.000000e+00 : f32
    %47 = vector.broadcast %cst_60 : f32 to vector<64x128xf32>
    %48 = arith.maximumf %46, %47 : vector<64x128xf32>
    %49 = arith.truncf %48 : vector<64x128xf32> to vector<64x128xbf16>
    %50 = vector.shape_cast %49 : vector<64x128xbf16> to vector<8x8x128xbf16>
    %cst_61 = arith.constant 0.000000e+00 : bf16
    %51 = vector.broadcast %cst_61 : bf16 to vector<1x10x128xbf16>
    %cst_62 = arith.constant 0.000000e+00 : bf16
    %52 = vector.broadcast %cst_62 : bf16 to vector<8x1x128xbf16>
    %c0_63 = arith.constant 0 : index
    %c0_64 = arith.constant 0 : index
    %c0_65 = arith.constant 0 : index
    %53 = vector.load %arg9[%c0_63, %c0_64, %c0_65] : memref<10x10x128xbf16, #tpu.memory_space<vmem>>, vector<1x10x128xbf16>
    tpu.vector_store %arg9[%c0_63, %c0_64, %c0_65], %51 {strides = array<i32>} : memref<10x10x128xbf16, #tpu.memory_space<vmem>>, vector<1x10x128xbf16>,
    %c9_66 = arith.constant 9 : index
    %c0_67 = arith.constant 0 : index
    %c0_68 = arith.constant 0 : index
    %54 = vector.load %arg9[%c9_66, %c0_67, %c0_68] : memref<10x10x128xbf16, #tpu.memory_space<vmem>>, vector<1x10x128xbf16>
    tpu.vector_store %arg9[%c9_66, %c0_67, %c0_68], %51 {strides = array<i32>} : memref<10x10x128xbf16, #tpu.memory_space<vmem>>, vector<1x10x128xbf16>,
    %55 = tpu.concatenate %52, %50, %52 in 1 : vector<8x1x128xbf16>, vector<8x8x128xbf16>, vector<8x1x128xbf16> -> vector<8x10x128xbf16>
    %c1_69 = arith.constant 1 : index
    %c0_70 = arith.constant 0 : index
    %c0_71 = arith.constant 0 : index
    %56 = vector.load %arg9[%c1_69, %c0_70, %c0_71] : memref<10x10x128xbf16, #tpu.memory_space<vmem>>, vector<8x10x128xbf16>
    tpu.vector_store %arg9[%c1_69, %c0_70, %c0_71], %55 {strides = array<i32>} : memref<10x10x128xbf16, #tpu.memory_space<vmem>>, vector<8x10x128xbf16>,
    %c0_72 = arith.constant 0 : index
    %c0_73 = arith.constant 0 : index
    %c0_74 = arith.constant 0 : index
    %57 = vector.load %arg9[%c0_72, %c0_73, %c0_74] : memref<10x10x128xbf16, #tpu.memory_space<vmem>>, vector<8x8x128xbf16>
    %58 = vector.shape_cast %57 : vector<8x8x128xbf16> to vector<64x128xbf16>
    %c0_75 = arith.constant 0 : index
    %c0_76 = arith.constant 0 : index
    %59 = vector.load %arg10[%c0_75, %c0_76] : memref<64x1152xbf16, #tpu.memory_space<vmem>>, vector<64x128xbf16>
    tpu.vector_store %arg10[%c0_75, %c0_76], %58 {strides = array<i32>} : memref<64x1152xbf16, #tpu.memory_space<vmem>>, vector<64x128xbf16>,
    %c0_77 = arith.constant 0 : index
    %c1_78 = arith.constant 1 : index
    %c0_79 = arith.constant 0 : index
    %60 = vector.load %arg9[%c0_77, %c1_78, %c0_79] : memref<10x10x128xbf16, #tpu.memory_space<vmem>>, vector<8x8x128xbf16>
    %61 = vector.shape_cast %60 : vector<8x8x128xbf16> to vector<64x128xbf16>
    %c0_80 = arith.constant 0 : index
    %c128_81 = arith.constant 128 : index
    %62 = vector.load %arg10[%c0_80, %c128_81] : memref<64x1152xbf16, #tpu.memory_space<vmem>>, vector<64x128xbf16>
    tpu.vector_store %arg10[%c0_80, %c128_81], %61 {strides = array<i32>} : memref<64x1152xbf16, #tpu.memory_space<vmem>>, vector<64x128xbf16>,
    %c0_82 = arith.constant 0 : index
    %c2_83 = arith.constant 2 : index
    %c0_84 = arith.constant 0 : index
    %63 = vector.load %arg9[%c0_82, %c2_83, %c0_84] : memref<10x10x128xbf16, #tpu.memory_space<vmem>>, vector<8x8x128xbf16>
    %64 = vector.shape_cast %63 : vector<8x8x128xbf16> to vector<64x128xbf16>
    %c0_85 = arith.constant 0 : index
    %c256_86 = arith.constant 256 : index
    %65 = vector.load %arg10[%c0_85, %c256_86] : memref<64x1152xbf16, #tpu.memory_space<vmem>>, vector<64x128xbf16>
    tpu.vector_store %arg10[%c0_85, %c256_86], %64 {strides = array<i32>} : memref<64x1152xbf16, #tpu.memory_space<vmem>>, vector<64x128xbf16>,
    %c1_87 = arith.constant 1 : index
    %c0_88 = arith.constant 0 : index
    %c0_89 = arith.constant 0 : index
    %66 = vector.load %arg9[%c1_87, %c0_88, %c0_89] : memref<10x10x128xbf16, #tpu.memory_space<vmem>>, vector<8x8x128xbf16>
    %67 = vector.shape_cast %66 : vector<8x8x128xbf16> to vector<64x128xbf16>
    %c0_90 = arith.constant 0 : index
    %c384_91 = arith.constant 384 : index
    %68 = vector.load %arg10[%c0_90, %c384_91] : memref<64x1152xbf16, #tpu.memory_space<vmem>>, vector<64x128xbf16>
    tpu.vector_store %arg10[%c0_90, %c384_91], %67 {strides = array<i32>} : memref<64x1152xbf16, #tpu.memory_space<vmem>>, vector<64x128xbf16>,
    %c1_92 = arith.constant 1 : index
    %c1_93 = arith.constant 1 : index
    %c0_94 = arith.constant 0 : index
    %69 = vector.load %arg9[%c1_92, %c1_93, %c0_94] : memref<10x10x128xbf16, #tpu.memory_space<vmem>>, vector<8x8x128xbf16>
    %70 = vector.shape_cast %69 : vector<8x8x128xbf16> to vector<64x128xbf16>
    %c0_95 = arith.constant 0 : index
    %c512_96 = arith.constant 512 : index
    %71 = vector.load %arg10[%c0_95, %c512_96] : memref<64x1152xbf16, #tpu.memory_space<vmem>>, vector<64x128xbf16>
    tpu.vector_store %arg10[%c0_95, %c512_96], %70 {strides = array<i32>} : memref<64x1152xbf16, #tpu.memory_space<vmem>>, vector<64x128xbf16>,
    %c1_97 = arith.constant 1 : index
    %c2_98 = arith.constant 2 : index
    %c0_99 = arith.constant 0 : index
    %72 = vector.load %arg9[%c1_97, %c2_98, %c0_99] : memref<10x10x128xbf16, #tpu.memory_space<vmem>>, vector<8x8x128xbf16>
    %73 = vector.shape_cast %72 : vector<8x8x128xbf16> to vector<64x128xbf16>
    %c0_100 = arith.constant 0 : index
    %c640_101 = arith.constant 640 : index
    %74 = vector.load %arg10[%c0_100, %c640_101] : memref<64x1152xbf16, #tpu.memory_space<vmem>>, vector<64x128xbf16>
    tpu.vector_store %arg10[%c0_100, %c640_101], %73 {strides = array<i32>} : memref<64x1152xbf16, #tpu.memory_space<vmem>>, vector<64x128xbf16>,
    %c2_102 = arith.constant 2 : index
    %c0_103 = arith.constant 0 : index
    %c0_104 = arith.constant 0 : index
    %75 = vector.load %arg9[%c2_102, %c0_103, %c0_104] : memref<10x10x128xbf16, #tpu.memory_space<vmem>>, vector<8x8x128xbf16>
    %76 = vector.shape_cast %75 : vector<8x8x128xbf16> to vector<64x128xbf16>
    %c0_105 = arith.constant 0 : index
    %c768_106 = arith.constant 768 : index
    %77 = vector.load %arg10[%c0_105, %c768_106] : memref<64x1152xbf16, #tpu.memory_space<vmem>>, vector<64x128xbf16>
    tpu.vector_store %arg10[%c0_105, %c768_106], %76 {strides = array<i32>} : memref<64x1152xbf16, #tpu.memory_space<vmem>>, vector<64x128xbf16>,
    %c2_107 = arith.constant 2 : index
    %c1_108 = arith.constant 1 : index
    %c0_109 = arith.constant 0 : index
    %78 = vector.load %arg9[%c2_107, %c1_108, %c0_109] : memref<10x10x128xbf16, #tpu.memory_space<vmem>>, vector<8x8x128xbf16>
    %79 = vector.shape_cast %78 : vector<8x8x128xbf16> to vector<64x128xbf16>
    %c0_110 = arith.constant 0 : index
    %c896_111 = arith.constant 896 : index
    %80 = vector.load %arg10[%c0_110, %c896_111] : memref<64x1152xbf16, #tpu.memory_space<vmem>>, vector<64x128xbf16>
    tpu.vector_store %arg10[%c0_110, %c896_111], %79 {strides = array<i32>} : memref<64x1152xbf16, #tpu.memory_space<vmem>>, vector<64x128xbf16>,
    %c2_112 = arith.constant 2 : index
    %c2_113 = arith.constant 2 : index
    %c0_114 = arith.constant 0 : index
    %81 = vector.load %arg9[%c2_112, %c2_113, %c0_114] : memref<10x10x128xbf16, #tpu.memory_space<vmem>>, vector<8x8x128xbf16>
    %82 = vector.shape_cast %81 : vector<8x8x128xbf16> to vector<64x128xbf16>
    %c0_115 = arith.constant 0 : index
    %c1024_116 = arith.constant 1024 : index
    %83 = vector.load %arg10[%c0_115, %c1024_116] : memref<64x1152xbf16, #tpu.memory_space<vmem>>, vector<64x128xbf16>
    tpu.vector_store %arg10[%c0_115, %c1024_116], %82 {strides = array<i32>} : memref<64x1152xbf16, #tpu.memory_space<vmem>>, vector<64x128xbf16>,
    %c0_117 = arith.constant 0 : index
    %c0_118 = arith.constant 0 : index
    %84 = vector.load %arg10[%c0_117, %c0_118] : memref<64x1152xbf16, #tpu.memory_space<vmem>>, vector<64x1152xbf16>
    %c0_119 = arith.constant 0 : index
    %c0_120 = arith.constant 0 : index
    %85 = vector.load %arg4[%c0_119, %c0_120] : memref<1152x128xbf16, #tpu.memory_space<vmem>>, vector<1152x128xbf16>
    %cst_121 = arith.constant dense<0.000000e+00> : vector<64x128xf32>
    %86 = tpu.matmul %84, %85, %cst_121 {dimension_numbers = #tpu.dot_dimension_numbers<[1], [0], [0], [1], [0, 0, 1, 1], [], []>} : vector<64x1152xbf16>, vector<1152x128xbf16>, vector<64x128xf32> -> vector<64x128xf32>
    %c0_122 = arith.constant 0 : index
    %c0_123 = arith.constant 0 : index
    %87 = vector.load %arg5[%c0_122, %c0_123] : memref<1x128xf32, #tpu.memory_space<vmem>>, vector<1x128xf32>
    %88 = vector.broadcast %87 : vector<1x128xf32> to vector<64x128xf32>
    %89 = arith.addf %86, %88 : vector<64x128xf32>
    %cst_124 = arith.constant 0.000000e+00 : f32
    %90 = vector.broadcast %cst_124 : f32 to vector<64x128xf32>
    %91 = arith.maximumf %89, %90 : vector<64x128xf32>
    %c0_125 = arith.constant 0 : index
    %c0_126 = arith.constant 0 : index
    %c0_127 = arith.constant 0 : index
    %92 = vector.load %arg6[%c0_125, %c0_126, %c0_127] : memref<1x64x128xf32, #tpu.memory_space<vmem>>, vector<1x64x128xf32>
    %93 = vector.shape_cast %92 : vector<1x64x128xf32> to vector<64x128xf32>
    %94 = vector.shape_cast %91 : vector<64x128xf32> to vector<1x64x128xf32>
    tpu.vector_store %arg6[%c0_125, %c0_126, %c0_127], %94 {strides = array<i32>} : memref<1x64x128xf32, #tpu.memory_space<vmem>>, vector<1x64x128xf32>,
    return
  }
  func.func @transform_0(%arg0: i32) -> (i32, i32, i32, i32, i32) {
    %c0_i32 = arith.constant 0 : i32
    %c0_i32_0 = arith.constant 0 : i32
    %c0_i32_1 = arith.constant 0 : i32
    %c0_i32_2 = arith.constant 0 : i32
    %c0_i32_3 = arith.constant 0 : i32
    return %arg0, %c0_i32, %c0_i32_0, %c0_i32_1, %c0_i32_2 : i32, i32, i32, i32, i32
  }
  func.func @transform_1(%arg0: i32) -> (i32, i32) {
    %c0_i32 = arith.constant 0 : i32
    %c0_i32_0 = arith.constant 0 : i32
    %c0_i32_1 = arith.constant 0 : i32
    return %c0_i32, %c0_i32_0 : i32, i32
  }
  func.func @transform_2(%arg0: i32) -> (i32, i32) {
    %c0_i32 = arith.constant 0 : i32
    %c0_i32_0 = arith.constant 0 : i32
    %c0_i32_1 = arith.constant 0 : i32
    return %c0_i32, %c0_i32_0 : i32, i32
  }
  func.func @transform_3(%arg0: i32) -> (i32, i32) {
    %c0_i32 = arith.constant 0 : i32
    %c0_i32_0 = arith.constant 0 : i32
    %c0_i32_1 = arith.constant 0 : i32
    return %c0_i32, %c0_i32_0 : i32, i32
  }
  func.func @transform_4(%arg0: i32) -> (i32, i32) {
    %c0_i32 = arith.constant 0 : i32
    %c0_i32_0 = arith.constant 0 : i32
    %c0_i32_1 = arith.constant 0 : i32
    return %c0_i32, %c0_i32_0 : i32, i32
  }
  func.func @transform_5(%arg0: i32) -> (i32, i32, i32) {
    %c0_i32 = arith.constant 0 : i32
    %c0_i32_0 = arith.constant 0 : i32
    %c0_i32_1 = arith.constant 0 : i32
    return %arg0, %c0_i32, %c0_i32_0 : i32, i32, i32
  }
}

</mosaic_0001>

<bundles_post_ra>
// kernel: tpu_custom_call.1
= control target key start
LH: loop header
LB: loop body
LE: loop exit
PB: predicated region body
PF: predicated region fallthrough
CT: control target
= control target key end

     0   :  { %10 = vsyncpa [#allocation7], 0  ;;  %s6672_s0 = inlined_call_operand.hbm [shape: bf16[2,8,2,8,256], index: 0, kind: input, shape index: {}]   ;;  %s6673_s1 = inlined_call_operand.hbm [shape: bf16[1152,128], index: 1, kind: input, shape index: {}]   ;;  %s6674_s2 = inlined_call_operand.vmem [shape: f32[1,128], index: 2, kind: input, shape index: {}]   ;;  %s6675_s3 = inlined_call_operand.hbm [shape: bf16[1152,128], index: 3, kind: input, shape index: {}]   ;;  %s6676_s4 = inlined_call_operand.vmem [shape: f32[1,128], index: 4, kind: input, shape index: {}]   ;;  %s6677_s5 = inlined_call_operand.hbm [shape: f32[2,64,128], index: 5, kind: output, shape index: {}]  }
   0x1   :  { %12 = vsyncpa [#allocation7 + $0x1], 0 }
   0x2   :  { %13 = vsyncpa [#allocation10], 0 }
   0x3   :  { %14 = vsyncpa [#allocation8], 0 }
   0x4   :  { %16 = vsyncpa [#allocation8 + $0x1], 0  ;;  %s5791_s18 = smov 0   ;;  %s5793_s19 = smov 0  }
   0x5   :  { %s5795_s20 = smov 0   ;;  %s5797_s21 = smov 0  }
   0x6 LB: > { %s5812_s22 = sadd.s32 4294967295, %s5748_s21   ;;  %s4542_s23 = sadd.s32 4294967294, %s5748_s21   ;;  %s5748_s21 = sphi %s5797_s21, %s6752_s21   ;;  %s5744_s20 = sphi %s5795_s20, %s6751_s20   ;;  %s5740_s19 = sphi %s5793_s19, %s6750_s19   ;;  %s5736_s18 = sphi %s5791_s18, %s6749_s18  }
   0x7   : > { %p42_p0 = scmp.ne.s32.totalorder %s5740_s19, %s5736_s18  ;;  %p6678_p1 = scmp.eq.s32.totalorder %s5812_s22, 0 }
   0x8   : > { %p156_p3 = scmp.eq.s32.totalorder %s4542_s23, 1  ;;  %p4543_p5 = scmp.ge.s32.totalorder %s5748_s21, 1 }
   0x9   : > { %p5821_p4 = por %p6678_p1, %p42_p0  ;;  %p163_p7 = scmp.lt.s32.totalorder %s5748_s21, 3 }
   0xa   : > { %p5826_p6 = por %p156_p3, %p42_p0  ;;  %s5750_s27 = smov [#allocation9]  }
   0xb   : > { %s6688_s24 = scalar_select %p5821_p4, 1, 0 }
   0xc   : > { %s6689_s25 = scalar_select %p5826_p6, 1, 0 }
   0xd   : > { %p5831_p8 = pnand %p4543_p5, %p163_p7  ;;  %s175_s28 = sshll.u32 %s5750_s27, 4  ;;  %s176_s28 = int_to_ptr.vmem [resolvable:$true] %s175_s28 }
   0xe   : > { %s5751_s30 = smov [#allocation11]   ;;  %s5611_s7 = scalar_lea.vmem %s176_s28, 9216 }
   0xf   : > { %s6690_s26 = scalar_select %p5831_p8, 1, 0 }
  0x10   : > { %p5296_p9 = pneg %p5831_p8  ;;  %s191_s6 = sshll.u32 %s5751_s30, 4  ;;  %s192_s6 = int_to_ptr.vmem [resolvable:$true] %s191_s6 }
  0x11   : > { %p5612_p13 = scmp.ne.s32.totalorder %s176_s28, %s5611_s7  ;;  %p5619_p5 = scmp.lt.s32.totalorder %s176_s28, %s176_s28 }
  0x12   : > { %p5840_p11 = pnand %p5296_p9, %p6678_p1  ;;  %p5620_p7 = scmp.lt.s32.totalorder %s5611_s7, %s5611_s7 }
  0x14   : > { %p5602_p12 = pneg %p5840_p11  ;;  %p5621_p10 = por %p5620_p7, %p5619_p5 }
  0x16   : > { %p5614_p0 = pnand %p5612_p13, %p5602_p12 }
  0x18   : > { %p5615_p3 = pneg %p5614_p0 }
  0x1a   : > { %p5622_p9 = pnand %p5621_p10, %p5615_p3 }
  0x1c   : > { %5625 = shalt.err (!%p5622_p9)
}
  0x1d   : > { %s5752_s8 = smov 64   ;;  %s5753_s9 = smov 4  }
  0x1e   : > { %5299 = dma.hbm_to_vmem [thread:$0]  (!%p5840_p11), %s6673_s1, 9216, %s176_s28, [#allocation10], %s5752_s8, %s5752_s8, %s5753_s9  }
  0x1f   : > { %s5637_s12 = scalar_lea.vmem %s192_s6, 9216  ;;  %p5645_p2 = scmp.lt.s32.totalorder %s192_s6, %s192_s6 }
  0x20   : > { %p5638_p1 = scmp.ne.s32.totalorder %s192_s6, %s5637_s12  ;;  %p5646_p6 = scmp.lt.s32.totalorder %s5637_s12, %s5637_s12 }
  0x22   : > { %p5640_p13 = pnand %p5638_p1, %p5602_p12  ;;  %p5647_p5 = por %p5646_p6, %p5645_p2 }
  0x24   : > { %p5641_p0 = pneg %p5640_p13 }
  0x26   : > { %p5648_p10 = pnand %p5647_p5, %p5641_p0 }
  0x28   : > { %5651 = shalt.err (!%p5648_p10)
}
  0x29   : > { %5302 = dma.hbm_to_vmem [thread:$0]  (!%p5840_p11), %s6675_s3, 9216, %s192_s6, [#allocation10], %s5752_s8, %s5752_s8, %s5753_s9  }
  0x2a   : > { %s5863_s15 = sadd.s32 1, %s5748_s21   ;;  %s29_s16 = sadd.s32 1, %s5744_s20 }
  0x2b   : > { %s26_s17 = ssub.s32 %s5748_s21, %s5863_s15  ;;  %p36_p1 = scmp.ne.s32.totalorder %s5744_s20, %s5740_s19 }
  0x2c   : > { %p27_p2 = scmp.eq.s32.totalorder %s26_s17, 0  ;;  %p37_p6 = scmp.eq.s32.totalorder %s5748_s21, 0 }
  0x2d   : > { %p6692_p12 = scmp.eq.s32.totalorder %s5812_s22, 1  ;;  %p5313_p7 = scmp.lt.s32.totalorder %s5748_s21, 2 }
  0x2e   : > { %s5879_s27 = scalar_select %p27_p2, %s5744_s20, %s29_s16  }
  0x2f   : > { %p5873_p3 = por %p6692_p12, %p36_p1  ;;  %p38_p9 = por %p37_p6, %p36_p1 }
  0x30   : > { %s208_s28 = sand.u32 1, %s5744_s20   ;;  %s4882_s30 = sshll.u32 %s5748_s21, 11 }
  0x31   : > { %s6693_s23 = scalar_select %p5873_p3, 1, 0 }
  0x32   : > { %s4547_s29 = sshll.u32 %s208_s28, 7  ;;  %s5886_s8 = scalar_lea.hbm %s6672_s0, %s4882_s30 }
  0x33   : > { %s212_s9 = scalar_lea.vmem [#allocation6], %s4547_s29  ;;  %p5890_p11 = pnand %p5313_p7, %p38_p9 }
  0x34   : > { %s219_s10 = sshll.u32 %s212_s9, 4  ;;  %s5894_s12 = scalar_lea.sflag [#allocation7], %s208_s28  ;;  %s5888_s10 = int_to_ptr.vmem [resolvable:$true] %s219_s10 }
  0x35   : > { %s5652_s13 = scalar_lea.hbm %s5886_s8, 2048  ;;  %p5654_p0 = pneg %p5890_p11 }
  0x36   : > { %p5653_p13 = scmp.ne.s32.totalorder %s5886_s8, %s5652_s13  ;;  %s5657_s17 = scalar_lea.hbm %s6672_s0, 4096 }
  0x37   : > { %p5658_p1 = scmp.lt.s32.totalorder %s5886_s8, %s6672_s0  ;;  %p5659_p2 = scmp.lt.s32.totalorder %s5657_s17, %s5652_s13 }
  0x38   : > { %p5655_p5 = pnand %p5654_p0, %p5653_p13 }
  0x39   : > { %p5660_p6 = por %p5659_p2, %p5658_p1 }
  0x3a   : > { %p5656_p10 = pneg %p5655_p5 }
  0x3c   : > { %p5661_p12 = pnand %p5660_p6, %p5656_p10 }
  0x3e   : > { %5664 = shalt.err (!%p5661_p12)
}
  0x3f   : > { %s5665_s28 = scalar_lea.vmem %s5888_s10, 2048  ;;  %s5754_s6 = smov [#allocation6]  }
  0x40   : > { %p5666_p7 = scmp.ne.s32.totalorder %s5888_s10, %s5665_s28  ;;  %s5670_s7 = sshll.u32 %s5754_s6, 4  ;;  %s5671_s7 = int_to_ptr.vmem [resolvable:$false] %s5670_s7 }
  0x41   : > { %s5672_s9 = scalar_lea.vmem %s5671_s7, 4096  ;;  %p5673_p5 = scmp.lt.s32.totalorder %s5888_s10, %s5671_s7 }
  0x42   : > { %p5668_p9 = pnand %p5666_p7, %p5654_p0  ;;  %p5674_p3 = scmp.lt.s32.totalorder %s5672_s9, %s5665_s28 }
  0x44   : > { %p5669_p13 = pneg %p5668_p9  ;;  %p5675_p4 = por %p5674_p3, %p5673_p5 }
  0x46   : > { %p5676_p8 = pnand %p5675_p4, %p5669_p13 }
  0x48   : > { %5679 = shalt.err (!%p5676_p8)
}
  0x49   : > { %s5755_s13 = smov 128   ;;  %s5756_s14 = smov 8  }
  0x4a   : > { %5306 = dma.hbm_to_vmem [thread:$0]  (!%p5890_p11), %s5886_s8, 2048, %s5888_s10, %s5894_s12, %s5755_s13, %s5755_s13, %s5756_s14  }
  0x4b   : > { %p6695_p0 = scmp.ne.s32.totalorder %s6690_s26, 0 }
  0x4d   : > { %231 = sbr.rel (%p6695_p0) target bundleno = 819 (0x333), region = 40 }
  0x52   : > { %s5918_s16 = sand.u32 1, %s5740_s19   ;;  %p6696_p4 = scmp.ne.s32.totalorder %s6688_s24, 0 }
  0x53   : > { %s4551_s17 = sshll.u32 %s5918_s16, 7  ;;  %s234_s29 = scalar_lea.sflag [#allocation7], %s5918_s16 }
  0x54   : > { %s5922_s30 = scalar_lea.vmem [#allocation6], %s4551_s17 }
  0x55   : > { %5723 = dma.done.wait (%p6696_p4), %s234_s29, 2048  }
  0x56   : > { %5725 = vsyncadd (%p6696_p4), %s234_s29, 4294965248  ;;  %p6697_p8 = scmp.eq.s32.totalorder %s5812_s22, 0 }
  0x58   : > { %5727 = dma.done.wait (%p6697_p8), [#allocation10], 18432   ;;  %p6698_p3 = pmov %p6697_p8 }
  0x59   : > { %v5757_v0 = vmov 0   ;;  %v5358_v1 = vld [vmem:[#allocation9 + $0x78] sm:$0xff]   ;;  %v5361_v4 = vld [vmem:[#allocation9 + $0x70] sm:$0xff]   ;;  %v5365_v8 = vld [vmem:[#allocation9 + $0x68] sm:$0xff]   ;;  %vm550_vm0 = vsmask.f32 3328 }
  0x5a   : > { %5729 = vsyncadd (%p6698_p3), [#allocation10], 4294948864  ;;  %330 = vst [vmem:[#allocation2] sm:$0xf] %v5757_v0  ;;  %v5359_v2 = vld [vmem:[#allocation9 + $0x38] sm:$0xff]   ;;  %4892 = vmatprep.subr.bf16.mxu0 %v5358_v1  ;;  %v5363_v6 = vld [vmem:[#allocation9 + $0x30] sm:$0xff]  }
  0x5b   : > { %331 = vst [vmem:[#allocation2 + $0x4] sm:$0x1] %v5757_v0  ;;  %333 = vst [vmem:[#allocation2 + $0x48] sm:$0xf] %v5757_v0  ;;  %v5360_v3 = vld [vmem:[#allocation9 + $0xf8] sm:$0xff]   ;;  %4893 = vmatpush3.bf16.msra.mxu0 %v5359_v2  ;;  %v5364_v7 = vld [vmem:[#allocation9 + $0xf0] sm:$0xff]  }
  0x5c   : > { %334 = vst [vmem:[#allocation2 + $0x4c] sm:$0x1] %v5757_v0  ;;  %2401 = vst [vmem:[#allocation4] sm:$0xf] %v5757_v0  ;;  %4932 = vmatprep.subr.bf16.mxu1 %v5360_v3  ;;  %v5362_v5 = vld [vmem:[#allocation9 + $0xb8] sm:$0xff]   ;;  %4894 = vmatprep.subr.bf16.mxu0 %v5361_v4  ;;  %v5366_v9 = vld [vmem:[#allocation9 + $0xb0] sm:$0xff]  }
  0x5d   : > { %2402 = vst [vmem:[#allocation4 + $0x4] sm:$0x1] %v5757_v0  ;;  %2404 = vst [vmem:[#allocation4 + $0x48] sm:$0xf] %v5757_v0  ;;  %4933 = vmatpush3.bf16.msra.mxu1 %v5362_v5  ;;  %v5367_v10 = vld [vmem:[#allocation9 + $0x28] sm:$0xff]   ;;  %v5369_v12 = vld [vmem:[#allocation9 + $0x60] sm:$0xff]  }
  0x5e   : > { %2405 = vst [vmem:[#allocation4 + $0x4c] sm:$0x1] %v5757_v0  ;;  %4934 = vmatprep.subr.bf16.mxu1 %v5364_v7  ;;  %v5368_v11 = vld [vmem:[#allocation9 + $0xe8] sm:$0xff]   ;;  %v5371_v14 = vld [vmem:[#allocation9 + $0x20] sm:$0xff]   ;;  %v5373_v16 = vld [vmem:[#allocation9 + $0x58] sm:$0xff]   ;;  %vm713_vm1 = vcmask 1042432  }
  0x5f   : > { %4895 = vmatpush3.bf16.msra.mxu0 %v5363_v6  ;;  %v5370_v13 = vld [vmem:[#allocation9 + $0xa8] sm:$0xff]   ;;  %v5372_v15 = vld [vmem:[#allocation9 + $0xe0] sm:$0xff]   ;;  %v5375_v18 = vld [vmem:[#allocation9 + $0x18] sm:$0xff]   ;;  %vm714_vm2 = vcmask 1046532   ;;  %vm424_vm3 = vsmask.f32 256 }
  0x60   : > { %4896 = vmatprep.subr.bf16.mxu0 %v5365_v8  ;;  %v5374_v17 = vld [vmem:[#allocation9 + $0xa0] sm:$0xff]   ;;  %v5376_v19 = vld [vmem:[#allocation9 + $0xd8] sm:$0xff]   ;;  %v5377_v20 = vld [vmem:[#allocation9 + $0x50] sm:$0xff]   ;;  %vm551_vm4 = vsmask.f32 7440  ;;  %vm423_vm6 = vcmask 1040384  }
  0x61   : > { %4935 = vmatpush3.bf16.msra.mxu1 %v5366_v9  ;;  %v5378_v21 = vld [vmem:[#allocation9 + $0x98] sm:$0xff]   ;;  %v5379_v22 = vld [vmem:[#allocation9 + $0x10] sm:$0xff]   ;;  %v5381_v24 = vld [vmem:[#allocation9 + $0x48] sm:$0xff]   ;;  %vm434_vm7 = vcmask 1044480   ;;  %v6701_v56 = vmov 0  ;;  %v6704_v4 = vmov 0 }
  0x62   : > { %4936 = vmatprep.subr.bf16.mxu1 %v5368_v11  ;;  %v5380_v23 = vld [vmem:[#allocation9 + $0xd0] sm:$0xff]   ;;  %v5383_v26 = vld [vmem:[#allocation9 + $0x8] sm:$0xff]   ;;  %v5385_v28 = vld [vmem:[#allocation9 + $0x40] sm:$0xff]   ;;  %vm435_vm9 = vsmask.f32 4352  ;;  %v6707_v9 = vmov 0 }
  0x63   : > { %4897 = vmatpush3.bf16.msra.mxu0 %v5367_v10  ;;  %v5382_v25 = vld [vmem:[#allocation9 + $0x90] sm:$0xff]   ;;  %v5384_v27 = vld [vmem:[#allocation9 + $0xc8] sm:$0xff]   ;;  %v5387_v30 = vld [vmem:[#allocation9] sm:$0xff]   ;;  %s4554_s11 = sshll.u32 %s5918_s16, 6  ;;  %s4891_s6 = sshll.u32 %s5812_s22, 10 }
  0x64   : > { %4898 = vmatprep.subr.bf16.mxu0 %v5369_v12  ;;  %v5386_v29 = vld [vmem:[#allocation9 + $0x88] sm:$0xff]   ;;  %v5388_v31 = vld [vmem:[#allocation9 + $0xc0] sm:$0xff]   ;;  %v5393_v43 = vld [vmem:[#allocation9 + $0x178] sm:$0xff]   ;;  %s6608_s12 = scalar_lea.vmem [#allocation12], %s4554_s11  ;;  %s6627_s13 = scalar_lea.hbm %s6677_s5, %s4891_s6 }
  0x65   : > { %4937 = vmatpush3.bf16.msra.mxu1 %v5370_v13  ;;  %v273_v32 = vld [vmem:[%s5922_s30] sm:$0xff]  ;;  %v4555_v33 = vld [vmem:[%s5922_s30 + $0x8] sm:$0xff]  ;;  %vm5936_vm5 = vmor %vm713_vm1, %vm714_vm2  ;;  %s4450_s28 = sshll.u32 %s6608_s12, 4  ;;  %s4437_s14 = scalar_lea.sflag [#allocation8], %s5918_s16  ;;  %s6621_s28 = int_to_ptr.vmem [resolvable:$true] %s4450_s28 }
  0x66   : > { %4938 = vmatprep.subr.bf16.mxu1 %v5372_v15  ;;  %v518_v34 = vld [vmem:[#allocation2] sm:$0xf]  ;;  %v290_v35 = vmax.bf16 %v4555_v33, %v273_v32  ;;  %v535_v37 = vld [vmem:[#allocation2 + $0x4] sm:$0x1]  ;;  %v274_v49 = vld [vmem:[%s5922_s30 + $0x10] sm:$0xff]  ;;  %s5680_s17 = scalar_lea.vmem %s6621_s28, 1024 }
  0x67   : > { %4899 = vmatpush3.bf16.msra.mxu0 %v5371_v14  ;;  %526 = vst [vmem:[#allocation3] sm:$0xf] %v518_v34  ;;  %v534_v36 = vld [vmem:[#allocation2] sm:$0xf]  ;;  %v563_v40 = vshll.u32 %v535_v37, 16  ;;  %v4556_v50 = vld [vmem:[%s5922_s30 + $0x18] sm:$0xff]  ;;  %vm5944_vm8 = vmor %vm550_vm0, %vm551_vm4  ;;  %p5681_p11 = scmp.ne.s32.totalorder %s6621_s28, %s5680_s17 }
  0x68   : > { %4900 = vmatprep.subr.bf16.mxu0 %v5373_v16  ;;  %v554_v38 = vshrl.u32 %v534_v36, 16  ;;  %v557_v39 = vshll.u32 %v534_v36, 16  ;;  %v5392_v41 = vld [vmem:[#allocation9 + $0x80] sm:$0xff]   ;;  %v306_v42 = vrot.slane %v290_v35, 4  ;;  %v291_v52 = vmax.bf16 %v4556_v50, %v274_v49  ;;  %v5398_v59 = vld [vmem:[#allocation9 + $0x1f8] sm:$0xff]   ;;  %vm5954_vm10 = vmand %vm423_vm6, %vm424_vm3  ;;  %p6746_p10 = scmp.ne.s32.totalorder %s6693_s23, 0 }
  0x69   : > { %4939 = vmatpush3.bf16.msra.mxu1 %v5374_v17  ;;  %v565_v48 = vrot.slane %v563_v40, 5  ;;  %v681_v53 = vld [vmem:[#allocation2] sm:$0xe]  ;;  %v682_v54 = vld [vmem:[#allocation2 + $0x4] sm:$0x1]  ;;  %v6702_v56 = vsel %vm5944_vm8, 4294967295, %v6701_v56  ;;  %vm5961_vm11 = vmand %vm434_vm7, %vm435_vm9 }
  0x6a   : > { %4940 = vmatprep.subr.bf16.mxu1 %v5376_v19  ;;  %v556_v44 = vrot.slane %v554_v38, 4  ;;  %v559_v45 = vrot.slane %v557_v39, 5  ;;  %v322_v47 = vmax.bf16 %v306_v42, %v290_v35  ;;  %6703 = vst [vmem:[#allocation16_spill] sm:$0xff] %v6702_v56  ;;  %v4587_v57 = vrot.slane %v681_v53, 9  ;;  %v275_v6 = vld [vmem:[%s5922_s30 + $0x20] sm:$0xff]  ;;  %v4557_v7 = vld [vmem:[%s5922_s30 + $0x28] sm:$0xff]  ;;  %p5682_p1 = pnand %p5681_p11, %p6746_p10 }
  0x6b   : > { %4901 = vmatpush3.bf16.msra.mxu0 %v5375_v18  ;;  %v718_v58 = vrot.slane %v682_v54, 5  ;;  %v307_v61 = vrot.slane %v291_v52, 4  ;;  %v6705_v4 = vsel %vm5954_vm10, 4294967295, %v6704_v4  ;;  %v6708_v9 = vsel %vm5961_vm11, 4294967295, %v6707_v9  ;;  %v276_v17 = vld [vmem:[%s5922_s30 + $0x30] sm:$0xff]  ;;  %v4558_v18 = vld [vmem:[%s5922_s30 + $0x38] sm:$0xff] }
  0x6c   : > { %4902 = vmatprep.subr.bf16.mxu0 %v5377_v20  ;;  %v560_v51 = vor.u32 %v559_v45, %v556_v44  ;;  %v4563_v55 = vcombine.low %v322_v47, %v322_v47  ;;  %6706 = vst [vmem:[#allocation17_spill] sm:$0xff] %v6705_v4  ;;  %6709 = vst [vmem:[#allocation18_spill] sm:$0xff] %v6708_v9  ;;  %v292_v10 = vmax.bf16 %v4557_v7, %v275_v6  ;;  %v277_v33 = vld [vmem:[%s5922_s30 + $0x40] sm:$0xff]  ;;  %v4559_v36 = vld [vmem:[%s5922_s30 + $0x48] sm:$0xff]  ;;  %p5683_p2 = pneg %p5682_p1  ;;  %s5758_s22 = smov [#allocation12]  }
  0x6d   : > { %4941 = vmatpush3.bf16.msra.mxu1 %v5378_v21  ;;  %v719_v0 = vsel %vm5936_vm5, %v4587_v57, %v718_v58  ;;  %v323_v2 = vmax.bf16 %v307_v61, %v291_v52  ;;  %s5684_s29 = sshll.u32 %s5758_s22, 4  ;;  %s5685_s29 = int_to_ptr.vmem [resolvable:$false] %s5684_s29 }
  0x6e   : > { %4942 = vmatprep.subr.bf16.mxu1 %v5380_v23  ;;  %v561_v60 = vrot.slane %v560_v51, 4  ;;  %v360_v62 = vshrl.u32 %v4563_v55, 16  ;;  %v363_v63 = vshll.u32 %v4563_v55, 16  ;;  %756 = vst [vmem:[#allocation3 + $0x8] sm:$0xf] %v719_v0  ;;  %v308_v14 = vrot.slane %v292_v10, 4  ;;  %p5687_p6 = scmp.lt.s32.totalorder %s6621_s28, %s5685_s29 }
  0x6f   : > { %4903 = vmatpush3.bf16.msra.mxu0 %v5379_v22  ;;  %v4564_v5 = vcombine.low %v323_v2, %v323_v2  ;;  %v293_v22 = vmax.bf16 %v4558_v18, %v276_v17  ;;  %v4560_v0 = vld [vmem:[%s5922_s30 + $0x58] sm:$0xff] }
  0x70   : > { %4904 = vmatprep.subr.bf16.mxu0 %v5381_v24  ;;  %v566_v1 = vsel %vm5944_vm8, %v561_v60, %v565_v48  ;;  %v362_v3 = vrot.slane %v360_v62, 7  ;;  %v324_v21 = vmax.bf16 %v308_v14, %v292_v10 }
  0x71   : > { %4943 = vmatpush3.bf16.msra.mxu1 %v5382_v25  ;;  %673 = vst [vmem:[#allocation3 + $0x4] sm:$0xf] %v566_v1  ;;  %v367_v11 = vshrl.u32 %v4564_v5, 16  ;;  %v370_v12 = vshll.u32 %v4564_v5, 16  ;;  %v309_v25 = vrot.slane %v293_v22, 4 }
  0x72   : > { %4944 = vmatprep.subr.bf16.mxu1 %v5384_v27  ;;  %v365_v8 = vor.u32 %v363_v63, %v362_v3  ;;  %v4565_v24 = vcombine.low %v324_v21, %v324_v21  ;;  %v278_v63 = vld [vmem:[%s5922_s30 + $0x50] sm:$0xff] }
  0x73   : > { %4905 = vmatpush3.bf16.msra.mxu0 %v5383_v26  ;;  %v369_v16 = vrot.slane %v367_v11, 7  ;;  %v295_v7 = vmax.bf16 %v4560_v0, %v278_v63 }
  0x74   : > { %4906 = vmatprep.subr.bf16.mxu0 %v5385_v28  ;;  %v426_v13 = vsel %vm5954_vm10, 0, %v365_v8  ;;  %v374_v28 = vshrl.u32 %v4565_v24, 16 }
  0x75   : > { %4945 = vmatpush3.bf16.msra.mxu1 %v5386_v29  ;;  %v437_v15 = vsel %vm5961_vm11, %v426_v13, 0  ;;  %v372_v23 = vor.u32 %v370_v12, %v369_v16  ;;  %v377_v29 = vshll.u32 %v4565_v24, 16 }
  0x76   : > { %4946 = vmatprep.subr.bf16.mxu1 %v5388_v31  ;;  %v4571_v19 = vcombine.low %v437_v15, %v437_v15  ;;  %v4572_v20 = vcombine.high %v437_v15, %v437_v15  ;;  %v376_v34 = vrot.slane %v374_v28, 7 }
  0x77   : > { %4907 = vmatpush3.bf16.msra.mxu0 %v5387_v30  ;;  %v427_v26 = vsel %vm5954_vm10, 0, %v372_v23  ;;  %v325_v30 = vmax.bf16 %v309_v25, %v293_v22 }
  0x78   : > { %4972 = vmatprep.subr.bf16.mxu0 %v5393_v43  ;;  %502 = vst [vmem:[#allocation2 + $0x8] sm:$0xf] %v4571_v19  ;;  %503 = vst [vmem:[#allocation2 + $0xc] sm:$0x1] %v4572_v20  ;;  %v438_v27 = vsel %vm5961_vm11, %v427_v26, 0  ;;  %v379_v37 = vor.u32 %v377_v29, %v376_v34  ;;  %v294_v43 = vmax.bf16 %v4559_v36, %v277_v33  ;;  %v311_v19 = vrot.slane %v295_v7, 4 }
  0x79   : > { %4947 = vmatpush3.bf16.msra.mxu1 %v5392_v41  ;;  %v4573_v31 = vcombine.low %v438_v27, %v438_v27  ;;  %v4574_v32 = vcombine.high %v438_v27, %v438_v27  ;;  %v4566_v35 = vcombine.low %v325_v30, %v325_v30  ;;  %v5402_v36 = vld [vmem:[#allocation9 + $0x1f0] sm:$0xff]  }
  0x7a   : > { %5012 = vmatprep.subr.bf16.mxu1 %v5398_v59  ;;  %v428_v49 = vsel %vm5954_vm10, 0, %v379_v37  ;;  %v310_v62 = vrot.slane %v294_v43, 4 }
  0x7b   : > { %504 = vst [vmem:[#allocation2 + $0x10] sm:$0xf] %v4573_v31  ;;  %505 = vst [vmem:[#allocation2 + $0x14] sm:$0x1] %v4574_v32  ;;  %v381_v38 = vshrl.u32 %v4566_v35, 16  ;;  %v384_v39 = vshll.u32 %v4566_v35, 16  ;;  %v327_v35 = vmax.bf16 %v311_v19, %v295_v7 }
  0x7c   : > { %v439_v53 = vsel %vm5961_vm11, %v428_v49, 0  ;;  %v326_v14 = vmax.bf16 %v310_v62, %v294_v43  ;;  %v5400_v32 = vld [vmem:[#allocation9 + $0x1b8] sm:$0xff]   ;;  %v5414_v7 = vld [vmem:[#allocation9 + $0x1a8] sm:$0xff]  }
  0x7d   : > { %v4575_v59 = vcombine.low %v439_v53, %v439_v53  ;;  %v4576_v60 = vcombine.high %v439_v53, %v439_v53  ;;  %v383_v61 = vrot.slane %v381_v38, 7 }
  0x7e   : > { %v4567_v27 = vcombine.low %v326_v14, %v326_v14  ;;  %v5405_v14 = vld [vmem:[#allocation9 + $0x168] sm:$0xff]  }
  0x7f   : > { %v519_v40 = vld [vmem:[#allocation2 + $0x8] sm:$0xf]  ;;  %v537_v42 = vld [vmem:[#allocation2 + $0xc] sm:$0x1]  ;;  %506 = vst [vmem:[#allocation2 + $0x18] sm:$0xf] %v4575_v59  ;;  %v386_v12 = vor.u32 %v384_v39, %v383_v61 }
  0x80   : > { %v536_v41 = vld [vmem:[#allocation2 + $0x8] sm:$0xf]  ;;  %527 = vst [vmem:[#allocation3 + $0x24] sm:$0xf] %v519_v40  ;;  %v577_v47 = vshll.u32 %v537_v42, 16  ;;  %v388_v33 = vshrl.u32 %v4567_v27, 16 }
  0x81   : > { %v568_v44 = vshrl.u32 %v536_v41, 16  ;;  %v571_v45 = vshll.u32 %v536_v41, 16  ;;  %v683_v48 = vld [vmem:[#allocation2 + $0x8] sm:$0xe]  ;;  %v684_v50 = vld [vmem:[#allocation2 + $0xc] sm:$0x1]  ;;  %v5993_v41 = vcombine.low %v327_v35, %v327_v35 }
  0x82   : > { %v4588_v51 = vrot.slane %v683_v48, 9  ;;  %v764_v52 = vld [vmem:[#allocation2 + $0x8] sm:$0xf]  ;;  %v579_v57 = vrot.slane %v577_v47, 5  ;;  %v722_v58 = vrot.slane %v684_v50, 5  ;;  %v429_v22 = vsel %vm5954_vm10, 0, %v386_v12 }
  0x83   : > { %v570_v54 = vrot.slane %v568_v44, 4  ;;  %v573_v55 = vrot.slane %v571_v45, 5  ;;  %772 = vst [vmem:[#allocation3 + $0xc] sm:$0xf] %v764_v52  ;;  %v765_v3 = vld [vmem:[#allocation2 + $0x10] sm:$0xf] }
  0x84   : > { %v723_v2 = vsel %vm5936_vm5, %v4588_v51, %v722_v58  ;;  %v520_v5 = vld [vmem:[#allocation2 + $0x10] sm:$0xf]  ;;  %773 = vst [vmem:[#allocation3 + $0x30] sm:$0xf] %v765_v3  ;;  %507 = vst [vmem:[#allocation2 + $0x1c] sm:$0x1] %v4576_v60 }
  0x85   : > { %v574_v1 = vor.u32 %v573_v55, %v570_v54  ;;  %v538_v6 = vld [vmem:[#allocation2 + $0x10] sm:$0xf]  ;;  %757 = vst [vmem:[#allocation3 + $0x2c] sm:$0xf] %v723_v2  ;;  %528 = vst [vmem:[#allocation3 + $0x48] sm:$0xf] %v520_v5 }
  0x86   : > { %v539_v8 = vld [vmem:[#allocation2 + $0x14] sm:$0x1]  ;;  %v582_v10 = vshrl.u32 %v538_v6, 16  ;;  %v585_v11 = vshll.u32 %v538_v6, 16  ;;  %v685_v13 = vld [vmem:[#allocation2 + $0x10] sm:$0xe] }
  0x87   : > { %v575_v15 = vrot.slane %v574_v1, 4  ;;  %v591_v16 = vshll.u32 %v539_v8, 16  ;;  %v686_v17 = vld [vmem:[#allocation2 + $0x14] sm:$0x1]  ;;  %v4589_v18 = vrot.slane %v685_v13, 9  ;;  %v440_v26 = vsel %vm5961_vm11, %v429_v22, 0 }
  0x88   : > { %v584_v20 = vrot.slane %v582_v10, 4  ;;  %v587_v21 = vrot.slane %v585_v11, 5  ;;  %v726_v23 = vrot.slane %v686_v17, 5  ;;  %v4577_v29 = vcombine.low %v440_v26, %v440_v26  ;;  %v521_v42 = vld [vmem:[#allocation2 + $0x18] sm:$0xf]  ;;  %v5406_v51 = vld [vmem:[#allocation9 + $0x1b0] sm:$0xff]  }
  0x89   : > { %v580_v24 = vsel %vm5944_vm8, %v575_v15, %v579_v57  ;;  %v593_v25 = vrot.slane %v591_v16, 5  ;;  %v4578_v30 = vcombine.high %v440_v26, %v440_v26  ;;  %v391_v34 = vshll.u32 %v4567_v27, 16  ;;  %v540_v43 = vld [vmem:[#allocation2 + $0x18] sm:$0xf]  ;;  %529 = vst [vmem:[#allocation3 + $0x6c] sm:$0xf] %v521_v42 }
  0x8a   : > { %674 = vst [vmem:[#allocation3 + $0x28] sm:$0xf] %v580_v24  ;;  %v588_v28 = vor.u32 %v587_v21, %v584_v20  ;;  %v727_v31 = vsel %vm5936_vm5, %v4589_v18, %v726_v23  ;;  %508 = vst [vmem:[#allocation2 + $0x20] sm:$0xf] %v4577_v29  ;;  %v390_v40 = vrot.slane %v388_v33, 7  ;;  %v5394_v47 = vld [vmem:[#allocation9 + $0x138] sm:$0xff]  }
  0x8b   : > { %758 = vst [vmem:[#allocation3 + $0x50] sm:$0xf] %v727_v31  ;;  %509 = vst [vmem:[#allocation2 + $0x24] sm:$0x1] %v4578_v30  ;;  %v5397_v39 = vld [vmem:[#allocation3 + $0xc] ss:$36 sps:$4 sm:$0xff]  }
  0x8c   : > { %v589_v37 = vrot.slane %v588_v28, 4  ;;  %v5395_v38 = vld [vmem:[#allocation3 + $0x8] ss:$36 sps:$4 sm:$0xff]   ;;  %2149 = vmatprep.mubr.bf16.mxu1 %v5397_v39  ;;  %v596_v48 = vshrl.u32 %v540_v43, 16  ;;  %v599_v49 = vshll.u32 %v540_v43, 16  ;;  %v393_v53 = vor.u32 %v391_v34, %v390_v40  ;;  %v5399_v54 = vld [vmem:[#allocation9 + $0x170] sm:$0xff]  }
  0x8d   : > { %v541_v44 = vld [vmem:[#allocation2 + $0x1c] sm:$0x1]  ;;  %v687_v52 = vld [vmem:[#allocation2 + $0x18] sm:$0xe]  ;;  %2150 = vmatmul.mubr.bf16.vlgmr.msra.gmra.mxu1 %v5395_v38  ;;  %v5412_v59 = vld [vmem:[#allocation9 + $0x1e8] sm:$0xff]   ;;  %v395_v60 = vshrl.u32 %v5993_v41, 16 }
  0x8e   : > { %v594_v45 = vsel %vm5944_vm8, %v589_v37, %v593_v25  ;;  %v605_v50 = vshll.u32 %v541_v44, 16  ;;  %v688_v55 = vld [vmem:[#allocation2 + $0x1c] sm:$0x1]  ;;  %v4590_v57 = vrot.slane %v687_v52, 9  ;;  %v766_v58 = vld [vmem:[#allocation2 + $0x18] sm:$0xf]  ;;  %5013 = vmatpush3.bf16.msra.mxu1 %v5400_v32 }
  0x8f   : > { %675 = vst [vmem:[#allocation3 + $0x4c] sm:$0xf] %v594_v45  ;;  %v5389_v61 = vld [vmem:[#allocation3] ss:$36 sps:$4 sm:$0xff]   ;;  %v598_v63 = vrot.slane %v596_v48, 4  ;;  %5014 = vmatprep.subr.bf16.mxu1 %v5402_v36  ;;  %v601_v0 = vrot.slane %v599_v49, 5 }
  0x90   : > { %774 = vst [vmem:[#allocation3 + $0x54] sm:$0xf] %v766_v58  ;;  %v607_v1 = vrot.slane %v605_v50, 5  ;;  %v730_v2 = vrot.slane %v688_v55, 5  ;;  %v430_v3 = vsel %vm5954_vm10, 0, %v393_v53  ;;  %v5401_v5 = vld [vmem:[#allocation9 + $0x130] sm:$0xff]  }
  0x91   : > { %v5391_v62 = vld [vmem:[#allocation3 + $0x4] ss:$36 sps:$4 sm:$0xff]   ;;  %v767_v6 = vld [vmem:[#allocation2 + $0x20] sm:$0xf]  ;;  %v441_v8 = vsel %vm5961_vm11, %v430_v3, 0  ;;  %v397_v11 = vrot.slane %v395_v60, 7  ;;  %v602_v13 = vor.u32 %v601_v0, %v598_v63 }
  0x92   : > { %2084 = vmatprep.mubr.bf16.mxu0 %v5391_v62  ;;  %v522_v10 = vld [vmem:[#allocation2 + $0x20] sm:$0xf]  ;;  %v731_v15 = vsel %vm5936_vm5, %v4590_v57, %v730_v2  ;;  %775 = vst [vmem:[#allocation3 + $0x78] sm:$0xf] %v767_v6  ;;  %v4579_v17 = vcombine.low %v441_v8, %v441_v8  ;;  %v4580_v18 = vcombine.high %v441_v8, %v441_v8  ;;  %v543_v20 = vld [vmem:[#allocation2 + $0x24] sm:$0x1] }
  0x93   : > { %v279_v12 = vld [vmem:[%s5922_s30 + $0x60] sm:$0xff]  ;;  %2085 = vmatmul.mubr.bf16.vlgmr.msra.gmra.mxu0 %v5389_v61  ;;  %530 = vst [vmem:[#allocation3 + $0x90] sm:$0xf] %v522_v10  ;;  %5015 = vmatpush3.bf16.msra.mxu1 %v5406_v51  ;;  %759 = vst [vmem:[#allocation3 + $0x74] sm:$0xf] %v731_v15  ;;  %v619_v24 = vshll.u32 %v543_v20, 16 }
  0x94   : > { %v5416_v16 = vld [vmem:[#allocation9 + $0x1e0] sm:$0xff]   ;;  %4973 = vmatpush3.bf16.msra.mxu0 %v5394_v47  ;;  %v398_v25 = vshll.u32 %v5993_v41, 16  ;;  %v603_v27 = vrot.slane %v602_v13, 4  ;;  %5016 = vmatprep.subr.bf16.mxu1 %v5412_v59  ;;  %510 = vst [vmem:[#allocation2 + $0x28] sm:$0xf] %v4579_v17  ;;  %v5408_v30 = vld [vmem:[#allocation9 + $0x128] sm:$0xff]  }
  0x95   : > { %v542_v19 = vld [vmem:[#allocation2 + $0x20] sm:$0xf]  ;;  %v690_v26 = vld [vmem:[#allocation2 + $0x24] sm:$0x1]  ;;  %4974 = vmatprep.subr.bf16.mxu0 %v5399_v54  ;;  %511 = vst [vmem:[#allocation2 + $0x2c] sm:$0x1] %v4580_v18 }
  0x96   : > { %v689_v21 = vld [vmem:[#allocation2 + $0x20] sm:$0xe]  ;;  %v610_v22 = vshrl.u32 %v542_v19, 16  ;;  %v613_v23 = vshll.u32 %v542_v19, 16  ;;  %v734_v29 = vrot.slane %v690_v26, 5  ;;  %v400_v33 = vor.u32 %v398_v25, %v397_v11  ;;  %v4561_v34 = vld [vmem:[%s5922_s30 + $0x68] sm:$0xff] }
  0x97   : > { %v4591_v28 = vrot.slane %v689_v21, 9  ;;  %v608_v35 = vsel %vm5944_vm8, %v603_v27, %v607_v1  ;;  %v5413_v36 = vld [vmem:[#allocation9 + $0x160] sm:$0xff]   ;;  %v296_v39 = vmax.bf16 %v4561_v34, %v279_v12  ;;  %5017 = vmatpush3.bf16.msra.mxu1 %v5414_v7  ;;  %v621_v41 = vrot.slane %v619_v24, 5  ;;  %v5426_v43 = vld [vmem:[#allocation9 + $0x1d8] sm:$0xff]   ;;  %v280_v52 = vld [vmem:[%s5922_s30 + $0x70] sm:$0xff] }
  0x98   : > { %v612_v31 = vrot.slane %v610_v22, 4  ;;  %v615_v32 = vrot.slane %v613_v23, 5  ;;  %v5420_v37 = vld [vmem:[#allocation9 + $0x1a0] sm:$0xff]   ;;  %4975 = vmatpush3.bf16.msra.mxu0 %v5401_v5  ;;  %676 = vst [vmem:[#allocation3 + $0x70] sm:$0xf] %v608_v35  ;;  %v431_v42 = vsel %vm5954_vm10, 0, %v400_v33  ;;  %5018 = vmatprep.subr.bf16.mxu1 %v5416_v16 }
  0x99   : > { %v735_v38 = vsel %vm5936_vm5, %v4591_v28, %v734_v29  ;;  %4976 = vmatprep.subr.bf16.mxu0 %v5405_v14  ;;  %v442_v44 = vsel %vm5961_vm11, %v431_v42, 0  ;;  %v312_v45 = vrot.slane %v296_v39, 4  ;;  %v5415_v47 = vld [vmem:[#allocation9 + $0x120] sm:$0xff]   ;;  %v5428_v51 = vld [vmem:[#allocation9 + $0x198] sm:$0xff]   ;;  %v5430_v5 = vld [vmem:[#allocation9 + $0x1d0] sm:$0xff]  }
  0x9a   : > { %v616_v40 = vor.u32 %v615_v32, %v612_v31  ;;  %760 = vst [vmem:[#allocation3 + $0x98] sm:$0xf] %v735_v38  ;;  %v4581_v49 = vcombine.low %v442_v44, %v442_v44  ;;  %v4582_v50 = vcombine.high %v442_v44, %v442_v44  ;;  %v4562_v53 = vld [vmem:[%s5922_s30 + $0x78] sm:$0xff]  ;;  %v5409_v54 = vld [vmem:[#allocation3 + $0x54] ss:$36 sps:$4 sm:$0xff]   ;;  %v5434_v12 = vld [vmem:[#allocation9 + $0x190] sm:$0xff]  }
  0x9b   : > { %v5411_v55 = vld [vmem:[#allocation3 + $0x50] ss:$36 sps:$4 sm:$0xff]   ;;  %v5419_v57 = vld [vmem:[#allocation9 + $0x158] sm:$0xff]   ;;  %v328_v58 = vmax.bf16 %v312_v45, %v296_v39  ;;  %v297_v59 = vmax.bf16 %v4562_v53, %v280_v52  ;;  %v523_v60 = vld [vmem:[#allocation2 + $0x28] sm:$0xf]  ;;  %5019 = vmatpush3.bf16.msra.mxu1 %v5420_v37  ;;  %2157 = vmatprep.mubr.bf16.mxu1 %v5409_v54  ;;  %s5686_s30 = scalar_lea.vmem %s5685_s29, 2048 }
  0x9c   : > { %v617_v48 = vrot.slane %v616_v40, 4  ;;  %4977 = vmatpush3.bf16.msra.mxu0 %v5408_v30  ;;  %v544_v61 = vld [vmem:[#allocation2 + $0x28] sm:$0xf]  ;;  %v545_v62 = vld [vmem:[#allocation2 + $0x2c] sm:$0x1]  ;;  %2158 = vmatmul.mubr.bf16.gmra.mxu1 %v5411_v55  ;;  %v5422_v7 = vld [vmem:[#allocation9 + $0x118] sm:$0xff]   ;;  %p5688_p12 = scmp.lt.s32.totalorder %s5686_s30, %s5680_s17 }
  0x9d   : > { %512 = vst [vmem:[#allocation2 + $0x30] sm:$0xf] %v4581_v49  ;;  %513 = vst [vmem:[#allocation2 + $0x34] sm:$0x1] %v4582_v50  ;;  %4978 = vmatprep.subr.bf16.mxu0 %v5413_v36  ;;  %v624_v0 = vshrl.u32 %v544_v61, 16  ;;  %v627_v1 = vshll.u32 %v544_v61, 16  ;;  %v4569_v6 = vcombine.low %v328_v58, %v328_v58  ;;  %5020 = vmatprep.subr.bf16.mxu1 %v5426_v43 }
  0x9e   : > { %v622_v63 = vsel %vm5944_vm8, %v617_v48, %v621_v41  ;;  %531 = vst [vmem:[#allocation3 + $0xb4] sm:$0xf] %v523_v60  ;;  %v633_v2 = vshll.u32 %v545_v62, 16  ;;  %v691_v3 = vld [vmem:[#allocation2 + $0x28] sm:$0xe]  ;;  %v313_v13 = vrot.slane %v297_v59, 4  ;;  %p5689_p7 = por %p5688_p12, %p5687_p6 }
  0x9f   : > { %677 = vst [vmem:[#allocation3 + $0x94] sm:$0xf] %v622_v63  ;;  %v692_v8 = vld [vmem:[#allocation2 + $0x2c] sm:$0x1]  ;;  %v4592_v10 = vrot.slane %v691_v3, 9  ;;  %v626_v16 = vrot.slane %v624_v0, 4  ;;  %5021 = vmatpush3.bf16.msra.mxu1 %v5428_v51 }
  0xa0   : > { %v768_v11 = vld [vmem:[#allocation2 + $0x28] sm:$0xf]  ;;  %v5403_v14 = vld [vmem:[#allocation3 + $0x4c] ss:$36 sps:$4 sm:$0xff]   ;;  %v5427_v17 = vld [vmem:[#allocation9 + $0x150] sm:$0xff]   ;;  %4979 = vmatpush3.bf16.msra.mxu0 %v5415_v47  ;;  %v629_v18 = vrot.slane %v627_v1, 5  ;;  %v329_v24 = vmax.bf16 %v313_v13, %v297_v59  ;;  %5022 = vmatprep.subr.bf16.mxu1 %v5430_v5  ;;  %p5690_p9 = pnand %p5689_p7, %p5683_p2 }
  0xa1   : > { %v5407_v15 = vld [vmem:[#allocation3 + $0x48] ss:$36 sps:$4 sm:$0xff]   ;;  %776 = vst [vmem:[#allocation3 + $0x9c] sm:$0xf] %v768_v11  ;;  %v738_v19 = vrot.slane %v692_v8, 5  ;;  %v402_v20 = vshrl.u32 %v4569_v6, 16  ;;  %2092 = vmatprep.mubr.bf16.mxu0 %v5403_v14  ;;  %4980 = vmatprep.subr.bf16.mxu0 %v5419_v57 }
  0xa2   : > { %v5440_v21 = vld [vmem:[#allocation9 + $0x1c8] sm:$0xff]   ;;  %v635_v22 = vrot.slane %v633_v2, 5  ;;  %v405_v23 = vshll.u32 %v4569_v6, 16  ;;  %2093 = vmatmul.mubr.bf16.gmra.mxu0 %v5407_v15  ;;  %v630_v25 = vor.u32 %v629_v18, %v626_v16  ;;  %v5429_v27 = vld [vmem:[#allocation9 + $0x110] sm:$0xff]   ;;  %v4570_v33 = vcombine.low %v329_v24, %v329_v24  ;;  %v5441_v55 = vld [vmem:[#allocation9 + $0x140] sm:$0xff]  }
  0xa3   : > { %v739_v26 = vsel %vm5936_vm5, %v4592_v10, %v738_v19  ;;  %v404_v28 = vrot.slane %v402_v20, 7  ;;  %v5442_v29 = vld [vmem:[#allocation9 + $0x188] sm:$0xff]   ;;  %5023 = vmatpush3.bf16.msra.mxu1 %v5434_v12  ;;  %v5444_v61 = vld [vmem:[#allocation9 + $0x1c0] sm:$0xff]   ;;  %v782_v5 = vld [vmem:[#allocation2 + $0x10] sm:$0xf] }
  0xa4   : > { %761 = vst [vmem:[#allocation3 + $0xbc] sm:$0xf] %v739_v26  ;;  %v769_v30 = vld [vmem:[#allocation2 + $0x30] sm:$0xf]  ;;  %v631_v34 = vrot.slane %v630_v25, 4  ;;  %4981 = vmatpush3.bf16.msra.mxu0 %v5422_v7  ;;  %v5433_v40 = vld [vmem:[#allocation9 + $0x148] sm:$0xff]   ;;  %5024 = vmatprep.subr.bf16.mxu1 %v5440_v21 }
  0xa5   : > { %v524_v31 = vld [vmem:[#allocation2 + $0x30] sm:$0xf]  ;;  %777 = vst [vmem:[#allocation3 + $0xc0] sm:$0xf] %v769_v30  ;;  %v407_v35 = vor.u32 %v405_v23, %v404_v28  ;;  %v547_v36 = vld [vmem:[#allocation2 + $0x34] sm:$0x1]  ;;  %4982 = vmatprep.subr.bf16.mxu0 %v5427_v17 }
  0xa6   : > { %v546_v32 = vld [vmem:[#allocation2 + $0x30] sm:$0xf]  ;;  %532 = vst [vmem:[#allocation3 + $0xd8] sm:$0xf] %v524_v31  ;;  %v647_v39 = vshll.u32 %v547_v36, 16  ;;  %v409_v41 = vshrl.u32 %v4570_v33, 16  ;;  %v636_v44 = vsel %vm5944_vm8, %v631_v34, %v635_v22 }
  0xa7   : > { %v638_v37 = vshrl.u32 %v546_v32, 16  ;;  %v641_v38 = vshll.u32 %v546_v32, 16  ;;  %v412_v42 = vshll.u32 %v4570_v33, 16  ;;  %v693_v43 = vld [vmem:[#allocation2 + $0x30] sm:$0xe]  ;;  %v432_v45 = vsel %vm5954_vm10, 0, %v407_v35  ;;  %5025 = vmatpush3.bf16.msra.mxu1 %v5442_v29 }
  0xa8   : > { %v5436_v49 = vld [vmem:[#allocation9 + $0x108] sm:$0xff]   ;;  %v694_v50 = vld [vmem:[#allocation2 + $0x34] sm:$0x1]  ;;  %678 = vst [vmem:[#allocation3 + $0xb8] sm:$0xf] %v636_v44  ;;  %v443_v51 = vsel %vm5961_vm11, %v432_v45, 0  ;;  %4983 = vmatpush3.bf16.msra.mxu0 %v5429_v27  ;;  %5026 = vmatprep.subr.bf16.mxu1 %v5444_v61 }
  0xa9   : > { %v640_v47 = vrot.slane %v638_v37, 4  ;;  %v643_v48 = vrot.slane %v641_v38, 5  ;;  %v649_v52 = vrot.slane %v647_v39, 5  ;;  %v411_v53 = vrot.slane %v409_v41, 7  ;;  %4984 = vmatprep.subr.bf16.mxu0 %v5433_v40  ;;  %v780_v63 = vld [vmem:[#allocation2 + $0x8] sm:$0xf] }
  0xaa   : > { %v4593_v54 = vrot.slane %v693_v43, 9  ;;  %v4583_v57 = vcombine.low %v443_v51, %v443_v51  ;;  %v4584_v58 = vcombine.high %v443_v51, %v443_v51  ;;  %v742_v60 = vrot.slane %v694_v50, 5  ;;  %v5443_v2 = vld [vmem:[#allocation9 + $0x100] sm:$0xff]   ;;  %v781_v3 = vld [vmem:[#allocation2 + $0xc] sm:$0x1]  ;;  %v6035_v36 = vld [vmem:[#allocation9 + $0x238] sm:$0xff]  }
  0xab   : > { %v644_v59 = vor.u32 %v643_v48, %v640_v47  ;;  %v414_v62 = vor.u32 %v412_v42, %v411_v53  ;;  %v797_v6 = vshrl.u32 %v780_v63, 16  ;;  %v5425_v8 = vld [vmem:[#allocation3 + $0x98] ss:$36 sps:$4 sm:$0xff]   ;;  %v783_v13 = vld [vmem:[#allocation2 + $0x14] sm:$0x1]  ;;  %v800_v15 = vshll.u32 %v780_v63, 16 }
  0xac   : > { %514 = vst [vmem:[#allocation2 + $0x38] sm:$0xf] %v4583_v57  ;;  %515 = vst [vmem:[#allocation2 + $0x3c] sm:$0x1] %v4584_v58  ;;  %v743_v1 = vsel %vm5936_vm5, %v4593_v54, %v742_v60  ;;  %v5423_v7 = vld [vmem:[#allocation3 + $0x9c] ss:$36 sps:$4 sm:$0xff]   ;;  %4985 = vmatpush3.bf16.msra.mxu0 %v5436_v49 }
  0xad   : > { %v645_v0 = vrot.slane %v644_v59, 4  ;;  %v433_v10 = vsel %vm5954_vm10, 0, %v414_v62  ;;  %762 = vst [vmem:[#allocation3 + $0xe0] sm:$0xf] %v743_v1  ;;  %v799_v14 = vrot.slane %v797_v6, 4  ;;  %v5448_v16 = vld [vmem:[#allocation9 + $0x180] sm:$0xff]   ;;  %2165 = vmatprep.mubr.bf16.mxu1 %v5423_v7  ;;  %4986 = vmatprep.subr.bf16.mxu0 %v5441_v55 }
  0xae   : > { %v444_v12 = vsel %vm5961_vm11, %v433_v10, 0  ;;  %v806_v19 = vshll.u32 %v781_v3, 16  ;;  %v811_v20 = vshrl.u32 %v782_v5, 16  ;;  %v924_v21 = vld [vmem:[#allocation2 + $0x8] sm:$0xe]  ;;  %2166 = vmatmul.mubr.bf16.gmra.mxu1 %v5425_v8  ;;  %v802_v25 = vrot.slane %v800_v15, 5 }
  0xaf   : > { %v650_v11 = vsel %vm5944_vm8, %v645_v0, %v649_v52  ;;  %v4585_v17 = vcombine.low %v444_v12, %v444_v12  ;;  %v4586_v18 = vcombine.high %v444_v12, %v444_v12  ;;  %v925_v22 = vld [vmem:[#allocation2 + $0xc] sm:$0x1]  ;;  %v5417_v23 = vld [vmem:[#allocation3 + $0x94] ss:$36 sps:$4 sm:$0xff]   ;;  %v814_v28 = vshll.u32 %v782_v5, 16  ;;  %5027 = vmatpush3.bf16.msra.mxu1 %v5448_v16 }
  0xb0   : > { %679 = vst [vmem:[#allocation3 + $0xdc] sm:$0xf] %v650_v11  ;;  %v5421_v24 = vld [vmem:[#allocation3 + $0x90] ss:$36 sps:$4 sm:$0xff]   ;;  %v808_v26 = vrot.slane %v806_v19, 5  ;;  %v813_v27 = vrot.slane %v811_v20, 4  ;;  %2100 = vmatprep.mubr.bf16.mxu0 %v5417_v23  ;;  %4987 = vmatpush3.bf16.msra.mxu0 %v5443_v2  ;;  %v803_v31 = vor.u32 %v802_v25, %v799_v14 }
  0xb1   : > { %516 = vst [vmem:[#allocation2 + $0x40] sm:$0xf] %v4585_v17  ;;  %517 = vst [vmem:[#allocation2 + $0x44] sm:$0x1] %v4586_v18  ;;  %v820_v29 = vshll.u32 %v783_v13, 16  ;;  %v4595_v33 = vrot.slane %v924_v21, 9  ;;  %2101 = vmatmul.mubr.bf16.gmra.mxu0 %v5421_v24  ;;  %5236 = vmatprep.subr.bf16.mxu0 %v6035_v36 }
  0xb2   : > { %v926_v30 = vld [vmem:[#allocation2 + $0x10] sm:$0xe]  ;;  %v927_v32 = vld [vmem:[#allocation2 + $0x14] sm:$0x1]  ;;  %v958_v34 = vrot.slane %v925_v22, 5  ;;  %v804_v44 = vrot.slane %v803_v31, 4 }
  0xb3   : > { %v4596_v35 = vrot.slane %v926_v30, 9  ;;  %v525_v37 = vld [vmem:[#allocation2 + $0x38] sm:$0xf]  ;;  %v549_v39 = vld [vmem:[#allocation2 + $0x3c] sm:$0x1]  ;;  %v816_v49 = vrot.slane %v814_v28, 5 }
  0xb4   : > { %v548_v38 = vld [vmem:[#allocation2 + $0x38] sm:$0xf]  ;;  %533 = vst [vmem:[#allocation3 + $0xfc] sm:$0xf] %v525_v37  ;;  %v661_v42 = vshll.u32 %v549_v39, 16  ;;  %v959_v50 = vsel %vm5936_vm5, %v4595_v33, %v958_v34  ;;  %v809_v55 = vsel %vm5944_vm8, %v804_v44, %v808_v26  ;;  %v822_v58 = vrot.slane %v820_v29, 5 }
  0xb5   : > { %v652_v40 = vshrl.u32 %v548_v38, 16  ;;  %v655_v41 = vshll.u32 %v548_v38, 16  ;;  %v695_v43 = vld [vmem:[#allocation2 + $0x38] sm:$0xe]  ;;  %v696_v45 = vld [vmem:[#allocation2 + $0x3c] sm:$0x1]  ;;  %v817_v57 = vor.u32 %v816_v49, %v813_v27 }
  0xb6   : > { %v4594_v47 = vrot.slane %v695_v43, 9  ;;  %v770_v48 = vld [vmem:[#allocation2 + $0x38] sm:$0xf]  ;;  %v663_v53 = vrot.slane %v661_v42, 5  ;;  %v746_v54 = vrot.slane %v696_v45, 5  ;;  %v962_v59 = vrot.slane %v927_v32, 5 }
  0xb7   : > { %v654_v51 = vrot.slane %v652_v40, 4  ;;  %v657_v52 = vrot.slane %v655_v41, 5  ;;  %778 = vst [vmem:[#allocation3 + $0xe4] sm:$0xf] %v770_v48  ;;  %996 = vst [vmem:[#allocation3 + $0x14] sm:$0xf] %v959_v50 }
  0xb8   : > { %v747_v61 = vsel %vm5936_vm5, %v4594_v47, %v746_v54  ;;  %v771_v62 = vld [vmem:[#allocation2 + $0x40] sm:$0xf]  ;;  %916 = vst [vmem:[#allocation3 + $0x10] sm:$0xf] %v809_v55  ;;  %v818_v63 = vrot.slane %v817_v57, 4  ;;  %v963_v0 = vsel %vm5936_vm5, %v4596_v35, %v962_v59 }
  0xb9   : > { %v658_v60 = vor.u32 %v657_v52, %v654_v51  ;;  %763 = vst [vmem:[#allocation3 + $0x104] sm:$0xf] %v747_v61  ;;  %779 = vst [vmem:[#allocation3 + $0x108] sm:$0xf] %v771_v62  ;;  %v1005_v1 = vld [vmem:[#allocation2 + $0x10] sm:$0xf] }
  0xba   : > { %v1006_v2 = vld [vmem:[#allocation2 + $0x18] sm:$0xf]  ;;  %997 = vst [vmem:[#allocation3 + $0x38] sm:$0xf] %v963_v0  ;;  %1013 = vst [vmem:[#allocation3 + $0x18] sm:$0xf] %v1005_v1  ;;  %v823_v7 = vsel %vm5944_vm8, %v818_v63, %v822_v58 }
  0xbb   : > { %v659_v3 = vrot.slane %v658_v60, 4  ;;  %1014 = vst [vmem:[#allocation3 + $0x3c] sm:$0xf] %v1006_v2  ;;  %v1021_v5 = vld [vmem:[#allocation2 + $0x10] sm:$0xf] }
  0xbc   : > { %v1022_v6 = vld [vmem:[#allocation2 + $0x14] sm:$0x1]  ;;  %v1023_v8 = vld [vmem:[#allocation2 + $0x18] sm:$0xf]  ;;  %v1024_v10 = vld [vmem:[#allocation2 + $0x1c] sm:$0x1] }
  0xbd   : > { %v1038_v11 = vshrl.u32 %v1021_v5, 16  ;;  %v1041_v12 = vshll.u32 %v1021_v5, 16  ;;  %v664_v13 = vsel %vm5944_vm8, %v659_v3, %v663_v53  ;;  %917 = vst [vmem:[#allocation3 + $0x34] sm:$0xf] %v823_v7  ;;  %v1047_v14 = vshll.u32 %v1022_v6, 16 }
  0xbe   : > { %v1052_v15 = vshrl.u32 %v1023_v8, 16  ;;  %v1055_v16 = vshll.u32 %v1023_v8, 16  ;;  %680 = vst [vmem:[#allocation3 + $0x100] sm:$0xf] %v664_v13  ;;  %v1061_v19 = vshll.u32 %v1024_v10, 16 }
  0xbf   : > { %v1040_v17 = vrot.slane %v1038_v11, 4  ;;  %v1043_v18 = vrot.slane %v1041_v12, 5  ;;  %v1049_v20 = vrot.slane %v1047_v14, 5  ;;  %v784_v23 = vld [vmem:[#allocation2 + $0x18] sm:$0xf] }
  0xc0   : > { %v1054_v21 = vrot.slane %v1052_v15, 4  ;;  %v1057_v22 = vrot.slane %v1055_v16, 5  ;;  %v1063_v25 = vrot.slane %v1061_v19, 5  ;;  %v785_v26 = vld [vmem:[#allocation2 + $0x1c] sm:$0x1]  ;;  %v825_v31 = vshrl.u32 %v784_v23, 16 }
  0xc1   : > { %v1044_v24 = vor.u32 %v1043_v18, %v1040_v17  ;;  %v786_v27 = vld [vmem:[#allocation2 + $0x20] sm:$0xf]  ;;  %v5437_v28 = vld [vmem:[#allocation3 + $0xe4] ss:$36 sps:$4 sm:$0xff]   ;;  %v787_v33 = vld [vmem:[#allocation2 + $0x24] sm:$0x1] }
  0xc2   : > { %v5439_v29 = vld [vmem:[#allocation3 + $0xe0] ss:$36 sps:$4 sm:$0xff]   ;;  %v1058_v30 = vor.u32 %v1057_v22, %v1054_v21  ;;  %v828_v34 = vshll.u32 %v784_v23, 16  ;;  %v834_v35 = vshll.u32 %v785_v26, 16  ;;  %v839_v37 = vshrl.u32 %v786_v27, 16  ;;  %2173 = vmatprep.mubr.bf16.mxu1 %v5437_v28 }
  0xc3   : > { %v1045_v32 = vrot.slane %v1044_v24, 4  ;;  %v827_v39 = vrot.slane %v825_v31, 4  ;;  %v842_v40 = vshll.u32 %v786_v27, 16  ;;  %v848_v41 = vshll.u32 %v787_v33, 16  ;;  %2174 = vmatmul.mubr.bf16.gmra.mxu1 %v5439_v29  ;;  %v5447_v42 = vld [vmem:[#allocation3 + $0x14] ss:$36 sps:$4 sm:$0xff]  }
  0xc4   : > { %v1059_v38 = vrot.slane %v1058_v30, 4  ;;  %v830_v44 = vrot.slane %v828_v34, 5  ;;  %v928_v45 = vld [vmem:[#allocation2 + $0x18] sm:$0xe]  ;;  %v5435_v48 = vld [vmem:[#allocation3 + $0xd8] ss:$36 sps:$4 sm:$0xff]  }
  0xc5   : > { %v1050_v43 = vsel %vm5944_vm8, %v1045_v32, %v1049_v20  ;;  %v5431_v47 = vld [vmem:[#allocation3 + $0xdc] ss:$36 sps:$4 sm:$0xff]   ;;  %v836_v50 = vrot.slane %v834_v35, 5  ;;  %v841_v52 = vrot.slane %v839_v37, 4  ;;  %v844_v53 = vrot.slane %v842_v40, 5 }
  0xc6   : > { %v1064_v49 = vsel %vm5944_vm8, %v1059_v38, %v1063_v25  ;;  %1157 = vst [vmem:[#allocation3 + $0x1c] sm:$0xf] %v1050_v43  ;;  %v831_v51 = vor.u32 %v830_v44, %v827_v39  ;;  %v850_v54 = vrot.slane %v848_v41, 5  ;;  %v929_v55 = vld [vmem:[#allocation2 + $0x1c] sm:$0x1]  ;;  %2108 = vmatprep.mubr.bf16.mxu0 %v5431_v47  ;;  %v4597_v59 = vrot.slane %v928_v45, 9 }
  0xc7   : > { %1158 = vst [vmem:[#allocation3 + $0x40] sm:$0xf] %v1064_v49  ;;  %v930_v57 = vld [vmem:[#allocation2 + $0x20] sm:$0xe]  ;;  %v931_v58 = vld [vmem:[#allocation2 + $0x24] sm:$0x1]  ;;  %2109 = vmatmul.mubr.bf16.gmra.mxu0 %v5435_v48  ;;  %v845_v62 = vor.u32 %v844_v53, %v841_v52 }
  0xc8   : > { %v966_v60 = vrot.slane %v929_v55, 5  ;;  %v832_v61 = vrot.slane %v831_v51, 4  ;;  %v4598_v63 = vrot.slane %v930_v57, 9  ;;  %v970_v0 = vrot.slane %v931_v58, 5  ;;  %2214 = vmatprep.mubr.bf16.mxu0 %v5447_v42  ;;  %v1007_v2 = vld [vmem:[#allocation2 + $0x20] sm:$0xf] }
  0xc9   : > { %v1008_v3 = vld [vmem:[#allocation2 + $0x28] sm:$0xf]  ;;  %v5445_v5 = vld [vmem:[#allocation3 + $0x10] ss:$36 sps:$4 sm:$0xff]   ;;  %v846_v7 = vrot.slane %v845_v62, 4  ;;  %v5453_v23 = vld [vmem:[#allocation9 + $0x230] sm:$0xff]  }
  0xca   : > { %v967_v1 = vsel %vm5936_vm5, %v4597_v59, %v966_v60  ;;  %v837_v6 = vsel %vm5944_vm8, %v832_v61, %v836_v50  ;;  %v971_v8 = vsel %vm5936_vm5, %v4598_v63, %v970_v0  ;;  %1015 = vst [vmem:[#allocation3 + $0x60] sm:$0xf] %v1007_v2  ;;  %1016 = vst [vmem:[#allocation3 + $0x84] sm:$0xf] %v1008_v3  ;;  %v1025_v10 = vld [vmem:[#allocation2 + $0x20] sm:$0xf] }
  0xcb   : > { %998 = vst [vmem:[#allocation3 + $0x5c] sm:$0xf] %v967_v1  ;;  %v1026_v11 = vld [vmem:[#allocation2 + $0x24] sm:$0x1]  ;;  %918 = vst [vmem:[#allocation3 + $0x58] sm:$0xf] %v837_v6  ;;  %v851_v16 = vsel %vm5944_vm8, %v846_v7, %v850_v54 }
  0xcc   : > { %999 = vst [vmem:[#allocation3 + $0x80] sm:$0xf] %v971_v8  ;;  %v1027_v12 = vld [vmem:[#allocation2 + $0x28] sm:$0xf]  ;;  %v1028_v13 = vld [vmem:[#allocation2 + $0x2c] sm:$0x1] }
  0xcd   : > { %v1066_v14 = vshrl.u32 %v1025_v10, 16  ;;  %v1069_v15 = vshll.u32 %v1025_v10, 16  ;;  %v1075_v17 = vshll.u32 %v1026_v11, 16  ;;  %v1080_v18 = vshrl.u32 %v1027_v12, 16  ;;  %v5450_v20 = vld [vmem:[#allocation3 + $0x18] ss:$36 sps:$4 sm:$0xff]  }
  0xce   : > { %v1083_v19 = vshll.u32 %v1027_v12, 16  ;;  %v5452_v21 = vld [vmem:[#allocation3 + $0x1c] ss:$36 sps:$4 sm:$0xff]   ;;  %919 = vst [vmem:[#allocation3 + $0x7c] sm:$0xf] %v851_v16  ;;  %v1089_v28 = vshll.u32 %v1028_v13, 16 }
  0xcf   : > { %v1068_v22 = vrot.slane %v1066_v14, 4  ;;  %v1071_v24 = vrot.slane %v1069_v15, 5  ;;  %v1082_v25 = vrot.slane %v1080_v18, 4  ;;  %2279 = vmatprep.mubr.bf16.mxu1 %v5452_v21  ;;  %v1077_v27 = vrot.slane %v1075_v17, 5  ;;  %v788_v29 = vld [vmem:[#allocation2 + $0x28] sm:$0xf]  ;;  %2215 = vmatmul.mubr.bf16.vlgmr.msra.gmra.mxu0 %v5445_v5 }
  0xd0   : > { %v1085_v26 = vrot.slane %v1083_v19, 5  ;;  %v789_v30 = vld [vmem:[#allocation2 + $0x2c] sm:$0x1]  ;;  %2280 = vmatmul.mubr.bf16.vlgmr.msra.gmra.mxu1 %v5450_v20  ;;  %v790_v33 = vld [vmem:[#allocation2 + $0x30] sm:$0xf]  ;;  %v853_v35 = vshrl.u32 %v788_v29, 16  ;;  %5237 = vmatpush3.bf16.msra.mxu0 %v6035_v36 }
  0xd1   : > { %v1072_v31 = vor.u32 %v1071_v24, %v1068_v22  ;;  %v791_v34 = vld [vmem:[#allocation2 + $0x34] sm:$0x1]  ;;  %v856_v37 = vshll.u32 %v788_v29, 16  ;;  %v1091_v38 = vrot.slane %v1089_v28, 5  ;;  %v862_v39 = vshll.u32 %v789_v30, 16  ;;  %5238 = vmatprep.subr.bf16.mxu0 %v5453_v23  ;;  %v5456_v43 = vld [vmem:[#allocation9 + $0x228] sm:$0xff]  }
  0xd2   : > { %v1086_v32 = vor.u32 %v1085_v26, %v1082_v25  ;;  %v867_v40 = vshrl.u32 %v790_v33, 16  ;;  %v870_v41 = vshll.u32 %v790_v33, 16  ;;  %v932_v42 = vld [vmem:[#allocation2 + $0x28] sm:$0xe]  ;;  %v855_v47 = vrot.slane %v853_v35, 4  ;;  %v5461_v1 = vld [vmem:[#allocation9 + $0x220] sm:$0xff]  }
  0xd3   : > { %v1073_v44 = vrot.slane %v1072_v31, 4  ;;  %v858_v48 = vrot.slane %v856_v37, 5  ;;  %v864_v49 = vrot.slane %v862_v39, 5  ;;  %v876_v52 = vshll.u32 %v791_v34, 16  ;;  %v933_v53 = vld [vmem:[#allocation2 + $0x2c] sm:$0x1] }
  0xd4   : > { %v1087_v45 = vrot.slane %v1086_v32, 4  ;;  %v869_v50 = vrot.slane %v867_v40, 4  ;;  %v872_v51 = vrot.slane %v870_v41, 5  ;;  %v5454_v54 = vld [vmem:[#allocation3 + $0x5c] ss:$36 sps:$4 sm:$0xff]   ;;  %v4599_v59 = vrot.slane %v932_v42, 9  ;;  %5239 = vmatpush3.bf16.msra.mxu0 %v5453_v23 }
  0xd5   : > { %v5457_v55 = vld [vmem:[#allocation3 + $0x58] ss:$36 sps:$4 sm:$0xff]   ;;  %v1078_v36 = vsel %vm5944_vm8, %v1073_v44, %v1077_v27  ;;  %v859_v58 = vor.u32 %v858_v48, %v855_v47  ;;  %v878_v61 = vrot.slane %v876_v52, 5  ;;  %v934_v62 = vld [vmem:[#allocation2 + $0x30] sm:$0xe]  ;;  %v974_v0 = vrot.slane %v933_v53, 5  ;;  %2222 = vmatprep.mubr.bf16.mxu0 %v5454_v54  ;;  %5240 = vmatprep.subr.bf16.mxu0 %v5456_v43 }
  0xd6   : > { %v1092_v57 = vsel %vm5944_vm8, %v1087_v45, %v1091_v38  ;;  %1159 = vst [vmem:[#allocation3 + $0x64] sm:$0xf] %v1078_v36  ;;  %v873_v60 = vor.u32 %v872_v51, %v869_v50  ;;  %v935_v63 = vld [vmem:[#allocation2 + $0x34] sm:$0x1]  ;;  %v4600_v3 = vrot.slane %v934_v62, 9  ;;  %v5464_v12 = vld [vmem:[#allocation9 + $0x218] sm:$0xff]  }
  0xd7   : > { %1160 = vst [vmem:[#allocation3 + $0x88] sm:$0xf] %v1092_v57  ;;  %v860_v2 = vrot.slane %v859_v58, 4  ;;  %v978_v5 = vrot.slane %v935_v63, 5  ;;  %v975_v7 = vsel %vm5936_vm5, %v4599_v59, %v974_v0  ;;  %v1009_v8 = vld [vmem:[#allocation2 + $0x30] sm:$0xf]  ;;  %2223 = vmatmul.mubr.bf16.gmra.mxu0 %v5457_v55 }
  0xd8   : > { %v874_v6 = vrot.slane %v873_v60, 4  ;;  %1000 = vst [vmem:[#allocation3 + $0xa4] sm:$0xf] %v975_v7  ;;  %v1010_v13 = vld [vmem:[#allocation2 + $0x38] sm:$0xf]  ;;  %5241 = vmatpush3.bf16.msra.mxu0 %v5456_v43  ;;  %v5469_v31 = vld [vmem:[#allocation9 + $0x210] sm:$0xff]  }
  0xd9   : > { %v865_v10 = vsel %vm5944_vm8, %v860_v2, %v864_v49  ;;  %v979_v11 = vsel %vm5936_vm5, %v4600_v3, %v978_v5  ;;  %1017 = vst [vmem:[#allocation3 + $0xa8] sm:$0xf] %v1009_v8  ;;  %v1029_v14 = vld [vmem:[#allocation2 + $0x30] sm:$0xf]  ;;  %v1030_v15 = vld [vmem:[#allocation2 + $0x34] sm:$0x1]  ;;  %5242 = vmatprep.subr.bf16.mxu0 %v5461_v1 }
  0xda   : > { %v879_v16 = vsel %vm5944_vm8, %v874_v6, %v878_v61  ;;  %920 = vst [vmem:[#allocation3 + $0xa0] sm:$0xf] %v865_v10  ;;  %1001 = vst [vmem:[#allocation3 + $0xc8] sm:$0xf] %v979_v11  ;;  %v1031_v17 = vld [vmem:[#allocation2 + $0x38] sm:$0xf] }
  0xdb   : > { %1018 = vst [vmem:[#allocation3 + $0xcc] sm:$0xf] %v1010_v13  ;;  %v1032_v18 = vld [vmem:[#allocation2 + $0x3c] sm:$0x1]  ;;  %v1094_v19 = vshrl.u32 %v1029_v14, 16  ;;  %v1097_v20 = vshll.u32 %v1029_v14, 16 }
  0xdc   : > { %921 = vst [vmem:[#allocation3 + $0xc4] sm:$0xf] %v879_v16  ;;  %v1103_v21 = vshll.u32 %v1030_v15, 16  ;;  %v1108_v22 = vshrl.u32 %v1031_v17, 16  ;;  %v1111_v23 = vshll.u32 %v1031_v17, 16  ;;  %v1117_v24 = vshll.u32 %v1032_v18, 16  ;;  %5243 = vmatpush3.bf16.msra.mxu0 %v5461_v1 }
  0xdd   : > { %v1096_v25 = vrot.slane %v1094_v19, 4  ;;  %v1099_v26 = vrot.slane %v1097_v20, 5  ;;  %v792_v27 = vld [vmem:[#allocation2 + $0x38] sm:$0xf]  ;;  %v5460_v32 = vld [vmem:[#allocation3 + $0x60] ss:$36 sps:$4 sm:$0xff]   ;;  %5244 = vmatprep.subr.bf16.mxu0 %v5464_v12 }
  0xde   : > { %v5458_v28 = vld [vmem:[#allocation3 + $0x64] ss:$36 sps:$4 sm:$0xff]   ;;  %v1105_v29 = vrot.slane %v1103_v21, 5  ;;  %v1110_v30 = vrot.slane %v1108_v22, 4  ;;  %v1113_v34 = vrot.slane %v1111_v23, 5  ;;  %v1119_v35 = vrot.slane %v1117_v24, 5 }
  0xdf   : > { %v1100_v33 = vor.u32 %v1099_v26, %v1096_v25  ;;  %v793_v37 = vld [vmem:[#allocation2 + $0x3c] sm:$0x1]  ;;  %2287 = vmatprep.mubr.bf16.mxu1 %v5458_v28  ;;  %v794_v38 = vld [vmem:[#allocation2 + $0x40] sm:$0xf]  ;;  %v795_v39 = vld [vmem:[#allocation2 + $0x44] sm:$0x1] }
  0xe0   : > { %v881_v40 = vshrl.u32 %v792_v27, 16  ;;  %v884_v41 = vshll.u32 %v792_v27, 16  ;;  %2288 = vmatmul.mubr.bf16.gmra.mxu1 %v5460_v32  ;;  %v1114_v43 = vor.u32 %v1113_v34, %v1110_v30  ;;  %v890_v44 = vshll.u32 %v793_v37, 16  ;;  %v936_v47 = vld [vmem:[#allocation2 + $0x38] sm:$0xe]  ;;  %5245 = vmatpush3.bf16.msra.mxu0 %v5464_v12  ;;  %v5472_v61 = vld [vmem:[#allocation9 + $0x208] sm:$0xff]  }
  0xe1   : > { %v1101_v42 = vrot.slane %v1100_v33, 4  ;;  %v895_v45 = vshrl.u32 %v794_v38, 16  ;;  %v898_v50 = vshll.u32 %v794_v38, 16  ;;  %v904_v51 = vshll.u32 %v795_v39, 16  ;;  %v5462_v52 = vld [vmem:[#allocation3 + $0xa4] ss:$36 sps:$4 sm:$0xff]   ;;  %5246 = vmatprep.subr.bf16.mxu0 %v5469_v31 }
  0xe2   : > { %v883_v48 = vrot.slane %v881_v40, 4  ;;  %v886_v49 = vrot.slane %v884_v41, 5  ;;  %v1115_v55 = vrot.slane %v1114_v43, 4  ;;  %v892_v57 = vrot.slane %v890_v44, 5  ;;  %v937_v60 = vld [vmem:[#allocation2 + $0x3c] sm:$0x1]  ;;  %2230 = vmatprep.mubr.bf16.mxu0 %v5462_v52 }
  0xe3   : > { %v5465_v53 = vld [vmem:[#allocation3 + $0xa0] ss:$36 sps:$4 sm:$0xff]   ;;  %v1106_v54 = vsel %vm5944_vm8, %v1101_v42, %v1105_v29  ;;  %v897_v58 = vrot.slane %v895_v45, 4  ;;  %v900_v59 = vrot.slane %v898_v50, 5  ;;  %v906_v63 = vrot.slane %v904_v51, 5  ;;  %v5477_v16 = vld [vmem:[#allocation9 + $0x200] sm:$0xff]  }
  0xe4   : > { %1161 = vst [vmem:[#allocation3 + $0xac] sm:$0xf] %v1106_v54  ;;  %v887_v36 = vor.u32 %v886_v49, %v883_v48  ;;  %v1120_v62 = vsel %vm5944_vm8, %v1115_v55, %v1119_v35  ;;  %v938_v0 = vld [vmem:[#allocation2 + $0x40] sm:$0xe]  ;;  %v939_v1 = vld [vmem:[#allocation2 + $0x44] sm:$0x1]  ;;  %2231 = vmatmul.mubr.bf16.gmra.mxu0 %v5465_v53 }
  0xe5   : > { %v4601_v2 = vrot.slane %v936_v47, 9  ;;  %1162 = vst [vmem:[#allocation3 + $0xd0] sm:$0xf] %v1120_v62  ;;  %v901_v5 = vor.u32 %v900_v59, %v897_v58  ;;  %v982_v6 = vrot.slane %v937_v60, 5  ;;  %v4602_v7 = vrot.slane %v938_v0, 9  ;;  %5247 = vmatpush3.bf16.msra.mxu0 %v5469_v31 }
  0xe6   : > { %v888_v3 = vrot.slane %v887_v36, 4  ;;  %v986_v8 = vrot.slane %v939_v1, 5  ;;  %v1011_v10 = vld [vmem:[#allocation2 + $0x40] sm:$0xf]  ;;  %5248 = vmatprep.subr.bf16.mxu0 %v5472_v61  ;;  %v1012_v14 = vld [vmem:[#allocation2 + $0x48] sm:$0xf] }
  0xe7   : > { %v902_v12 = vrot.slane %v901_v5, 4  ;;  %v983_v13 = vsel %vm5936_vm5, %v4601_v2, %v982_v6  ;;  %1019 = vst [vmem:[#allocation3 + $0xf0] sm:$0xf] %v1011_v10  ;;  %v1033_v15 = vld [vmem:[#allocation2 + $0x40] sm:$0xf] }
  0xe8   : > { %v893_v11 = vsel %vm5944_vm8, %v888_v3, %v892_v57  ;;  %v987_v17 = vsel %vm5936_vm5, %v4602_v7, %v986_v8  ;;  %1002 = vst [vmem:[#allocation3 + $0xec] sm:$0xf] %v983_v13  ;;  %1020 = vst [vmem:[#allocation3 + $0x114] sm:$0xf] %v1012_v14  ;;  %v1034_v18 = vld [vmem:[#allocation2 + $0x44] sm:$0x1] }
  0xe9   : > { %922 = vst [vmem:[#allocation3 + $0xe8] sm:$0xf] %v893_v11  ;;  %v1035_v19 = vld [vmem:[#allocation2 + $0x48] sm:$0xf]  ;;  %v1036_v20 = vld [vmem:[#allocation2 + $0x4c] sm:$0x1]  ;;  %v907_v21 = vsel %vm5944_vm8, %v902_v12, %v906_v63  ;;  %5249 = vmatpush3.bf16.msra.mxu0 %v5472_v61 }
  0xea   : > { %1003 = vst [vmem:[#allocation3 + $0x110] sm:$0xf] %v987_v17  ;;  %v1122_v22 = vshrl.u32 %v1033_v15, 16  ;;  %v1125_v23 = vshll.u32 %v1033_v15, 16  ;;  %v1131_v24 = vshll.u32 %v1034_v18, 16  ;;  %v1136_v25 = vshrl.u32 %v1035_v19, 16  ;;  %5250 = vmatprep.subr.bf16.mxu0 %v5477_v16 }
  0xeb   : > { %923 = vst [vmem:[#allocation3 + $0x10c] sm:$0xf] %v907_v21  ;;  %v1139_v26 = vshll.u32 %v1035_v19, 16  ;;  %v1145_v29 = vshll.u32 %v1036_v20, 16  ;;  %v1165_v30 = vld [vmem:[#allocation2 + $0x10] sm:$0xe] }
  0xec   : > { %v1124_v27 = vrot.slane %v1122_v22, 4  ;;  %v1127_v28 = vrot.slane %v1125_v23, 5  ;;  %v5466_v31 = vld [vmem:[#allocation3 + $0xac] ss:$36 sps:$4 sm:$0xff]   ;;  %v1138_v33 = vrot.slane %v1136_v25, 4  ;;  %v1133_v35 = vrot.slane %v1131_v24, 5 }
  0xed   : > { %v5468_v32 = vld [vmem:[#allocation3 + $0xa8] ss:$36 sps:$4 sm:$0xff]   ;;  %v1141_v37 = vrot.slane %v1139_v26, 5  ;;  %v1166_v38 = vld [vmem:[#allocation2 + $0x14] sm:$0x1]  ;;  %2295 = vmatprep.mubr.bf16.mxu1 %v5466_v31  ;;  %5251 = vmatpush3.bf16.msra.mxu0 %v5477_v16  ;;  %v4603_v41 = vrot.slane %v1165_v30, 9 }
  0xee   : > { %v1128_v34 = vor.u32 %v1127_v28, %v1124_v27  ;;  %v1167_v39 = vld [vmem:[#allocation2 + $0x18] sm:$0xe]  ;;  %v1168_v40 = vld [vmem:[#allocation2 + $0x1c] sm:$0x1]  ;;  %v1199_v42 = vrot.slane %v1166_v38, 5  ;;  %2296 = vmatmul.mubr.bf16.gmra.mxu1 %v5468_v32  ;;  %v1147_v47 = vrot.slane %v1145_v29, 5 }
  0xef   : > { %v4604_v43 = vrot.slane %v1167_v39, 9  ;;  %v1142_v45 = vor.u32 %v1141_v37, %v1138_v33  ;;  %v1203_v48 = vrot.slane %v1168_v40, 5  ;;  %v1169_v49 = vld [vmem:[#allocation2 + $0x20] sm:$0xe]  ;;  %v1170_v51 = vld [vmem:[#allocation2 + $0x24] sm:$0x1] }
  0xf0   : > { %v1129_v44 = vrot.slane %v1128_v34, 4  ;;  %v1200_v50 = vsel %vm5936_vm5, %v4603_v41, %v1199_v42  ;;  %v1171_v52 = vld [vmem:[#allocation2 + $0x28] sm:$0xe]  ;;  %v1172_v53 = vld [vmem:[#allocation2 + $0x2c] sm:$0x1]  ;;  %v4605_v59 = vrot.slane %v1169_v49, 9 }
  0xf1   : > { %v5470_v54 = vld [vmem:[#allocation3 + $0xec] ss:$36 sps:$4 sm:$0xff]   ;;  %v1143_v57 = vrot.slane %v1142_v45, 4  ;;  %v1204_v58 = vsel %vm5936_vm5, %v4604_v43, %v1203_v48  ;;  %1237 = vst [vmem:[#allocation3 + $0x20] sm:$0xf] %v1200_v50  ;;  %v1207_v60 = vrot.slane %v1170_v51, 5 }
  0xf2   : > { %v5473_v55 = vld [vmem:[#allocation3 + $0xe8] ss:$36 sps:$4 sm:$0xff]   ;;  %v1134_v36 = vsel %vm5944_vm8, %v1129_v44, %v1133_v35  ;;  %1238 = vst [vmem:[#allocation3 + $0x44] sm:$0xf] %v1204_v58  ;;  %v4606_v61 = vrot.slane %v1171_v52, 9  ;;  %v1211_v62 = vrot.slane %v1172_v53, 5  ;;  %2238 = vmatprep.mubr.bf16.mxu0 %v5470_v54 }
  0xf3   : > { %1163 = vst [vmem:[#allocation3 + $0xf4] sm:$0xf] %v1134_v36  ;;  %v1173_v63 = vld [vmem:[#allocation2 + $0x30] sm:$0xe]  ;;  %v1148_v0 = vsel %vm5944_vm8, %v1143_v57, %v1147_v47  ;;  %v1174_v1 = vld [vmem:[#allocation2 + $0x34] sm:$0x1]  ;;  %2239 = vmatmul.mubr.bf16.gmra.mxu0 %v5473_v55  ;;  %v1208_v5 = vsel %vm5936_vm5, %v4605_v59, %v1207_v60 }
  0xf4   : > { %v1175_v2 = vld [vmem:[#allocation2 + $0x38] sm:$0xe]  ;;  %v1176_v3 = vld [vmem:[#allocation2 + $0x3c] sm:$0x1]  ;;  %1164 = vst [vmem:[#allocation3 + $0x118] sm:$0xf] %v1148_v0  ;;  %v1212_v6 = vsel %vm5936_vm5, %v4606_v61, %v1211_v62 }
  0xf5   : > { %v4607_v7 = vrot.slane %v1173_v63, 9  ;;  %v1215_v8 = vrot.slane %v1174_v1, 5  ;;  %v1177_v10 = vld [vmem:[#allocation2 + $0x40] sm:$0xe]  ;;  %v1178_v11 = vld [vmem:[#allocation2 + $0x44] sm:$0x1] }
  0xf6   : > { %1239 = vst [vmem:[#allocation3 + $0x68] sm:$0xf] %v1208_v5  ;;  %1240 = vst [vmem:[#allocation3 + $0x8c] sm:$0xf] %v1212_v6  ;;  %v4608_v12 = vrot.slane %v1175_v2, 9  ;;  %v1219_v13 = vrot.slane %v1176_v3, 5 }
  0xf7   : > { %v1179_v14 = vld [vmem:[#allocation2 + $0x48] sm:$0xe]  ;;  %v1180_v15 = vld [vmem:[#allocation2 + $0x4c] sm:$0x1]  ;;  %v1216_v16 = vsel %vm5936_vm5, %v4607_v7, %v1215_v8  ;;  %v4609_v17 = vrot.slane %v1177_v10, 9  ;;  %v1223_v18 = vrot.slane %v1178_v11, 5 }
  0xf8   : > { %v4610_v19 = vrot.slane %v1179_v14, 9  ;;  %v1220_v20 = vsel %vm5936_vm5, %v4608_v12, %v1219_v13  ;;  %1241 = vst [vmem:[#allocation3 + $0xb0] sm:$0xf] %v1216_v16  ;;  %v1227_v21 = vrot.slane %v1180_v15, 5  ;;  %v5476_v26 = vld [vmem:[#allocation3 + $0xf0] ss:$36 sps:$4 sm:$0xff]  }
  0xf9   : > { %1242 = vst [vmem:[#allocation3 + $0xd4] sm:$0xf] %v1220_v20  ;;  %v1224_v22 = vsel %vm5936_vm5, %v4609_v17, %v1223_v18  ;;  %v5478_v23 = vld [vmem:[#allocation3 + $0x20] ss:$36 sps:$4 sm:$0xff]   ;;  %v5482_v30 = vld [vmem:[#allocation11 + $0xf8] sm:$0xff]   ;;  %v5489_v42 = vld [vmem:[#allocation11 + $0xe8] sm:$0xff]  }
  0xfa   : > { %v1228_v24 = vsel %vm5936_vm5, %v4610_v19, %v1227_v21  ;;  %1243 = vst [vmem:[#allocation3 + $0xf8] sm:$0xf] %v1224_v22  ;;  %5252 = vmatprep.mubr.bf16.mxu0 %v5478_v23  ;;  %v5483_v31 = vld [vmem:[#allocation11 + $0xb8] sm:$0xff]   ;;  %5104 = vmatprep.subr.bf16.mxu0 %v5482_v30  ;;  %v5485_v35 = vld [vmem:[#allocation11 + $0xf0] sm:$0xff]   ;;  %v5491_v44 = vld [vmem:[#allocation11 + $0xa8] sm:$0xff]  }
  0xfb   : > { %1244 = vst [vmem:[#allocation3 + $0x11c] sm:$0xf] %v1228_v24  ;;  %v5474_v25 = vld [vmem:[#allocation3 + $0xf4] ss:$36 sps:$4 sm:$0xff]   ;;  %v5484_v37 = vld [vmem:[#allocation11 + $0x78] sm:$0xff]   ;;  %v5487_v38 = vld [vmem:[#allocation11 + $0xb0] sm:$0xff]  }
  0xfc   : > { %2303 = vmatprep.mubr.bf16.mxu1 %v5474_v25  ;;  %v5486_v39 = vld [vmem:[#allocation11 + $0x38] sm:$0xff]   ;;  %5064 = vmatprep.subr.bf16.mxu1 %v5484_v37  ;;  %v5488_v43 = vld [vmem:[#allocation11 + $0x70] sm:$0xff]   ;;  %v5493_v49 = vld [vmem:[#allocation11 + $0xe0] sm:$0xff]  }
  0xfd   : > { %v5479_v27 = vld [vmem:[#allocation3 + $0x68] ss:$36 sps:$4 sm:$0xff]   ;;  %2304 = vmatmul.mubr.bf16.gmra.mxu1 %v5476_v26  ;;  %v5490_v45 = vld [vmem:[#allocation11 + $0x30] sm:$0xff]   ;;  %v5492_v50 = vld [vmem:[#allocation11 + $0x68] sm:$0xff]  }
  0xfe   : > { %5253 = vmatmul.mubr.bf16.vlgmr.msra.gmra.mxu0 %v5479_v27  ;;  %5065 = vmatpush3.bf16.msra.mxu1 %v5486_v39  ;;  %v5495_v51 = vld [vmem:[#allocation11 + $0xa0] sm:$0xff]   ;;  %v5494_v52 = vld [vmem:[#allocation11 + $0x28] sm:$0xff]   ;;  %v5497_v55 = vld [vmem:[#allocation11 + $0xd8] sm:$0xff]  }
  0xff   : > { %5105 = vmatpush3.bf16.msra.mxu0 %v5483_v31  ;;  %5066 = vmatprep.subr.bf16.mxu1 %v5488_v43  ;;  %v2727_v36 = vld [vmem:[#allocation4] sm:$0xe]  ;;  %v2728_v57 = vld [vmem:[#allocation4 + $0x4] sm:$0x1]  ;;  %v5496_v58 = vld [vmem:[#allocation11 + $0x60] sm:$0xff]  }
 0x100   : > { %v5480_v28 = vld [vmem:[#allocation3 + $0xb0] ss:$36 sps:$4 sm:$0xff]   ;;  %5106 = vmatprep.subr.bf16.mxu0 %v5485_v35  ;;  %v5499_v59 = vld [vmem:[#allocation11 + $0x98] sm:$0xff]   ;;  %v4744_v60 = vrot.slane %v2727_v36, 9  ;;  %v2761_v61 = vrot.slane %v2728_v57, 5  ;;  %v5501_v3 = vld [vmem:[#allocation11 + $0xd0] sm:$0xff]  }
 0x101   : > { %5256 = vmatprep.mubr.bf16.mxu0 %v5480_v28  ;;  %v5498_v62 = vld [vmem:[#allocation11 + $0x20] sm:$0xff]   ;;  %v2583_v2 = vld [vmem:[#allocation4] sm:$0xf]  ;;  %v5500_v7 = vld [vmem:[#allocation11 + $0x58] sm:$0xff]  }
 0x102   : > { %v5481_v29 = vld [vmem:[#allocation3 + $0xf8] ss:$36 sps:$4 sm:$0xff]   ;;  %5067 = vmatpush3.bf16.msra.mxu1 %v5490_v45  ;;  %v2762_v1 = vsel %vm5936_vm5, %v4744_v60, %v2761_v61  ;;  %v2600_v5 = vshrl.u32 %v2583_v2, 16  ;;  %v2603_v6 = vshll.u32 %v2583_v2, 16  ;;  %v5503_v8 = vld [vmem:[#allocation11 + $0x90] sm:$0xff]   ;;  %v5502_v10 = vld [vmem:[#allocation11 + $0x18] sm:$0xff]  }
 0x103   : > { %5107 = vmatpush3.bf16.msra.mxu0 %v5487_v38  ;;  %5068 = vmatprep.subr.bf16.mxu1 %v5492_v50  ;;  %2799 = vst [vmem:[#allocation5 + $0x8] sm:$0xf] %v2762_v1  ;;  %v2584_v15 = vld [vmem:[#allocation4 + $0x4] sm:$0x1]  ;;  %v5505_v16 = vld [vmem:[#allocation11 + $0xc8] sm:$0xff]   ;;  %v5509_v26 = vld [vmem:[#allocation11 + $0xc0] sm:$0xff]  }
 0x104   : > { %5108 = vmatprep.subr.bf16.mxu0 %v5489_v42  ;;  %v2602_v11 = vrot.slane %v2600_v5, 4  ;;  %v2605_v12 = vrot.slane %v2603_v6, 5  ;;  %v2609_v18 = vshll.u32 %v2584_v15, 16  ;;  %v5504_v19 = vld [vmem:[#allocation11 + $0x50] sm:$0xff]   ;;  %v5507_v20 = vld [vmem:[#allocation11 + $0x88] sm:$0xff]   ;;  %v5511_v30 = vld [vmem:[#allocation11 + $0x80] sm:$0xff]  }
 0x105   : > { %v5506_v21 = vld [vmem:[#allocation11 + $0x10] sm:$0xff]   ;;  %v5510_v31 = vld [vmem:[#allocation11 + $0x8] sm:$0xff]   ;;  %v5515_v38 = vld [vmem:[#allocation11 + $0x40] sm:$0xff]  }
 0x106   : > { %5257 = vmatmul.mubr.bf16.gmra.mxu0 %v5481_v29  ;;  %5069 = vmatpush3.bf16.msra.mxu1 %v5494_v52  ;;  %v2606_v17 = vor.u32 %v2605_v12, %v2602_v11  ;;  %v2611_v23 = vrot.slane %v2609_v18, 5  ;;  %v2567_v27 = vld [vmem:[#allocation4] sm:$0xf]  ;;  %v5508_v29 = vld [vmem:[#allocation11 + $0x48] sm:$0xff]   ;;  %v5516_v39 = vld [vmem:[#allocation11 + $0x1f8] sm:$0xff]  }
 0x107   : > { %5109 = vmatpush3.bf16.msra.mxu0 %v5491_v44  ;;  %5070 = vmatprep.subr.bf16.mxu1 %v5496_v58  ;;  %2575 = vst [vmem:[#allocation5] sm:$0xf] %v2567_v27  ;;  %v5517_v42 = vld [vmem:[#allocation11] sm:$0xff]   ;;  %v5524_v45 = vld [vmem:[#allocation11 + $0x178] sm:$0xff]  }
 0x108   : > { %5110 = vmatprep.subr.bf16.mxu0 %v5493_v49  ;;  %v2607_v22 = vrot.slane %v2606_v17, 4  ;;  %v3078_v17 = vld [vmem:[#allocation4 + $0x48] sm:$0xf]  ;;  %v3079_v27 = vld [vmem:[#allocation4 + $0x4c] sm:$0x1] }
 0x10a   : > { %5071 = vmatpush3.bf16.msra.mxu1 %v5498_v62  ;;  %v2612_v28 = vsel %vm5944_vm8, %v2607_v22, %v2611_v23 }
 0x10b   : > { %5111 = vmatpush3.bf16.msra.mxu0 %v5495_v51  ;;  %5072 = vmatprep.subr.bf16.mxu1 %v5500_v7  ;;  %2719 = vst [vmem:[#allocation5 + $0x4] sm:$0xf] %v2612_v28 }
 0x10c   : > { %5112 = vmatprep.subr.bf16.mxu0 %v5497_v55 }
 0x10e   : > { %5073 = vmatpush3.bf16.msra.mxu1 %v5502_v10 }
 0x10f   : > { %5113 = vmatpush3.bf16.msra.mxu0 %v5499_v59  ;;  %5074 = vmatprep.subr.bf16.mxu1 %v5504_v19  ;;  %v3179_v19 = vshrl.u32 %v3078_v17, 16 }
 0x110   : > { %5114 = vmatprep.subr.bf16.mxu0 %v5501_v3 }
 0x111   : > { %v3181_v22 = vrot.slane %v3179_v19, 4 }
 0x112   : > { %5075 = vmatpush3.bf16.msra.mxu1 %v5506_v21 }
 0x113   : > { %5115 = vmatpush3.bf16.msra.mxu0 %v5503_v8  ;;  %5076 = vmatprep.subr.bf16.mxu1 %v5508_v29  ;;  %v3188_v29 = vshll.u32 %v3079_v27, 16 }
 0x114   : > { %5116 = vmatprep.subr.bf16.mxu0 %v5505_v16 }
 0x116   : > { %5077 = vmatpush3.bf16.msra.mxu1 %v5510_v31 }
 0x117   : > { %5117 = vmatpush3.bf16.msra.mxu0 %v5507_v20  ;;  %5078 = vmatprep.subr.bf16.mxu1 %v5515_v38  ;;  %v3182_v20 = vshll.u32 %v3078_v17, 16  ;;  %v3190_v38 = vrot.slane %v3188_v29, 5 }
 0x118   : > { %5118 = vmatprep.subr.bf16.mxu0 %v5509_v26 }
 0x119   : > { %v3184_v23 = vrot.slane %v3182_v20, 5 }
 0x11a   : > { %5079 = vmatpush3.bf16.msra.mxu1 %v5517_v42 }
 0x11b   : > { %5119 = vmatpush3.bf16.msra.mxu0 %v5511_v30  ;;  %5144 = vmatprep.subr.bf16.mxu1 %v5524_v45  ;;  %v3185_v28 = vor.u32 %v3184_v23, %v3181_v22  ;;  %v3055_v45 = vld [vmem:[#allocation4 + $0x48] sm:$0xf] }
 0x11c   : > { %5184 = vmatprep.subr.bf16.mxu0 %v5516_v39  ;;  %3063 = vst [vmem:[#allocation5 + $0x114] sm:$0xf] %v3055_v45  ;;  %v3223_v45 = vld [vmem:[#allocation4 + $0x4c] sm:$0x1] }
 0x11d   : > { %v3186_v31 = vrot.slane %v3185_v28, 4 }
 0x11f   : > { %v3191_v9 = vsel %vm5944_vm8, %v3186_v31, %v3190_v38  ;;  %v3222_v38 = vld [vmem:[#allocation4 + $0x48] sm:$0xe] }
 0x120   : > { %3207 = vst [vmem:[#allocation5 + $0x118] sm:$0xf] %v3191_v9  ;;  %v4611_v9 = vld [vmem:[%s6674_s2] ss:$0 sm:$0xff] }
 0x14d   : > { %v6107_v32 = vpop.f32.mrf.mxu1 }
 0x14f   : > { %v6111_v34 = vpop.f32.mrf.mxu1 }
 0x150   : > { %v4950_v29 = vadd.f32 %v6111_v34, %v6107_v32  ;;  %v4767_v32 = vrot.slane %v3222_v38, 9  ;;  %v3270_v34 = vrot.slane %v3223_v45, 5 }
 0x151   : > { %v6115_v41 = vpop.f32.mrf.mxu1 }
 0x153   : > { %v6109_v33 = vpop.f32.mrf.mxu0  ;;  %v6119_v48 = vpop.f32.mrf.mxu1 }
 0x155   : > { %v6113_v40 = vpop.f32.mrf.mxu0 }
 0x156   : > { %v4910_v22 = vadd.f32 %v6113_v40, %v6109_v33 }
 0x157   : > { %v6117_v47 = vpop.f32.mrf.mxu0 }
 0x159   : > { %v6121_v53 = vpop.f32.mrf.mxu0 }
 0x15a   : > { %v4913_v33 = vadd.f32 %v6121_v53, %v6117_v47 }
 0x15c   : > { %v6123_v54 = vpop.f32.mrf.mxu1 }
 0x15e   : > { %v6127_v0 = vpop.f32.mrf.mxu1 }
 0x160   : > { %v6133_v14 = vpop.f32.mrf.mxu1 }
 0x162   : > { %v6125_v63 = vpop.f32.mrf.mxu0  ;;  %v6137_v25 = vpop.f32.mrf.mxu1 }
 0x164   : > { %v6131_v13 = vpop.f32.mrf.mxu0 }
 0x165   : > { %v4916_v19 = vadd.f32 %v6131_v13, %v6125_v63  ;;  %v4956_v63 = vadd.f32 %v6127_v0, %v6123_v54  ;;  %v2087_v13 = vadd.f32 %v4910_v22, %v4611_v9  ;;  %v4953_v0 = vadd.f32 %v6119_v48, %v6115_v41 }
 0x166   : > { %v6135_v24 = vpop.f32.mrf.mxu0  ;;  %v2090_v22 = vadd.f32 %v4913_v33, %v4611_v9 }
 0x167   : > { %v2095_v31 = vadd.f32 %v4916_v19, %v4611_v9 }
 0x168   : > { %v6141_v35 = vpop.f32.mrf.mxu0 }
 0x169   : > { %v4919_v23 = vadd.f32 %v6141_v35, %v6135_v24  ;;  %v4959_v24 = vadd.f32 %v6137_v25, %v6133_v14  ;;  %v2160_v47 = vadd.f32 %v4956_v63, %v2095_v31  ;;  %v3271_v14 = vsel %vm5936_vm5, %v4767_v32, %v3270_v34 }
 0x16a   : > { %v2152_v25 = vadd.f32 %v4950_v29, %v2087_v13  ;;  %3287 = vst [vmem:[#allocation5 + $0x11c] sm:$0xf] %v3271_v14 }
 0x16b   : > { %v2098_v40 = vadd.f32 %v4919_v23, %v4611_v9 }
 0x16d   : > { %v2163_v23 = vadd.f32 %v4959_v24, %v2098_v40 }
 0x16e   : > { %v6143_v37 = vpop.f32.mrf.mxu1 }
 0x170   : > { %v6147_v44 = vpop.f32.mrf.mxu1 }
 0x171   : > { %v6145_v43 = vpop.f32.mrf.mxu0 }
 0x172   : > { %v6151_v50 = vpop.f32.mrf.mxu1 }
 0x173   : > { %v6149_v49 = vpop.f32.mrf.mxu0 }
 0x174   : > { %v6155_v52 = vpop.f32.mrf.mxu1  ;;  %v4922_v56 = vadd.f32 %v6149_v49, %v6145_v43  ;;  %v4962_v49 = vadd.f32 %v6147_v44, %v6143_v37  ;;  %v2155_v44 = vadd.f32 %v4953_v0, %v2090_v22 }
 0x175   : > { %v6153_v51 = vpop.f32.mrf.mxu0 }
 0x176   : > { %v2103_v43 = vadd.f32 %v4922_v56, %v4611_v9 }
 0x177   : > { %v6157_v55 = vpop.f32.mrf.mxu0 }
 0x178   : > { %v4925_v41 = vadd.f32 %v6157_v55, %v6153_v51  ;;  %v2168_v55 = vadd.f32 %v4962_v49, %v2103_v43 }
 0x183   : > { %v6159_v36 = vpop.f32.mrf.mxu1 }
 0x185   : > { %v6161_v57 = vpop.f32.mrf.mxu1 }
 0x187   : > { %v4926_v58 = vpop.f32.mrf.mxu0  ;;  %v6163_v59 = vpop.f32.mrf.mxu1 }
 0x189   : > { %v4927_v60 = vpop.f32.mrf.mxu0  ;;  %v6167_v62 = vpop.f32.mrf.mxu1 }
 0x18a   : > { %v4928_v19 = vadd.f32 %v4927_v60, %v4926_v58  ;;  %v4971_v29 = vadd.f32 %v6167_v62, %v6163_v59 }
 0x18b   : > { %v6165_v61 = vpop.f32.mrf.mxu0 }
 0x18c   : > { %v2111_v48 = vadd.f32 %v4928_v19, %v4611_v9 }
 0x18d   : > { %v6169_v1 = vpop.f32.mrf.mxu0 }
 0x18f   : > { %v4988_v2 = vpop.f32.mrf.mxu0 }
 0x190   : > { %v6171_v3 = vpop.f32.mrf.mxu1 }
 0x191   : > { %v4989_v5 = vpop.f32.mrf.mxu0 }
 0x192   : > { %v6173_v6 = vpop.f32.mrf.mxu1  ;;  %v4990_v53 = vadd.f32 %v4989_v5, %v4988_v2  ;;  %v4968_v2 = vadd.f32 %v6161_v57, %v6159_v36  ;;  %v4931_v5 = vadd.f32 %v6169_v1, %v6165_v61  ;;  %v4965_v36 = vadd.f32 %v6155_v52, %v6151_v50 }
 0x193   : > { %v6175_v7 = vpop.f32.mrf.mxu0  ;;  %v5030_v56 = vadd.f32 %v6173_v6, %v6171_v3  ;;  %v2106_v61 = vadd.f32 %v4925_v41, %v4611_v9 }
 0x194   : > { %v6179_v10 = vpop.f32.mrf.mxu1  ;;  %v2176_v1 = vadd.f32 %v4968_v2, %v2111_v48 }
 0x195   : > { %v6177_v8 = vpop.f32.mrf.mxu0 }
 0x196   : > { %v6181_v15 = vpop.f32.mrf.mxu1  ;;  %v4993_v37 = vadd.f32 %v6177_v8, %v6175_v7 }
 0x197   : > { %v4994_v11 = vpop.f32.mrf.mxu0  ;;  %6710 = vst [vmem:[#allocation19_spill] sm:$0xff] %v6181_v15 }
 0x198   : > { %v2220_v31 = vadd.f32 %v4993_v37, %v2155_v44 }
 0x199   : > { %v4995_v12 = vpop.f32.mrf.mxu0 }
 0x19b   : > { %v4997_v16 = vpop.f32.mrf.mxu0 }
 0x19d   : > { %v4998_v21 = vpop.f32.mrf.mxu0 }
 0x19e   : > { %v6714_v7 = vld [vmem:[#allocation19_spill] sm:$0xff] }
 0x19f   : > { %v5033_v8 = vadd.f32 %v6714_v7, %v6179_v10 }
 0x1a0   : > { %v5034_v18 = vpop.f32.mrf.mxu1 }
 0x1a2   : > { %v5035_v26 = vpop.f32.mrf.mxu1 }
 0x1a3   : > { %v5036_v60 = vadd.f32 %v5035_v26, %v5034_v18 }
 0x1a4   : > { %v5000_v30 = vpop.f32.mrf.mxu0  ;;  %v5037_v39 = vpop.f32.mrf.mxu1 }
 0x1a6   : > { %v5001_v42 = vpop.f32.mrf.mxu0  ;;  %v5038_v4 = vpop.f32.mrf.mxu1 }
 0x1a7   : > { %v5002_v51 = vadd.f32 %v5001_v42, %v5000_v30 }
 0x1a8   : > { %v6185_v17 = vpop.f32.mrf.mxu0 }
 0x1a9   : > { %6711 = vst [vmem:[#allocation20_spill] sm:$0xff] %v6185_v17 }
 0x1aa   : > { %v6195_v27 = vpop.f32.mrf.mxu0 }
 0x1ab   : > { %6713 = vst [vmem:[#allocation22_spill] sm:$0xff] %v6195_v27  ;;  %v4996_v27 = vadd.f32 %v4995_v12, %v4994_v11 }
 0x1ad   : > { %v2225_v58 = vadd.f32 %v4996_v27, %v2160_v47  ;;  %v2114_v27 = vadd.f32 %v4931_v5, %v4611_v9 }
 0x1ae   : > { %v6189_v20 = vpop.f32.mrf.mxu1 }
 0x1af   : > { %6712 = vst [vmem:[#allocation21_spill] sm:$0xff] %v6189_v20  ;;  %v4999_v20 = vadd.f32 %v4998_v21, %v4997_v16  ;;  %v2217_v16 = vadd.f32 %v4990_v53, %v2152_v25  ;;  %v5039_v21 = vadd.f32 %v5038_v4, %v5037_v39  ;;  %v2290_v26 = vadd.f32 %v5036_v60, %v2225_v58 }
 0x1b0   : > { %v5041_v28 = vpop.f32.mrf.mxu1  ;;  %v2233_v39 = vadd.f32 %v5002_v51, %v2168_v55  ;;  %v6716_v50 = vld [vmem:[#allocation20_spill] sm:$0xff]  ;;  %v2285_v53 = vadd.f32 %v5033_v8, %v2220_v31 }
 0x1b1   : > { %v2228_v18 = vadd.f32 %v4999_v20, %v2163_v23  ;;  %v2282_v30 = vadd.f32 %v5030_v56, %v2217_v16 }
 0x1b2   : > { %v5043_v17 = vpop.f32.mrf.mxu1  ;;  %v6717_v52 = vld [vmem:[#allocation22_spill] sm:$0xff] }
 0x1b3   : > { %v5006_v35 = vpop.f32.mrf.mxu0  ;;  %v5005_v63 = vadd.f32 %v6717_v52, %v6716_v50  ;;  %v2293_v9 = vadd.f32 %v5039_v21, %v2228_v18 }
 0x1b4   : > { %v5044_v11 = vpop.f32.mrf.mxu1 }
 0x1b5   : > { %v5007_v54 = vpop.f32.mrf.mxu0 }
 0x1b6   : > { %v5008_v57 = vadd.f32 %v5007_v54, %v5006_v35  ;;  %v6715_v42 = vld [vmem:[#allocation21_spill] sm:$0xff]  ;;  %v2171_v35 = vadd.f32 %v4965_v36, %v2106_v61  ;;  %v2179_v54 = vadd.f32 %v4971_v29, %v2114_v27 }
 0x1b7   : > { %v5009_v15 = vpop.f32.mrf.mxu0  ;;  %v5042_v20 = vadd.f32 %v5041_v28, %v6715_v42  ;;  %v5045_v28 = vadd.f32 %v5044_v11, %v5043_v17 }
 0x1b8   : > { %v2241_v40 = vadd.f32 %v5008_v57, %v2176_v1  ;;  %v2236_v0 = vadd.f32 %v5005_v63, %v2171_v35 }
 0x1b9   : > { %v5010_v12 = vpop.f32.mrf.mxu0  ;;  %v2298_v43 = vadd.f32 %v5042_v20, %v2233_v39 }
 0x1ba   : > { %v5011_v38 = vadd.f32 %v5010_v12, %v5009_v15  ;;  %v2301_v11 = vadd.f32 %v5045_v28, %v2236_v0 }
 0x1bc   : > { %v2244_v49 = vadd.f32 %v5011_v38, %v2179_v54 }
 0x1bd   : > { %v5046_v3 = vpop.f32.mrf.mxu1 }
 0x1be   : > { %v5254_v6 = vpop.f32.mrf.mxu0 }
 0x1bf   : > { %v2355_v4 = vadd.f32 %v5254_v6, %v2290_v26  ;;  %v5047_v13 = vpop.f32.mrf.mxu1 }
 0x1c0   : > { %v2346_v33 = vpop.f32.mrf.mxu0  ;;  %v5048_v24 = vadd.f32 %v5047_v13, %v5046_v3 }
 0x1c1   : > { %v2379_v59 = vmax.f32 %v2355_v4, 0.0  ;;  %v2347_v62 = vadd.f32 %v2346_v33, %v2282_v30  ;;  %v5049_v45 = vpop.f32.mrf.mxu1 }
 0x1c2   : > { %v5255_v32 = vpop.f32.mrf.mxu0  ;;  %v2306_v23 = vadd.f32 %v5048_v24, %v2241_v40 }
 0x1c3   : > { %v4885_v10 = vpack.c.bf16 %v2379_v59, %v2379_v59  ;;  %v2377_v34 = vmax.f32 %v2347_v62, 0.0  ;;  %v2358_v19 = vadd.f32 %v5255_v32, %v2293_v9  ;;  %v5050_v47 = vpop.f32.mrf.mxu1 }
 0x1c4   : > { %v2349_v14 = vpop.f32.mrf.mxu0  ;;  %v5051_v58 = vadd.f32 %v5050_v47, %v5049_v45 }
 0x1c5   : > { %v2429_v25 = vshrl.u32 %v4885_v10, 16  ;;  %v4883_v22 = vpack.c.bf16 %v2377_v34, %v2377_v34  ;;  %v2380_v60 = vmax.f32 %v2358_v19, 0.0  ;;  %v2350_v41 = vadd.f32 %v2349_v14, %v2285_v53 }
 0x1c6   : > { %v5258_v15 = vpop.f32.mrf.mxu0  ;;  %v2432_v2 = vshll.u32 %v4885_v10, 16  ;;  %v2309_v26 = vadd.f32 %v5051_v58, %v2244_v49 }
 0x1c7   : > { %v2431_v48 = vrot.slane %v2429_v25, 7  ;;  %v2415_v5 = vshrl.u32 %v4883_v22, 16  ;;  %v2371_v12 = vadd.f32 %v5258_v15, %v2306_v23  ;;  %v2418_v16 = vshll.u32 %v4883_v22, 16 }
 0x1c8   : > { %v4886_v56 = vpack.c.bf16 %v2380_v60, %v2380_v60  ;;  %v2378_v37 = vmax.f32 %v2350_v41, 0.0  ;;  %v2362_v17 = vpop.f32.mrf.mxu0 }
 0x1c9   : > { %v2434_v44 = vor.u32 %v2432_v2, %v2431_v48  ;;  %v2417_v18 = vrot.slane %v2415_v5, 7  ;;  %v2383_v21 = vmax.f32 %v2371_v12, 0.0  ;;  %v2363_v51 = vadd.f32 %v2362_v17, %v2298_v43 }
 0x1ca   : > { %v2436_v55 = vshrl.u32 %v4886_v56, 16  ;;  %v2439_v36 = vshll.u32 %v4886_v56, 16  ;;  %v4884_v57 = vpack.c.bf16 %v2378_v37, %v2378_v37  ;;  %v5259_v61 = vpop.f32.mrf.mxu0 }
 0x1cb   : > { %v2480_v27 = vsel %vm5954_vm10, 0, %v2434_v44  ;;  %v2420_v29 = vor.u32 %v2418_v16, %v2417_v18  ;;  %v4889_v3 = vpack.c.bf16 %v2383_v21, %v2383_v21  ;;  %v2381_v6 = vmax.f32 %v2363_v51, 0.0 }
 0x1cc   : > { %v2488_v7 = vsel %vm5961_vm11, %v2480_v27, 0  ;;  %v2438_v8 = vrot.slane %v2436_v55, 7  ;;  %v2422_v4 = vshrl.u32 %v4884_v57, 16  ;;  %v2425_v30 = vshll.u32 %v4884_v57, 16  ;;  %v2365_v52 = vpop.f32.mrf.mxu0 }
 0x1cd   : > { %v4732_v39 = vcombine.low %v2488_v7, %v2488_v7  ;;  %v4733_v42 = vcombine.high %v2488_v7, %v2488_v7  ;;  %v2478_v20 = vsel %vm5954_vm10, 0, %v2420_v29  ;;  %v2457_v50 = vshrl.u32 %v4889_v3, 16 }
 0x1ce   : > { %v2486_v63 = vsel %vm5961_vm11, %v2478_v20, 0  ;;  %v2441_v13 = vor.u32 %v2439_v36, %v2438_v8  ;;  %v2424_v33 = vrot.slane %v2422_v4, 7  ;;  %v2460_v9 = vshll.u32 %v4889_v3, 16 }
 0x1cf   : > { %2555 = vst [vmem:[#allocation4 + $0x18] sm:$0xf] %v4732_v39  ;;  %2556 = vst [vmem:[#allocation4 + $0x1c] sm:$0x1] %v4733_v42  ;;  %v4728_v40 = vcombine.low %v2486_v63, %v2486_v63  ;;  %v4729_v24 = vcombine.high %v2486_v63, %v2486_v63  ;;  %v2459_v59 = vrot.slane %v2457_v50, 7  ;;  %v4887_v62 = vpack.c.bf16 %v2381_v6, %v2381_v6 }
 0x1d0   : > { %v2481_v35 = vsel %vm5954_vm10, 0, %v2441_v13  ;;  %v2427_v38 = vor.u32 %v2425_v30, %v2424_v33  ;;  %v2374_v45 = vadd.f32 %v5259_v61, %v2309_v26  ;;  %v2366_v32 = vadd.f32 %v2365_v52, %v2301_v11 }
 0x1d1   : > { %2551 = vst [vmem:[#allocation4 + $0x8] sm:$0xf] %v4728_v40  ;;  %2552 = vst [vmem:[#allocation4 + $0xc] sm:$0x1] %v4729_v24  ;;  %v2489_v10 = vsel %vm5961_vm11, %v2481_v35, 0  ;;  %v2462_v34 = vor.u32 %v2460_v9, %v2459_v59  ;;  %v2443_v19 = vshrl.u32 %v4887_v62, 16 }
 0x1d2   : > { %v4734_v54 = vcombine.low %v2489_v10, %v2489_v10  ;;  %v4735_v0 = vcombine.high %v2489_v10, %v2489_v10  ;;  %v2479_v28 = vsel %vm5954_vm10, 0, %v2427_v38  ;;  %v2384_v47 = vmax.f32 %v2374_v45, 0.0  ;;  %v5544_v24 = vld [vmem:[#allocation11 + $0x1d8] sm:$0xff]  }
 0x1d3   : > { %v2487_v53 = vsel %vm5961_vm11, %v2479_v28, 0  ;;  %v2484_v14 = vsel %vm5954_vm10, 0, %v2462_v34  ;;  %v2445_v25 = vrot.slane %v2443_v19, 7  ;;  %v2382_v22 = vmax.f32 %v2366_v32, 0.0 }
 0x1d4   : > { %2557 = vst [vmem:[#allocation4 + $0x20] sm:$0xf] %v4734_v54  ;;  %2558 = vst [vmem:[#allocation4 + $0x24] sm:$0x1] %v4735_v0  ;;  %v4730_v23 = vcombine.low %v2487_v53, %v2487_v53  ;;  %v4731_v43 = vcombine.high %v2487_v53, %v2487_v53  ;;  %v2492_v49 = vsel %vm5961_vm11, %v2484_v14, 0  ;;  %v2446_v58 = vshll.u32 %v4887_v62, 16 }
 0x1d5   : > { %v4740_v60 = vcombine.low %v2492_v49, %v2492_v49  ;;  %v4741_v41 = vcombine.high %v2492_v49, %v2492_v49  ;;  %v4890_v12 = vpack.c.bf16 %v2384_v47, %v2384_v47  ;;  %v6261_v16 = vpack.c.bf16 %v2382_v22, %v2382_v22 }
 0x1d6   : > { %v6255_v15 = vld [vmem:[#allocation4 + $0x18] sm:$0xf]  ;;  %2553 = vst [vmem:[#allocation4 + $0x10] sm:$0xf] %v4730_v23  ;;  %2554 = vst [vmem:[#allocation4 + $0x14] sm:$0x1] %v4731_v43  ;;  %v2448_v5 = vor.u32 %v2446_v58, %v2445_v25 }
 0x1d7   : > { %v6257_v48 = vld [vmem:[#allocation4 + $0x18] sm:$0xf]  ;;  %2563 = vst [vmem:[#allocation4 + $0x38] sm:$0xf] %v4740_v60  ;;  %2564 = vst [vmem:[#allocation4 + $0x3c] sm:$0x1] %v4741_v41 }
 0x1d8   : > { %v6259_v2 = vld [vmem:[#allocation4 + $0x18] sm:$0xf]  ;;  %v2642_v56 = vshrl.u32 %v6255_v15, 16  ;;  %v2645_v37 = vshll.u32 %v6255_v15, 16  ;;  %v6265_v17 = vld [vmem:[#allocation4 + $0x8] sm:$0xf] }
 0x1d9   : > { %v6267_v11 = vld [vmem:[#allocation4 + $0x8] sm:$0xf]  ;;  %v3095_v21 = vshrl.u32 %v6259_v2, 16  ;;  %v3098_v51 = vshll.u32 %v6259_v2, 16  ;;  %v2614_v55 = vshrl.u32 %v6265_v17, 16  ;;  %v2617_v36 = vshll.u32 %v6265_v17, 16 }
 0x1da   : > { %v2482_v57 = vsel %vm5954_vm10, 0, %v2448_v5  ;;  %v2464_v26 = vshrl.u32 %v4890_v12, 16  ;;  %v2840_v61 = vshrl.u32 %v6267_v11, 16  ;;  %v2843_v27 = vshll.u32 %v6267_v11, 16  ;;  %v2729_v45 = vld [vmem:[#allocation4 + $0x8] sm:$0xe] }
 0x1db   : > { %v2467_v29 = vshll.u32 %v4890_v12, 16  ;;  %v2450_v3 = vshrl.u32 %v6261_v16, 16  ;;  %v6280_v6 = vld [vmem:[#allocation4 + $0x20] sm:$0xf]  ;;  %v3213_v30 = vld [vmem:[#allocation4 + $0x24] sm:$0x1] }
 0x1dc   : > { %v6282_v7 = vld [vmem:[#allocation4 + $0x20] sm:$0xf]  ;;  %v2490_v42 = vsel %vm5961_vm11, %v2482_v57, 0  ;;  %v3250_v20 = vrot.slane %v3213_v30, 5  ;;  %v2466_v33 = vrot.slane %v2464_v26, 7  ;;  %v2656_v9 = vshrl.u32 %v6280_v6, 16 }
 0x1dd   : > { %v3212_v8 = vld [vmem:[#allocation4 + $0x20] sm:$0xe]  ;;  %v6288_v50 = vld [vmem:[#allocation4 + $0x10] sm:$0xf]  ;;  %v4736_v63 = vcombine.low %v2490_v42, %v2490_v42  ;;  %v4737_v13 = vcombine.high %v2490_v42, %v2490_v42  ;;  %v2659_v40 = vshll.u32 %v6280_v6, 16  ;;  %v2452_v22 = vrot.slane %v2450_v3, 7 }
 0x1de   : > { %v6284_v4 = vld [vmem:[#allocation4 + $0x20] sm:$0xf]  ;;  %v4762_v39 = vrot.slane %v3212_v8, 9  ;;  %v6290_v52 = vld [vmem:[#allocation4 + $0x10] sm:$0xf]  ;;  %v2469_v38 = vor.u32 %v2467_v29, %v2466_v33  ;;  %v2628_v34 = vshrl.u32 %v6288_v50, 16 }
 0x1df   : > { %v3109_v62 = vshrl.u32 %v6284_v4, 16  ;;  %v3112_v35 = vshll.u32 %v6284_v4, 16  ;;  %2559 = vst [vmem:[#allocation4 + $0x28] sm:$0xf] %v4736_v63  ;;  %2560 = vst [vmem:[#allocation4 + $0x2c] sm:$0x1] %v4737_v13 }
 0x1e0   : > { %v2730_v32 = vld [vmem:[#allocation4 + $0xc] sm:$0x1]  ;;  %v3251_v10 = vsel %vm5936_vm5, %v4762_v39, %v3250_v20  ;;  %v2631_v19 = vshll.u32 %v6288_v50, 16  ;;  %v2854_v54 = vshrl.u32 %v6290_v52, 16  ;;  %v2857_v0 = vshll.u32 %v6290_v52, 16  ;;  %v5563_v4 = vld [vmem:[#allocation11 + $0x148] sm:$0xff]  }
 0x1e1   : > { %v6304_v28 = vld [vmem:[#allocation4 + $0x10] sm:$0xf]  ;;  %v2733_v47 = vld [vmem:[#allocation4 + $0x18] sm:$0xe]  ;;  %3282 = vst [vmem:[#allocation5 + $0x68] sm:$0xf] %v3251_v10 }
 0x1e2   : > { %v6306_v53 = vld [vmem:[#allocation4 + $0x38] sm:$0xf]  ;;  %v2485_v25 = vsel %vm5954_vm10, 0, %v2469_v38  ;;  %v2807_v23 = vld [vmem:[#allocation4 + $0x8] sm:$0xf]  ;;  %v2453_v58 = vshll.u32 %v6261_v16, 16 }
 0x1e3   : > { %v6308_v14 = vld [vmem:[#allocation4 + $0x38] sm:$0xf]  ;;  %v2493_v49 = vsel %vm5961_vm11, %v2485_v25, 0  ;;  %v4745_v60 = vrot.slane %v2729_v45, 9  ;;  %v2765_v41 = vrot.slane %v2730_v32, 5  ;;  %v3081_v16 = vshrl.u32 %v6304_v28, 16 }
 0x1e4   : > { %v6312_v43 = vld [vmem:[#allocation4 + $0x38] sm:$0xf]  ;;  %v2808_v5 = vld [vmem:[#allocation4 + $0x10] sm:$0xf]  ;;  %2815 = vst [vmem:[#allocation5 + $0xc] sm:$0xf] %v2807_v23  ;;  %v4742_v12 = vcombine.low %v2493_v49, %v2493_v49  ;;  %v4743_v57 = vcombine.high %v2493_v49, %v2493_v49  ;;  %v2455_v30 = vor.u32 %v2453_v58, %v2452_v22 }
 0x1e5   : > { %2816 = vst [vmem:[#allocation5 + $0x30] sm:$0xf] %v2808_v5  ;;  %v2731_v26 = vld [vmem:[#allocation4 + $0x10] sm:$0xe]  ;;  %v2732_v29 = vld [vmem:[#allocation4 + $0x14] sm:$0x1]  ;;  %v2766_v3 = vsel %vm5936_vm5, %v4745_v60, %v2765_v41 }
 0x1e6   : > { %v2734_v8 = vld [vmem:[#allocation4 + $0x1c] sm:$0x1]  ;;  %v4746_v39 = vrot.slane %v2731_v26, 9  ;;  %v2769_v42 = vrot.slane %v2732_v29, 5  ;;  %v2809_v20 = vld [vmem:[#allocation4 + $0x18] sm:$0xf] }
 0x1e7   : > { %v2810_v63 = vld [vmem:[#allocation4 + $0x20] sm:$0xf]  ;;  %v3084_v13 = vshll.u32 %v6304_v28, 16  ;;  %2565 = vst [vmem:[#allocation4 + $0x40] sm:$0xf] %v4742_v12  ;;  %v4747_v33 = vrot.slane %v2733_v47, 9 }
 0x1e8   : > { %2566 = vst [vmem:[#allocation4 + $0x44] sm:$0x1] %v4743_v57  ;;  %2800 = vst [vmem:[#allocation5 + $0x2c] sm:$0xf] %v2766_v3  ;;  %v2773_v38 = vrot.slane %v2734_v8, 5  ;;  %v2698_v32 = vshrl.u32 %v6306_v53, 16  ;;  %v2770_v22 = vsel %vm5936_vm5, %v4746_v39, %v2769_v42 }
 0x1e9   : > { %2817 = vst [vmem:[#allocation5 + $0x54] sm:$0xf] %v2809_v20  ;;  %2818 = vst [vmem:[#allocation5 + $0x78] sm:$0xf] %v2810_v63  ;;  %v2568_v45 = vld [vmem:[#allocation4 + $0x8] sm:$0xf] }
 0x1ea   : > { %v2701_v10 = vshll.u32 %v6306_v53, 16  ;;  %2576 = vst [vmem:[#allocation5 + $0x24] sm:$0xf] %v2568_v45  ;;  %v3214_v58 = vld [vmem:[#allocation4 + $0x28] sm:$0xe]  ;;  %v2483_v57 = vsel %vm5954_vm10, 0, %v2455_v30  ;;  %v2774_v8 = vsel %vm5936_vm5, %v4747_v33, %v2773_v38 }
 0x1eb   : > { %2801 = vst [vmem:[#allocation5 + $0x50] sm:$0xf] %v2770_v22  ;;  %v2586_v47 = vld [vmem:[#allocation4 + $0xc] sm:$0x1]  ;;  %v6328_v60 = vld [vmem:[#allocation4 + $0x28] sm:$0xf] }
 0x1ec   : > { %v6330_v41 = vld [vmem:[#allocation4 + $0x28] sm:$0xf]  ;;  %v3215_v5 = vld [vmem:[#allocation4 + $0x2c] sm:$0x1]  ;;  %v4763_v12 = vrot.slane %v3214_v58, 9  ;;  %v2491_v29 = vsel %vm5961_vm11, %v2483_v57, 0 }
 0x1ed   : > { %v3254_v26 = vrot.slane %v3215_v5, 5  ;;  %v2616_v3 = vrot.slane %v2614_v55, 4  ;;  %v2569_v39 = vld [vmem:[#allocation4 + $0x10] sm:$0xf]  ;;  %v4738_v42 = vcombine.low %v2491_v29, %v2491_v29  ;;  %v4739_v20 = vcombine.high %v2491_v29, %v2491_v29  ;;  %2802 = vst [vmem:[#allocation5 + $0x74] sm:$0xf] %v2774_v8 }
 0x1ee   : > { %v2619_v63 = vrot.slane %v2617_v36, 5  ;;  %v2623_v45 = vshll.u32 %v2586_v47, 16  ;;  %v2570_v1 = vld [vmem:[#allocation4 + $0x18] sm:$0xf]  ;;  %2577 = vst [vmem:[#allocation5 + $0x48] sm:$0xf] %v2569_v39 }
 0x1ef   : > { %v2588_v30 = vld [vmem:[#allocation4 + $0x14] sm:$0x1]  ;;  %2578 = vst [vmem:[#allocation5 + $0x6c] sm:$0xf] %v2570_v1  ;;  %v2630_v33 = vrot.slane %v2628_v34, 4  ;;  %v2633_v55 = vrot.slane %v2631_v19, 5  ;;  %v3255_v5 = vsel %vm5936_vm5, %v4763_v12, %v3254_v26 }
 0x1f0   : > { %v2637_v38 = vshll.u32 %v2588_v30, 16  ;;  %v6347_v22 = vld [vmem:[#allocation4 + $0x28] sm:$0xf]  ;;  %2561 = vst [vmem:[#allocation4 + $0x30] sm:$0xf] %v4738_v42  ;;  %v2620_v36 = vor.u32 %v2619_v63, %v2616_v3  ;;  %v2644_v47 = vrot.slane %v2642_v56, 4 }
 0x1f1   : > { %2562 = vst [vmem:[#allocation4 + $0x34] sm:$0x1] %v4739_v20  ;;  %v5518_v17 = vld [vmem:[#allocation11 + $0x1b8] sm:$0xff]   ;;  %v2590_v58 = vld [vmem:[#allocation4 + $0x1c] sm:$0x1]  ;;  %v2670_v57 = vshrl.u32 %v6328_v60, 16  ;;  %v2634_v63 = vor.u32 %v2633_v55, %v2630_v33 }
 0x1f2   : > { %v2673_v34 = vshll.u32 %v6328_v60, 16  ;;  %v5512_v29 = vld [vmem:[#allocation5 + $0x8] ss:$36 sps:$4 sm:$0xff]   ;;  %3283 = vst [vmem:[#allocation5 + $0x8c] sm:$0xf] %v3255_v5  ;;  %v2621_v42 = vrot.slane %v2620_v36, 4 }
 0x1f3   : > { %v6357_v8 = vld [vmem:[#allocation4 + $0x40] sm:$0xf]  ;;  %v2625_v56 = vrot.slane %v2623_v45, 5  ;;  %v2647_v12 = vrot.slane %v2645_v37, 5  ;;  %v2639_v26 = vrot.slane %v2637_v38, 5  ;;  %v2651_v1 = vshll.u32 %v2590_v58, 16 }
 0x1f4   : > { %v6359_v3 = vld [vmem:[#allocation4 + $0x40] sm:$0xf]  ;;  %v2736_v23 = vld [vmem:[#allocation4 + $0x24] sm:$0x1]  ;;  %v2635_v50 = vrot.slane %v2634_v63, 4  ;;  %v3123_v45 = vshrl.u32 %v6347_v22, 16 }
 0x1f5   : > { %v5514_v39 = vld [vmem:[#allocation5 + $0xc] ss:$36 sps:$4 sm:$0xff]   ;;  %v2626_v5 = vsel %vm5944_vm8, %v2621_v42, %v2625_v56  ;;  %v2648_v31 = vor.u32 %v2647_v12, %v2644_v47  ;;  %v2737_v49 = vld [vmem:[#allocation4 + $0x28] sm:$0xe]  ;;  %v2738_v59 = vld [vmem:[#allocation4 + $0x2c] sm:$0x1] }
 0x1f6   : > { %v5525_v20 = vld [vmem:[#allocation11 + $0x1f0] sm:$0xff]   ;;  %4192 = vmatprep.mubr.bf16.mxu0 %v5514_v39  ;;  %v3126_v33 = vshll.u32 %v6347_v22, 16  ;;  %2720 = vst [vmem:[#allocation5 + $0x28] sm:$0xf] %v2626_v5  ;;  %v2777_v37 = vrot.slane %v2736_v23, 5  ;;  %v4749_v55 = vrot.slane %v2737_v49, 9  ;;  %v2640_v38 = vsel %vm5944_vm8, %v2635_v50, %v2639_v26 }
 0x1f7   : > { %v2735_v30 = vld [vmem:[#allocation4 + $0x20] sm:$0xe]  ;;  %4193 = vmatmul.mubr.bf16.vlgmr.msra.gmra.mxu0 %v5512_v29  ;;  %v5519_v15 = vld [vmem:[#allocation5 + $0x54] ss:$36 sps:$4 sm:$0xff]   ;;  %v2649_v58 = vrot.slane %v2648_v31, 4  ;;  %v2781_v39 = vrot.slane %v2738_v59, 5 }
 0x1f8   : > { %v5527_v19 = vld [vmem:[#allocation11 + $0x1b0] sm:$0xff]   ;;  %v4748_v36 = vrot.slane %v2735_v30, 9  ;;  %5185 = vmatpush3.bf16.msra.mxu0 %v5518_v17  ;;  %v2811_v42 = vld [vmem:[#allocation4 + $0x28] sm:$0xf]  ;;  %v6371_v12 = vld [vmem:[#allocation4 + $0x30] sm:$0xf]  ;;  %4200 = vmatprep.mubr.bf16.mxu0 %v5519_v15 }
 0x1f9   : > { %v2571_v47 = vld [vmem:[#allocation4 + $0x20] sm:$0xf]  ;;  %5186 = vmatprep.subr.bf16.mxu0 %v5525_v20  ;;  %v2653_v29 = vrot.slane %v2651_v1, 5  ;;  %2721 = vst [vmem:[#allocation5 + $0x4c] sm:$0xf] %v2640_v38  ;;  %v5531_v23 = vld [vmem:[#allocation11 + $0x1e8] sm:$0xff]  }
 0x1fa   : > { %v2778_v49 = vsel %vm5936_vm5, %v4748_v36, %v2777_v37  ;;  %2819 = vst [vmem:[#allocation5 + $0x9c] sm:$0xf] %v2811_v42  ;;  %2579 = vst [vmem:[#allocation5 + $0x90] sm:$0xf] %v2571_v47  ;;  %v2684_v31 = vshrl.u32 %v6371_v12, 16  ;;  %v3299_v17 = vld [vmem:[#allocation5 + $0x50] sm:$0xff]  ;;  %v2782_v36 = vsel %vm5936_vm5, %v4749_v55, %v2781_v39 }
 0x1fb   : > { %2803 = vst [vmem:[#allocation5 + $0x98] sm:$0xf] %v2778_v49  ;;  %v2812_v50 = vld [vmem:[#allocation4 + $0x30] sm:$0xf]  ;;  %v5535_v26 = vld [vmem:[#allocation11 + $0x1a8] sm:$0xff]   ;;  %v2658_v30 = vrot.slane %v2656_v9, 4  ;;  %v2654_v5 = vsel %vm5944_vm8, %v2649_v58, %v2653_v29 }
 0x1fc   : > { %v2687_v20 = vshll.u32 %v6371_v12, 16  ;;  %v3304_v1 = vld [vmem:[#allocation5 + $0x74] sm:$0xff]  ;;  %2820 = vst [vmem:[#allocation5 + $0xc0] sm:$0xf] %v2812_v50  ;;  %v5537_v15 = vld [vmem:[#allocation11 + $0x1e0] sm:$0xff]   ;;  %5187 = vmatpush3.bf16.msra.mxu0 %v5527_v19  ;;  %v2661_v9 = vrot.slane %v2659_v40, 5 }
 0x1fd   : > { %v2572_v37 = vld [vmem:[#allocation4 + $0x28] sm:$0xf]  ;;  %v2592_v38 = vld [vmem:[#allocation4 + $0x24] sm:$0x1]  ;;  %2722 = vst [vmem:[#allocation5 + $0x70] sm:$0xf] %v2654_v5  ;;  %v4780_v39 = vcombine.low %v3299_v17, %v3304_v1  ;;  %5188 = vmatprep.subr.bf16.mxu0 %v5531_v23 }
 0x1fe   : > { %v5526_v42 = vld [vmem:[#allocation11 + $0x138] sm:$0xff]   ;;  %2804 = vst [vmem:[#allocation5 + $0xbc] sm:$0xf] %v2782_v36  ;;  %2580 = vst [vmem:[#allocation5 + $0xb4] sm:$0xf] %v2572_v37  ;;  %v2665_v49 = vshll.u32 %v2592_v38, 16  ;;  %v2662_v6 = vor.u32 %v2661_v9, %v2658_v30 }
 0x1ff   : > { %v2594_v47 = vld [vmem:[#allocation4 + $0x2c] sm:$0x1]  ;;  %v2672_v58 = vrot.slane %v2670_v57, 4  ;;  %v2675_v55 = vrot.slane %v2673_v34, 5  ;;  %v5530_v29 = vld [vmem:[#allocation11 + $0x170] sm:$0xff]   ;;  %v6390_v5 = vrot.slane %v2684_v31, 4  ;;  %4201 = vmatmul.mubr.bf16.gmra.mxu0 %v4780_v39 }
 0x200   : > { %v2679_v50 = vshll.u32 %v2594_v47, 16  ;;  %v2739_v56 = vld [vmem:[#allocation4 + $0x30] sm:$0xe]  ;;  %v2740_v19 = vld [vmem:[#allocation4 + $0x34] sm:$0x1]  ;;  %v2667_v40 = vrot.slane %v2665_v49, 5  ;;  %5189 = vmatpush3.bf16.msra.mxu0 %v5535_v26 }
 0x201   : > { %v5521_v36 = vld [vmem:[#allocation5] ss:$36 sps:$4 sm:$0xff]   ;;  %v2676_v38 = vor.u32 %v2675_v55, %v2672_v58  ;;  %v2741_v34 = vld [vmem:[#allocation4 + $0x38] sm:$0xe]  ;;  %v2742_v17 = vld [vmem:[#allocation4 + $0x3c] sm:$0x1]  ;;  %5190 = vmatprep.subr.bf16.mxu0 %v5537_v15 }
 0x202   : > { %v5523_v37 = vld [vmem:[#allocation5 + $0x4] ss:$36 sps:$4 sm:$0xff]   ;;  %v6392_v63 = vld [vmem:[#allocation4 + $0x30] sm:$0xf]  ;;  %v2681_v60 = vrot.slane %v2679_v50, 5  ;;  %v4750_v23 = vrot.slane %v2739_v56, 9 }
 0x203   : > { %v5540_v59 = vld [vmem:[#allocation11 + $0x1a0] sm:$0xff]   ;;  %4127 = vmatprep.mubr.bf16.mxu1 %v5523_v37  ;;  %v5534_v1 = vld [vmem:[#allocation11 + $0x130] sm:$0xff]   ;;  %v2663_v31 = vrot.slane %v2662_v6, 4  ;;  %v2677_v47 = vrot.slane %v2676_v38, 4  ;;  %v2785_v18 = vrot.slane %v2740_v19, 5  ;;  %v4751_v44 = vrot.slane %v2741_v34, 9 }
 0x204   : > { %v6394_v57 = vld [vmem:[#allocation4 + $0x30] sm:$0xf]  ;;  %4128 = vmatmul.mubr.bf16.vlgmr.msra.gmra.mxu1 %v5521_v36  ;;  %v3309_v30 = vld [vmem:[#allocation5 + $0x98] sm:$0xff]  ;;  %v5536_v9 = vld [vmem:[#allocation11 + $0x168] sm:$0xff]   ;;  %v2789_v49 = vrot.slane %v2742_v17, 5  ;;  %v2910_v38 = vshrl.u32 %v6392_v63, 16  ;;  %5191 = vmatpush3.bf16.msra.mxu0 %v5540_v59 }
 0x205   : > { %v2813_v58 = vld [vmem:[#allocation4 + $0x38] sm:$0xf]  ;;  %v2814_v55 = vld [vmem:[#allocation4 + $0x40] sm:$0xf]  ;;  %5145 = vmatpush3.bf16.msra.mxu1 %v5526_v42  ;;  %v2668_v39 = vsel %vm5944_vm8, %v2663_v31, %v2667_v40  ;;  %v2682_v56 = vsel %vm5944_vm8, %v2677_v47, %v2681_v60  ;;  %v2786_v26 = vsel %vm5936_vm5, %v4750_v23, %v2785_v18  ;;  %v5548_v50 = vld [vmem:[#allocation11 + $0x198] sm:$0xff]   ;;  %v2689_v18 = vrot.slane %v2687_v20, 5  ;;  %5192 = vmatprep.subr.bf16.mxu0 %v5544_v24 }
 0x206   : > { %2821 = vst [vmem:[#allocation5 + $0xe4] sm:$0xf] %v2813_v58  ;;  %2822 = vst [vmem:[#allocation5 + $0x108] sm:$0xf] %v2814_v55  ;;  %v2573_v19 = vld [vmem:[#allocation4 + $0x30] sm:$0xf]  ;;  %5146 = vmatprep.subr.bf16.mxu1 %v5530_v29  ;;  %v2790_v42 = vsel %vm5936_vm5, %v4751_v44, %v2789_v49 }
 0x207   : > { %v2574_v36 = vld [vmem:[#allocation4 + $0x38] sm:$0xf]  ;;  %v2596_v37 = vld [vmem:[#allocation4 + $0x34] sm:$0x1]  ;;  %v5528_v15 = vld [vmem:[#allocation5 + $0x4c] ss:$36 sps:$4 sm:$0xff]   ;;  %v2690_v49 = vor.u32 %v2689_v18, %v6390_v5 }
 0x208   : > { %v3314_v6 = vld [vmem:[#allocation5 + $0xbc] sm:$0xff]  ;;  %2723 = vst [vmem:[#allocation5 + $0x94] sm:$0xf] %v2668_v39  ;;  %2724 = vst [vmem:[#allocation5 + $0xb8] sm:$0xf] %v2682_v56  ;;  %v2693_v40 = vshll.u32 %v2596_v37, 16  ;;  %4135 = vmatprep.mubr.bf16.mxu1 %v5528_v15  ;;  %5193 = vmatpush3.bf16.msra.mxu0 %v5548_v50 }
 0x209   : > { %2805 = vst [vmem:[#allocation5 + $0xe0] sm:$0xf] %v2786_v26  ;;  %2581 = vst [vmem:[#allocation5 + $0xd8] sm:$0xf] %v2573_v19  ;;  %v3137_v60 = vshrl.u32 %v6394_v57, 16  ;;  %v5539_v17 = vld [vmem:[#allocation11 + $0x128] sm:$0xff]   ;;  %v4789_v29 = vcombine.low %v3309_v30, %v3314_v6  ;;  %5147 = vmatpush3.bf16.msra.mxu1 %v5534_v1 }
 0x20a   : > { %2582 = vst [vmem:[#allocation5 + $0xfc] sm:$0xf] %v2574_v36  ;;  %v5532_v34 = vld [vmem:[#allocation5 + $0x9c] ss:$36 sps:$4 sm:$0xff]   ;;  %2806 = vst [vmem:[#allocation5 + $0x104] sm:$0xf] %v2790_v42  ;;  %5148 = vmatprep.subr.bf16.mxu1 %v5536_v9 }
 0x20b   : > { %v2598_v23 = vld [vmem:[#allocation4 + $0x3c] sm:$0x1]  ;;  %v5543_v44 = vld [vmem:[#allocation11 + $0x160] sm:$0xff]   ;;  %v5550_v47 = vld [vmem:[#allocation11 + $0x1d0] sm:$0xff]   ;;  %v2695_v12 = vrot.slane %v2693_v40, 5  ;;  %v2700_v20 = vrot.slane %v2698_v32, 4  ;;  %4208 = vmatprep.mubr.bf16.mxu0 %v5532_v34 }
 0x20c   : > { %v5538_v31 = vld [vmem:[#allocation5 + $0x48] ss:$36 sps:$4 sm:$0xff]   ;;  %v2703_v58 = vrot.slane %v2701_v10, 5  ;;  %v3048_v55 = vld [vmem:[#allocation4 + $0x10] sm:$0xf]  ;;  %v5553_v59 = vld [vmem:[#allocation11 + $0x190] sm:$0xff]   ;;  %4209 = vmatmul.mubr.bf16.gmra.mxu0 %v4789_v29  ;;  %5194 = vmatprep.subr.bf16.mxu0 %v5550_v47 }
 0x20d   : > { %v2707_v30 = vshll.u32 %v2598_v23, 16  ;;  %v3049_v39 = vld [vmem:[#allocation4 + $0x18] sm:$0xf]  ;;  %3056 = vst [vmem:[#allocation5 + $0x18] sm:$0xf] %v3048_v55  ;;  %v3083_v24 = vrot.slane %v3081_v16, 4  ;;  %4136 = vmatmul.mubr.bf16.gmra.mxu1 %v5538_v31  ;;  %5195 = vmatpush3.bf16.msra.mxu0 %v5553_v59 }
 0x20e   : > { %v3065_v56 = vld [vmem:[#allocation4 + $0x14] sm:$0x1]  ;;  %v2691_v5 = vrot.slane %v2690_v49, 4  ;;  %v2704_v26 = vor.u32 %v2703_v58, %v2700_v20  ;;  %v5557_v19 = vld [vmem:[#allocation11 + $0x1c8] sm:$0xff]   ;;  %3057 = vst [vmem:[#allocation5 + $0x3c] sm:$0xf] %v3049_v39  ;;  %5149 = vmatpush3.bf16.msra.mxu1 %v5539_v17 }
 0x20f   : > { %v3067_v32 = vld [vmem:[#allocation4 + $0x1c] sm:$0x1]  ;;  %v3086_v53 = vrot.slane %v3084_v13, 5  ;;  %v3090_v10 = vshll.u32 %v3065_v56, 16  ;;  %v5547_v1 = vld [vmem:[#allocation11 + $0x120] sm:$0xff]   ;;  %v2709_v36 = vrot.slane %v2707_v30, 5  ;;  %5150 = vmatprep.subr.bf16.mxu1 %v5543_v44  ;;  %5196 = vmatprep.subr.bf16.mxu0 %v5557_v19 }
 0x210   : > { %v3097_v37 = vrot.slane %v3095_v21, 4  ;;  %v3100_v16 = vrot.slane %v3098_v51, 5  ;;  %v3104_v9 = vshll.u32 %v3067_v32, 16  ;;  %v2824_v15 = vld [vmem:[#allocation4 + $0xc] sm:$0x1]  ;;  %v2696_v42 = vsel %vm5944_vm8, %v2691_v5, %v2695_v12  ;;  %v3319_v51 = vld [vmem:[#allocation5 + $0xe0] sm:$0xff] }
 0x211   : > { %v5549_v6 = vld [vmem:[#allocation11 + $0x158] sm:$0xff]   ;;  %v2705_v28 = vrot.slane %v2704_v26, 4  ;;  %v3087_v13 = vor.u32 %v3086_v53, %v3083_v24  ;;  %v3092_v18 = vrot.slane %v3090_v10, 5  ;;  %v2826_v40 = vld [vmem:[#allocation4 + $0x14] sm:$0x1]  ;;  %v2842_v2 = vrot.slane %v2840_v61, 4 }
 0x212   : > { %v2967_v50 = vld [vmem:[#allocation4 + $0x8] sm:$0xe]  ;;  %2725 = vst [vmem:[#allocation5 + $0xdc] sm:$0xf] %v2696_v42  ;;  %v3101_v21 = vor.u32 %v3100_v16, %v3097_v37  ;;  %v3106_v29 = vrot.slane %v3104_v9, 5  ;;  %v3324_v23 = vld [vmem:[#allocation5 + $0x104] sm:$0xff]  ;;  %5151 = vmatpush3.bf16.msra.mxu1 %v5547_v1 }
 0x213   : > { %v5541_v34 = vld [vmem:[#allocation5 + $0x94] ss:$36 sps:$4 sm:$0xff]   ;;  %v5545_v31 = vld [vmem:[#allocation5 + $0xe4] ss:$36 sps:$4 sm:$0xff]   ;;  %v2710_v47 = vsel %vm5944_vm8, %v2705_v28, %v2709_v36  ;;  %v3088_v49 = vrot.slane %v3087_v13, 4  ;;  %v2845_v12 = vrot.slane %v2843_v27, 5  ;;  %v4798_v20 = vcombine.low %v3319_v51, %v3324_v23  ;;  %5152 = vmatprep.subr.bf16.mxu1 %v5549_v6 }
 0x214   : > { %4143 = vmatprep.mubr.bf16.mxu1 %v5541_v34  ;;  %v5552_v17 = vld [vmem:[#allocation11 + $0x118] sm:$0xff]   ;;  %2726 = vst [vmem:[#allocation5 + $0x100] sm:$0xf] %v2710_v47  ;;  %v5559_v58 = vld [vmem:[#allocation11 + $0x188] sm:$0xff]   ;;  %v3102_v55 = vrot.slane %v3101_v21, 4  ;;  %v5564_v30 = vld [vmem:[#allocation11 + $0x1c0] sm:$0xff]   ;;  %4216 = vmatprep.mubr.bf16.mxu0 %v5545_v31 }
 0x215   : > { %v2849_v61 = vshll.u32 %v2824_v15, 16  ;;  %v2856_v44 = vrot.slane %v2854_v54, 4  ;;  %v5551_v39 = vld [vmem:[#allocation5 + $0x90] ss:$36 sps:$4 sm:$0xff]   ;;  %v3093_v56 = vsel %vm5944_vm8, %v3088_v49, %v3092_v18  ;;  %v2846_v11 = vor.u32 %v2845_v12, %v2842_v2  ;;  %v2968_v24 = vld [vmem:[#allocation4 + $0xc] sm:$0x1]  ;;  %4217 = vmatmul.mubr.bf16.gmra.mxu0 %v4798_v20 }
 0x216   : > { %v2859_v27 = vrot.slane %v2857_v0, 5  ;;  %v2863_v59 = vshll.u32 %v2826_v40, 16  ;;  %v2969_v5 = vld [vmem:[#allocation4 + $0x10] sm:$0xe]  ;;  %v5556_v26 = vld [vmem:[#allocation11 + $0x150] sm:$0xff]   ;;  %v3107_v32 = vsel %vm5944_vm8, %v3102_v55, %v3106_v29  ;;  %v4752_v10 = vrot.slane %v2967_v50, 9  ;;  %5197 = vmatpush3.bf16.msra.mxu0 %v5559_v58  ;;  %4144 = vmatmul.mubr.bf16.gmra.mxu1 %v5551_v39 }
 0x217   : > { %3200 = vst [vmem:[#allocation5 + $0x1c] sm:$0xf] %v3093_v56  ;;  %v2851_v54 = vrot.slane %v2849_v61, 5  ;;  %v2970_v53 = vld [vmem:[#allocation4 + $0x14] sm:$0x1]  ;;  %v3001_v19 = vrot.slane %v2968_v24, 5  ;;  %5198 = vmatprep.subr.bf16.mxu0 %v5564_v30  ;;  %5153 = vmatpush3.bf16.msra.mxu1 %v5552_v17 }
 0x218   : > { %3201 = vst [vmem:[#allocation5 + $0x40] sm:$0xf] %v3107_v32  ;;  %v5567_v36 = vld [vmem:[#allocation11 + $0x180] sm:$0xff]   ;;  %v2847_v37 = vrot.slane %v2846_v11, 4  ;;  %v2860_v52 = vor.u32 %v2859_v27, %v2856_v44  ;;  %v2865_v0 = vrot.slane %v2863_v59, 5  ;;  %v4753_v16 = vrot.slane %v2969_v5, 9  ;;  %5154 = vmatprep.subr.bf16.mxu1 %v5556_v26 }
 0x219   : > { %v3050_v9 = vld [vmem:[#allocation4 + $0x20] sm:$0xf]  ;;  %v3002_v1 = vsel %vm5936_vm5, %v4752_v10, %v3001_v19  ;;  %v3005_v15 = vrot.slane %v2970_v53, 5  ;;  %v3051_v42 = vld [vmem:[#allocation4 + $0x28] sm:$0xf]  ;;  %v3111_v13 = vrot.slane %v3109_v62, 4 }
 0x21a   : > { %3058 = vst [vmem:[#allocation5 + $0x60] sm:$0xf] %v3050_v9  ;;  %v3069_v28 = vld [vmem:[#allocation4 + $0x24] sm:$0x1]  ;;  %v2852_v6 = vsel %vm5944_vm8, %v2847_v37, %v2851_v54  ;;  %v2861_v18 = vrot.slane %v2860_v52, 4  ;;  %v3114_v50 = vrot.slane %v3112_v35, 5  ;;  %5199 = vmatpush3.bf16.msra.mxu0 %v5567_v36 }
 0x21b   : > { %3039 = vst [vmem:[#allocation5 + $0x14] sm:$0xf] %v3002_v1  ;;  %3059 = vst [vmem:[#allocation5 + $0x84] sm:$0xf] %v3051_v42  ;;  %v3071_v40 = vld [vmem:[#allocation4 + $0x2c] sm:$0x1]  ;;  %v3006_v29 = vsel %vm5936_vm5, %v4753_v16, %v3005_v15 }
 0x21c   : > { %v3118_v34 = vshll.u32 %v3069_v28, 16  ;;  %v5558_v21 = vld [vmem:[#allocation11 + $0x110] sm:$0xff]   ;;  %2959 = vst [vmem:[#allocation5 + $0x10] sm:$0xf] %v2852_v6  ;;  %v3125_v62 = vrot.slane %v3123_v45, 4  ;;  %v3128_v2 = vrot.slane %v3126_v33, 5  ;;  %v2866_v35 = vsel %vm5944_vm8, %v2861_v18, %v2865_v0 }
 0x21d   : > { %v3132_v51 = vshll.u32 %v3071_v40, 16  ;;  %v2828_v23 = vld [vmem:[#allocation4 + $0x1c] sm:$0x1]  ;;  %v3140_v31 = vshll.u32 %v6394_v57, 16  ;;  %v5554_v47 = vld [vmem:[#allocation5 + $0xdc] ss:$36 sps:$4 sm:$0xff]   ;;  %v3115_v49 = vor.u32 %v3114_v50, %v3111_v13  ;;  %5155 = vmatpush3.bf16.msra.mxu1 %v5558_v21 }
 0x21e   : > { %3040 = vst [vmem:[#allocation5 + $0x38] sm:$0xf] %v3006_v29  ;;  %v3120_v12 = vrot.slane %v3118_v34, 5  ;;  %v5566_v17 = vld [vmem:[#allocation11 + $0x108] sm:$0xff]   ;;  %2960 = vst [vmem:[#allocation5 + $0x34] sm:$0xf] %v2866_v35  ;;  %v3129_v45 = vor.u32 %v3128_v2, %v3125_v62  ;;  %4151 = vmatprep.mubr.bf16.mxu1 %v5554_v47  ;;  %5156 = vmatprep.subr.bf16.mxu1 %v5563_v4 }
 0x21f   : > { %v3134_v20 = vrot.slane %v3132_v51, 5  ;;  %v2830_v22 = vld [vmem:[#allocation4 + $0x24] sm:$0x1]  ;;  %v6721_v33 = vshrl.u32 %v6257_v48, 16  ;;  %v6722_v55 = vshll.u32 %v6257_v48, 16  ;;  %v5571_v44 = vld [vmem:[#allocation11 + $0x140] sm:$0xff]  }
 0x220   : > { %v5565_v61 = vld [vmem:[#allocation5 + $0xd8] ss:$36 sps:$4 sm:$0xff]   ;;  %v3116_v39 = vrot.slane %v3115_v49, 4  ;;  %v2877_v56 = vshll.u32 %v2828_v23, 16  ;;  %v6723_v11 = vshrl.u32 %v6282_v7, 16  ;;  %v6724_v59 = vshll.u32 %v6282_v7, 16 }
 0x221   : > { %v2870_v58 = vrot.slane %v6721_v33, 4  ;;  %v2873_v30 = vrot.slane %v6722_v55, 5  ;;  %v5560_v5 = vld [vmem:[#allocation5 + $0x18] ss:$36 sps:$4 sm:$0xff]   ;;  %v3130_v32 = vrot.slane %v3129_v45, 4  ;;  %v2891_v19 = vshll.u32 %v2830_v22, 16  ;;  %4152 = vmatmul.mubr.bf16.gmra.mxu1 %v5565_v61 }
 0x222   : > { %v2884_v27 = vrot.slane %v6723_v11, 4  ;;  %v2887_v24 = vrot.slane %v6724_v59, 5  ;;  %v5562_v26 = vld [vmem:[#allocation5 + $0x1c] ss:$36 sps:$4 sm:$0xff]   ;;  %v3121_v48 = vsel %vm5944_vm8, %v3116_v39, %v3120_v12  ;;  %v2879_v53 = vrot.slane %v2877_v56, 5  ;;  %5157 = vmatpush3.bf16.msra.mxu1 %v5566_v17  ;;  %v5578_v11 = vld [vmem:[#allocation11 + $0x230] sm:$0xff]  }
 0x223   : > { %v2874_v54 = vor.u32 %v2873_v30, %v2870_v58  ;;  %v2971_v36 = vld [vmem:[#allocation4 + $0x18] sm:$0xe]  ;;  %v2972_v37 = vld [vmem:[#allocation4 + $0x1c] sm:$0x1]  ;;  %4322 = vmatprep.mubr.bf16.mxu0 %v5562_v26  ;;  %v3135_v52 = vsel %vm5944_vm8, %v3130_v32, %v3134_v20  ;;  %3202 = vst [vmem:[#allocation5 + $0x64] sm:$0xf] %v3121_v48  ;;  %5158 = vmatprep.subr.bf16.mxu1 %v5571_v44 }
 0x224   : > { %v2888_v10 = vor.u32 %v2887_v24, %v2884_v27  ;;  %v2973_v0 = vld [vmem:[#allocation4 + $0x20] sm:$0xe]  ;;  %v2974_v16 = vld [vmem:[#allocation4 + $0x24] sm:$0x1]  ;;  %v4754_v9 = vrot.slane %v2971_v36, 9  ;;  %4323 = vmatmul.mubr.bf16.vlgmr.msra.gmra.mxu0 %v5560_v5  ;;  %v5572_v1 = vld [vmem:[#allocation11 + $0x100] sm:$0xff]  }
 0x225   : > { %v2875_v7 = vrot.slane %v2874_v54, 4  ;;  %3203 = vst [vmem:[#allocation5 + $0x88] sm:$0xf] %v3135_v52  ;;  %v2893_v42 = vrot.slane %v2891_v19, 5  ;;  %v3009_v28 = vrot.slane %v2972_v37, 5  ;;  %v4755_v13 = vrot.slane %v2973_v0, 9 }
 0x226   : > { %v2889_v15 = vrot.slane %v2888_v10, 4  ;;  %v3013_v18 = vrot.slane %v2974_v16, 5  ;;  %v3052_v40 = vld [vmem:[#allocation4 + $0x30] sm:$0xf]  ;;  %v3053_v50 = vld [vmem:[#allocation4 + $0x38] sm:$0xf]  ;;  %5159 = vmatpush3.bf16.msra.mxu1 %v5572_v1 }
 0x227   : > { %v2880_v6 = vsel %vm5944_vm8, %v2875_v7, %v2879_v53  ;;  %v3139_v34 = vrot.slane %v3137_v60, 4  ;;  %v2913_v21 = vshll.u32 %v6392_v63, 16  ;;  %v5570_v29 = vld [vmem:[#allocation5 + $0x14] ss:$36 sps:$4 sm:$0xff]   ;;  %v3010_v51 = vsel %vm5936_vm5, %v4754_v9, %v3009_v28  ;;  %3060 = vst [vmem:[#allocation5 + $0xa8] sm:$0xf] %v3052_v40 }
 0x228   : > { %v5575_v62 = vld [vmem:[#allocation11 + $0x238] sm:$0xff]   ;;  %v2894_v2 = vsel %vm5944_vm8, %v2889_v15, %v2893_v42  ;;  %2961 = vst [vmem:[#allocation5 + $0x58] sm:$0xf] %v2880_v6  ;;  %3061 = vst [vmem:[#allocation5 + $0xcc] sm:$0xf] %v3053_v50  ;;  %v3142_v23 = vrot.slane %v3140_v31, 5  ;;  %v3014_v60 = vsel %vm5936_vm5, %v4755_v13, %v3013_v18  ;;  %4257 = vmatprep.mubr.bf16.mxu1 %v5570_v29 }
 0x229   : > { %2962 = vst [vmem:[#allocation5 + $0x7c] sm:$0xf] %v2894_v2  ;;  %3041 = vst [vmem:[#allocation5 + $0x5c] sm:$0xf] %v3010_v51  ;;  %v3073_v47 = vld [vmem:[#allocation4 + $0x34] sm:$0x1]  ;;  %5260 = vmatprep.subr.bf16.mxu1 %v5575_v62 }
 0x22a   : > { %v3075_v4 = vld [vmem:[#allocation4 + $0x3c] sm:$0x1]  ;;  %v6725_v35 = vshrl.u32 %v6312_v43, 16  ;;  %v6726_v12 = vshll.u32 %v6312_v43, 16  ;;  %v5568_v45 = vld [vmem:[#allocation5 + $0x10] ss:$36 sps:$4 sm:$0xff]   ;;  %v3143_v20 = vor.u32 %v3142_v23, %v3139_v34 }
 0x22b   : > { %3042 = vst [vmem:[#allocation5 + $0x80] sm:$0xf] %v3014_v60  ;;  %v3146_v22 = vshll.u32 %v3073_v47, 16  ;;  %v3160_v57 = vshll.u32 %v3075_v4, 16  ;;  %v2832_v31 = vld [vmem:[#allocation4 + $0x2c] sm:$0x1]  ;;  %4258 = vmatmul.mubr.bf16.vlgmr.msra.gmra.mxu1 %v5568_v45 }
 0x22c   : > { %v3153_v49 = vrot.slane %v6725_v35, 4  ;;  %v3156_v17 = vrot.slane %v6726_v12, 5  ;;  %v2834_v33 = vld [vmem:[#allocation4 + $0x34] sm:$0x1]  ;;  %v6727_v55 = vshrl.u32 %v6330_v41, 16  ;;  %v6728_v61 = vshll.u32 %v6330_v41, 16  ;;  %5261 = vmatpush3.bf16.msra.mxu1 %v5575_v62 }
 0x22d   : > { %v2905_v39 = vshll.u32 %v2832_v31, 16  ;;  %v2975_v56 = vld [vmem:[#allocation4 + $0x28] sm:$0xe]  ;;  %v3301_v43 = vld [vmem:[#allocation5 + $0x60] sm:$0xff]  ;;  %v3144_v27 = vrot.slane %v3143_v20, 4  ;;  %v3148_v59 = vrot.slane %v3146_v22, 5  ;;  %5262 = vmatprep.subr.bf16.mxu1 %v5578_v11 }
 0x22e   : > { %v3157_v58 = vor.u32 %v3156_v17, %v3153_v49  ;;  %v2898_v30 = vrot.slane %v6727_v55, 4  ;;  %v2901_v44 = vrot.slane %v6728_v61, 5  ;;  %v3162_v24 = vrot.slane %v3160_v57, 5  ;;  %v3306_v26 = vld [vmem:[#allocation5 + $0x84] sm:$0xff]  ;;  %v2976_v52 = vld [vmem:[#allocation4 + $0x2c] sm:$0x1] }
 0x22f   : > { %v2912_v5 = vrot.slane %v2910_v38, 4  ;;  %v5573_v32 = vld [vmem:[#allocation5 + $0x64] ss:$36 sps:$4 sm:$0xff]   ;;  %v2907_v53 = vrot.slane %v2905_v39, 5  ;;  %v2915_v10 = vrot.slane %v2913_v21, 5  ;;  %v4784_v41 = vcombine.low %v3301_v43, %v3306_v26 }
 0x230   : > { %v3158_v54 = vrot.slane %v3157_v58, 4  ;;  %v2902_v48 = vor.u32 %v2901_v44, %v2898_v30  ;;  %v3149_v19 = vsel %vm5944_vm8, %v3144_v27, %v3148_v59  ;;  %v6491_v36 = vld [vmem:[#allocation11 + $0x228] sm:$0xff]   ;;  %v2919_v37 = vshll.u32 %v2834_v33, 16  ;;  %v2977_v7 = vld [vmem:[#allocation4 + $0x30] sm:$0xe]  ;;  %4330 = vmatprep.mubr.bf16.mxu0 %v5573_v32  ;;  %5263 = vmatpush3.bf16.msra.mxu1 %v5578_v11 }
 0x231   : > { %v4756_v0 = vrot.slane %v2975_v56, 9  ;;  %3204 = vst [vmem:[#allocation5 + $0xac] sm:$0xf] %v3149_v19  ;;  %v2916_v16 = vor.u32 %v2915_v10, %v2912_v5  ;;  %v2978_v9 = vld [vmem:[#allocation4 + $0x34] sm:$0x1]  ;;  %v3017_v1 = vrot.slane %v2976_v52, 5  ;;  %4331 = vmatmul.mubr.bf16.gmra.mxu0 %v4784_v41  ;;  %5264 = vmatprep.subr.bf16.mxu1 %v6491_v36 }
 0x232   : > { %v3163_v63 = vsel %vm5944_vm8, %v3158_v54, %v3162_v24  ;;  %v2903_v38 = vrot.slane %v2902_v48, 4  ;;  %v3054_v15 = vld [vmem:[#allocation4 + $0x40] sm:$0xf]  ;;  %v2941_v42 = vshll.u32 %v6357_v8, 16  ;;  %v4757_v28 = vrot.slane %v2977_v7, 9  ;;  %v5588_v41 = vld [vmem:[#allocation11 + $0x218] sm:$0xff]  }
 0x233   : > { %3205 = vst [vmem:[#allocation5 + $0xd0] sm:$0xf] %v3163_v63  ;;  %v3021_v13 = vrot.slane %v2978_v9, 5  ;;  %3062 = vst [vmem:[#allocation5 + $0xf0] sm:$0xf] %v3054_v15  ;;  %v2917_v50 = vrot.slane %v2916_v16, 4  ;;  %v3018_v21 = vsel %vm5936_vm5, %v4756_v0, %v3017_v1 }
 0x234   : > { %v3077_v6 = vld [vmem:[#allocation4 + $0x44] sm:$0x1]  ;;  %v5576_v18 = vld [vmem:[#allocation5 + $0x5c] ss:$36 sps:$4 sm:$0xff]   ;;  %v2908_v40 = vsel %vm5944_vm8, %v2903_v38, %v2907_v53  ;;  %v2921_v34 = vrot.slane %v2919_v37, 5  ;;  %v6729_v2 = vshrl.u32 %v6359_v3, 16  ;;  %5265 = vmatpush3.bf16.msra.mxu1 %v6491_v36 }
 0x235   : > { %v5582_v29 = vld [vmem:[#allocation5 + $0x58] ss:$36 sps:$4 sm:$0xff]   ;;  %2963 = vst [vmem:[#allocation5 + $0xa0] sm:$0xf] %v2908_v40  ;;  %v3022_v62 = vsel %vm5936_vm5, %v4757_v28, %v3021_v13  ;;  %3043 = vst [vmem:[#allocation5 + $0xa4] sm:$0xf] %v3018_v21  ;;  %4265 = vmatprep.mubr.bf16.mxu1 %v5576_v18 }
 0x236   : > { %v3167_v51 = vrot.slane %v6729_v2, 4  ;;  %v6730_v23 = vshll.u32 %v6359_v3, 16  ;;  %v3174_v47 = vshll.u32 %v3077_v6, 16  ;;  %v2836_v4 = vld [vmem:[#allocation4 + $0x3c] sm:$0x1]  ;;  %v2922_v35 = vsel %vm5944_vm8, %v2917_v50, %v2921_v34  ;;  %v5585_v3 = vld [vmem:[#allocation11 + $0x220] sm:$0xff]   ;;  %4266 = vmatmul.mubr.bf16.gmra.mxu1 %v5582_v29 }
 0x237   : > { %3044 = vst [vmem:[#allocation5 + $0xc8] sm:$0xf] %v3022_v62  ;;  %v2838_v49 = vld [vmem:[#allocation4 + $0x44] sm:$0x1]  ;;  %v6731_v12 = vshrl.u32 %v6308_v14, 16  ;;  %v6732_v45 = vshll.u32 %v6308_v14, 16  ;;  %5266 = vmatprep.subr.bf16.mxu1 %v5585_v3 }
 0x238   : > { %v3170_v60 = vrot.slane %v6730_v23, 5  ;;  %v2933_v22 = vshll.u32 %v2836_v4, 16  ;;  %2964 = vst [vmem:[#allocation5 + $0xc4] sm:$0xf] %v2922_v35  ;;  %v3176_v31 = vrot.slane %v3174_v47, 5  ;;  %v6733_v33 = vshrl.u32 %v6357_v8, 16  ;;  %5267 = vmatpush3.bf16.msra.mxu1 %v5585_v3 }
 0x239   : > { %v2926_v17 = vrot.slane %v6731_v12, 4  ;;  %v2929_v20 = vrot.slane %v6732_v45, 5  ;;  %v2943_v55 = vrot.slane %v2941_v42, 5  ;;  %v2979_v30 = vld [vmem:[#allocation4 + $0x38] sm:$0xe]  ;;  %v2947_v39 = vshll.u32 %v2838_v49, 16  ;;  %5268 = vmatprep.subr.bf16.mxu1 %v5588_v41 }
 0x23a   : > { %v3171_v57 = vor.u32 %v3170_v60, %v3167_v51  ;;  %v2940_v58 = vrot.slane %v6733_v33, 4  ;;  %v2935_v44 = vrot.slane %v2933_v22, 5  ;;  %v2980_v56 = vld [vmem:[#allocation4 + $0x3c] sm:$0x1]  ;;  %v2981_v43 = vld [vmem:[#allocation4 + $0x40] sm:$0xe] }
 0x23b   : > { %v2930_v61 = vor.u32 %v2929_v20, %v2926_v17  ;;  %v3311_v11 = vld [vmem:[#allocation5 + $0xa8] sm:$0xff]  ;;  %v2982_v59 = vld [vmem:[#allocation4 + $0x44] sm:$0x1]  ;;  %v4758_v24 = vrot.slane %v2979_v30, 9  ;;  %v3025_v5 = vrot.slane %v2980_v56, 5  ;;  %v2949_v54 = vrot.slane %v2947_v39, 5 }
 0x23c   : > { %v3172_v14 = vrot.slane %v3171_v57, 4  ;;  %v2944_v27 = vor.u32 %v2943_v55, %v2940_v58  ;;  %v3316_v26 = vld [vmem:[#allocation5 + $0xcc] sm:$0xff]  ;;  %v4759_v48 = vrot.slane %v2981_v43, 9  ;;  %v3208_v52 = vld [vmem:[#allocation4 + $0x10] sm:$0xe]  ;;  %v3029_v0 = vrot.slane %v2982_v59, 5  ;;  %5269 = vmatpush3.bf16.msra.mxu1 %v5588_v41 }
 0x23d   : > { %v5579_v32 = vld [vmem:[#allocation5 + $0xac] ss:$36 sps:$4 sm:$0xff]   ;;  %v2931_v8 = vrot.slane %v2930_v61, 4  ;;  %v4793_v53 = vcombine.low %v3311_v11, %v3316_v26  ;;  %v3026_v37 = vsel %vm5936_vm5, %v4758_v24, %v3025_v5  ;;  %v3209_v7 = vld [vmem:[#allocation4 + $0x14] sm:$0x1]  ;;  %v4760_v9 = vrot.slane %v3208_v52, 9 }
 0x23e   : > { %v3177_v10 = vsel %vm5944_vm8, %v3172_v14, %v3176_v31  ;;  %v2945_v19 = vrot.slane %v2944_v27, 4  ;;  %4338 = vmatprep.mubr.bf16.mxu0 %v5579_v32  ;;  %3045 = vst [vmem:[#allocation5 + $0xec] sm:$0xf] %v3026_v37  ;;  %v3210_v63 = vld [vmem:[#allocation4 + $0x18] sm:$0xe]  ;;  %v3242_v1 = vrot.slane %v3209_v7, 5  ;;  %v3030_v28 = vsel %vm5936_vm5, %v4759_v48, %v3029_v0 }
 0x23f   : > { %3206 = vst [vmem:[#allocation5 + $0xf4] sm:$0xf] %v3177_v10  ;;  %v2936_v36 = vsel %vm5944_vm8, %v2931_v8, %v2935_v44  ;;  %v3211_v38 = vld [vmem:[#allocation4 + $0x1c] sm:$0x1]  ;;  %4339 = vmatmul.mubr.bf16.gmra.mxu0 %v4793_v53  ;;  %v4761_v15 = vrot.slane %v3210_v63, 9  ;;  %v5592_v13 = vld [vmem:[#allocation11 + $0x210] sm:$0xff]  }
 0x240   : > { %v2950_v16 = vsel %vm5944_vm8, %v2945_v19, %v2949_v54  ;;  %2965 = vst [vmem:[#allocation5 + $0xe8] sm:$0xf] %v2936_v36  ;;  %v5583_v42 = vld [vmem:[#allocation5 + $0xa4] ss:$36 sps:$4 sm:$0xff]   ;;  %v3246_v6 = vrot.slane %v3211_v38, 5  ;;  %v3326_v18 = vld [vmem:[#allocation5 + $0x114] sm:$0xff]  ;;  %v3243_v25 = vsel %vm5936_vm5, %v4760_v9, %v3242_v1  ;;  %5270 = vmatprep.subr.bf16.mxu1 %v5592_v13 }
 0x241   : > { %2966 = vst [vmem:[#allocation5 + $0x10c] sm:$0xf] %v2950_v16  ;;  %v5589_v40 = vld [vmem:[#allocation5 + $0xa0] ss:$36 sps:$4 sm:$0xff]   ;;  %3046 = vst [vmem:[#allocation5 + $0x110] sm:$0xf] %v3030_v28  ;;  %4273 = vmatprep.mubr.bf16.mxu1 %v5583_v42  ;;  %5271 = vmatpush3.bf16.msra.mxu1 %v5592_v13 }
 0x242   : > { %v3216_v50 = vld [vmem:[#allocation4 + $0x30] sm:$0xe]  ;;  %v3247_v34 = vsel %vm5936_vm5, %v4761_v15, %v3246_v6  ;;  %3280 = vst [vmem:[#allocation5 + $0x20] sm:$0xf] %v3243_v25  ;;  %v3217_v21 = vld [vmem:[#allocation4 + $0x34] sm:$0x1]  ;;  %4274 = vmatmul.mubr.bf16.gmra.mxu1 %v5589_v40 }
 0x243   : > { %v3218_v29 = vld [vmem:[#allocation4 + $0x38] sm:$0xe]  ;;  %v3219_v62 = vld [vmem:[#allocation4 + $0x3c] sm:$0x1]  ;;  %3281 = vst [vmem:[#allocation5 + $0x44] sm:$0xf] %v3247_v34 }
 0x244   : > { %v4764_v2 = vrot.slane %v3216_v50, 9  ;;  %v3258_v51 = vrot.slane %v3217_v21, 5  ;;  %v4765_v23 = vrot.slane %v3218_v29, 9  ;;  %v3262_v60 = vrot.slane %v3219_v62, 5  ;;  %v3220_v47 = vld [vmem:[#allocation4 + $0x40] sm:$0xe] }
 0x245   : > { %v3221_v4 = vld [vmem:[#allocation4 + $0x44] sm:$0x1]  ;;  %v4766_v35 = vrot.slane %v3220_v47, 9  ;;  %v5593_v17 = vld [vmem:[#allocation11 + $0x208] sm:$0xff]   ;;  %v5596_v58 = vld [vmem:[#allocation11 + $0x200] sm:$0xff]  }
 0x246   : > { %v3321_v49 = vld [vmem:[#allocation5 + $0xf0] sm:$0xff]  ;;  %v3259_v45 = vsel %vm5936_vm5, %v4764_v2, %v3258_v51  ;;  %v3263_v20 = vsel %vm5936_vm5, %v4765_v23, %v3262_v60  ;;  %v3266_v22 = vrot.slane %v3221_v4, 5  ;;  %5272 = vmatprep.subr.bf16.mxu1 %v5593_v17  ;;  %v5597_v30 = vld [vmem:[#allocation5 + $0x68] ss:$36 sps:$4 sm:$0xff]  }
 0x247   : > { %v5586_v12 = vld [vmem:[#allocation5 + $0xf4] ss:$36 sps:$4 sm:$0xff]   ;;  %v4802_v3 = vcombine.low %v3321_v49, %v3326_v18  ;;  %3284 = vst [vmem:[#allocation5 + $0xb0] sm:$0xf] %v3259_v45  ;;  %3285 = vst [vmem:[#allocation5 + $0xd4] sm:$0xf] %v3263_v20  ;;  %5273 = vmatpush3.bf16.msra.mxu1 %v5593_v17 }
 0x248   : > { %4346 = vmatprep.mubr.bf16.mxu0 %v5586_v12  ;;  %v3267_v57 = vsel %vm5936_vm5, %v4766_v35, %v3266_v22  ;;  %v5590_v31 = vld [vmem:[#allocation5 + $0xec] ss:$36 sps:$4 sm:$0xff]   ;;  %5274 = vmatprep.subr.bf16.mxu1 %v5596_v58 }
 0x249   : > { %4347 = vmatmul.mubr.bf16.gmra.mxu0 %v4802_v3  ;;  %3286 = vst [vmem:[#allocation5 + $0xf8] sm:$0xf] %v3267_v57  ;;  %v5594_v33 = vld [vmem:[#allocation5 + $0xe8] ss:$36 sps:$4 sm:$0xff]   ;;  %4281 = vmatprep.mubr.bf16.mxu1 %v5590_v31  ;;  %v4768_v3 = vld [vmem:[%s6676_s4] ss:$0 sm:$0xff] }
 0x24a   : > { %v5595_v55 = vld [vmem:[#allocation5 + $0x20] ss:$36 sps:$4 sm:$0xff]   ;;  %4282 = vmatmul.mubr.bf16.gmra.mxu1 %v5594_v33 }
 0x24b   : > { %5276 = vmatprep.mubr.bf16.mxu1 %v5595_v55  ;;  %5275 = vmatpush3.bf16.msra.mxu1 %v5596_v58 }
 0x24e   : > { %v5598_v61 = vld [vmem:[#allocation5 + $0xb0] ss:$36 sps:$4 sm:$0xff]  }
 0x250   : > { %v5599_v46 = vld [vmem:[#allocation5 + $0xf8] ss:$36 sps:$4 sm:$0xff]  }
 0x252   : > { %5277 = vmatmul.mubr.bf16.vlgmr.msra.gmra.mxu1 %v5597_v30 }
 0x253   : > { %5280 = vmatprep.mubr.bf16.mxu1 %v5598_v61 }
 0x25a   : > { %5281 = vmatmul.mubr.bf16.gmra.mxu1 %v5599_v46 }
 0x2b7   : > { %v6536_v44 = vpop.f32.mrf.mxu0 }
 0x2b9   : > { %v6538_v39 = vpop.f32.mrf.mxu0 }
 0x2bb   : > { %v6540_v56 = vpop.f32.mrf.mxu0 }
 0x2bd   : > { %v6542_v43 = vpop.f32.mrf.mxu0 }
 0x2bf   : > { %v5126_v11 = vpop.f32.mrf.mxu0 }
 0x2c1   : > { %v5127_v27 = vpop.f32.mrf.mxu0 }
 0x2c2   : > { %v5128_v46 = vadd.f32 %v5127_v27, %v5126_v11  ;;  %v5125_v11 = vadd.f32 %v6542_v43, %v6540_v56 }
 0x2c3   : > { %v6544_v24 = vpop.f32.mrf.mxu0 }
 0x2c4   : > { %v5080_v14 = vpop.f32.mrf.mxu1 }
 0x2c5   : > { %v5130_v26 = vpop.f32.mrf.mxu0 }
 0x2c6   : > { %v5081_v59 = vpop.f32.mrf.mxu1 }
 0x2c7   : > { %v5082_v22 = vadd.f32 %v5081_v59, %v5080_v14  ;;  %v5122_v14 = vadd.f32 %v6538_v39, %v6536_v44 }
 0x2c8   : > { %v5083_v5 = vpop.f32.mrf.mxu1 }
 0x2c9   : > { %v4130_v61 = vadd.f32 %v5082_v22, %v4768_v3 }
 0x2ca   : > { %v5084_v32 = vpop.f32.mrf.mxu1 }
 0x2cb   : > { %v5085_v58 = vadd.f32 %v5084_v32, %v5083_v5 }
 0x2cc   : > { %v6546_v8 = vpop.f32.mrf.mxu0 }
 0x2cd   : > { %v5086_v54 = vpop.f32.mrf.mxu1 }
 0x2ce   : > { %v6548_v48 = vpop.f32.mrf.mxu0 }
 0x2cf   : > { %v5087_v53 = vpop.f32.mrf.mxu1  ;;  %v5134_v39 = vadd.f32 %v6548_v48, %v6546_v8 }
 0x2d0   : > { %v6550_v10 = vpop.f32.mrf.mxu0  ;;  %v5088_v17 = vadd.f32 %v5087_v53, %v5086_v54 }
 0x2d1   : > { %v5089_v41 = vpop.f32.mrf.mxu1 }
 0x2d2   : > { %v6552_v19 = vpop.f32.mrf.mxu0  ;;  %v4138_v33 = vadd.f32 %v5088_v17, %v4768_v3 }
 0x2d3   : > { %v5090_v37 = vpop.f32.mrf.mxu1 }
 0x2d4   : > { %v5091_v57 = vadd.f32 %v5090_v37, %v5089_v41  ;;  %v4133_v41 = vadd.f32 %v5085_v58, %v4768_v3  ;;  %v5131_v37 = vadd.f32 %v5130_v26, %v6544_v24 }
 0x2d5   : > { %v6554_v52 = vpop.f32.mrf.mxu0 }
 0x2d6   : > { %v5092_v7 = vpop.f32.mrf.mxu1  ;;  %v4141_v53 = vadd.f32 %v5091_v57, %v4768_v3 }
 0x2d7   : > { %v6556_v36 = vpop.f32.mrf.mxu0 }
 0x2d8   : > { %v5093_v0 = vpop.f32.mrf.mxu1  ;;  %v5140_v56 = vadd.f32 %v6556_v36, %v6554_v52 }
 0x2d9   : > { %v6558_v63 = vpop.f32.mrf.mxu0  ;;  %v5094_v17 = vadd.f32 %v5093_v0, %v5092_v7  ;;  %v4198_v0 = vadd.f32 %v5125_v11, %v4133_v41 }
 0x2da   : > { %v6560_v38 = vpop.f32.mrf.mxu1 }
 0x2db   : > { %v6562_v16 = vpop.f32.mrf.mxu0  ;;  %v4146_v26 = vadd.f32 %v5094_v17, %v4768_v3 }
 0x2dc   : > { %v5096_v9 = vpop.f32.mrf.mxu1 }
 0x2dd   : > { %v5097_v7 = vadd.f32 %v5096_v9, %v6560_v38  ;;  %v5143_v38 = vadd.f32 %v6562_v16, %v6558_v63  ;;  %v4211_v36 = vadd.f32 %v5134_v39, %v4146_v26 }
 0x2e1   : > { %v5098_v1 = vpop.f32.mrf.mxu1 }
 0x2e3   : > { %v5099_v42 = vpop.f32.mrf.mxu1 }
 0x2e4   : > { %v6564_v15 = vpop.f32.mrf.mxu0  ;;  %v5100_v59 = vadd.f32 %v5099_v42, %v5098_v1 }
 0x2e5   : > { %v5101_v13 = vpop.f32.mrf.mxu1 }
 0x2e6   : > { %v6566_v28 = vpop.f32.mrf.mxu0  ;;  %v4154_v1 = vadd.f32 %v5100_v59, %v4768_v3 }
 0x2e7   : > { %v5102_v18 = vpop.f32.mrf.mxu1  ;;  %v5202_v43 = vadd.f32 %v6566_v28, %v6564_v15 }
 0x2e8   : > { %v6568_v6 = vpop.f32.mrf.mxu0  ;;  %v5103_v27 = vadd.f32 %v5102_v18, %v5101_v13  ;;  %v4219_v9 = vadd.f32 %v5140_v56, %v4154_v1 }
 0x2ea   : > { %v6570_v40 = vpop.f32.mrf.mxu0  ;;  %v4157_v8 = vadd.f32 %v5103_v27, %v4768_v3 }
 0x2eb   : > { %v5160_v25 = vpop.f32.mrf.mxu1  ;;  %v5205_v52 = vadd.f32 %v6570_v40, %v6568_v6 }
 0x2ec   : > { %v4222_v63 = vadd.f32 %v5143_v38, %v4157_v8 }
 0x2ed   : > { %v5161_v50 = vpop.f32.mrf.mxu1 }
 0x2ef   : > { %v5163_v21 = vpop.f32.mrf.mxu1 }
 0x2f1   : > { %v5206_v34 = vpop.f32.mrf.mxu0  ;;  %v5164_v62 = vpop.f32.mrf.mxu1 }
 0x2f3   : > { %v5207_v29 = vpop.f32.mrf.mxu0 }
 0x2f4   : > { %v5208_v24 = vadd.f32 %v5207_v29, %v5206_v34 }
 0x2f5   : > { %v5209_v2 = vpop.f32.mrf.mxu0 }
 0x2f6   : > { %v5166_v51 = vpop.f32.mrf.mxu1 }
 0x2f7   : > { %v5210_v23 = vpop.f32.mrf.mxu0 }
 0x2f8   : > { %v5167_v60 = vpop.f32.mrf.mxu1 }
 0x2f9   : > { %v5168_v54 = vadd.f32 %v5167_v60, %v5166_v51  ;;  %v5165_v51 = vadd.f32 %v5164_v62, %v5163_v21  ;;  %v4206_v60 = vadd.f32 %v5131_v37, %v4141_v53  ;;  %v5211_v21 = vadd.f32 %v5210_v23, %v5209_v2 }
 0x2fa   : > { %v5169_v4 = vpop.f32.mrf.mxu1  ;;  %v5137_v23 = vadd.f32 %v6552_v19, %v6550_v10 }
 0x2fb   : > { %v4263_v48 = vadd.f32 %v5165_v51, %v4198_v0 }
 0x2fc   : > { %v5170_v49 = vpop.f32.mrf.mxu1 }
 0x2fd   : > { %v5171_v5 = vadd.f32 %v5170_v49, %v5169_v4 }
 0x2ff   : > { %v6572_v47 = vpop.f32.mrf.mxu0 }
 0x300   : > { %6734 = vst [vmem:[#allocation19_spill] sm:$0xff] %v6572_v47  ;;  %v4203_v47 = vadd.f32 %v5128_v46, %v4138_v33 }
 0x301   : > { %v6574_v35 = vpop.f32.mrf.mxu0 }
 0x302   : > { %6735 = vst [vmem:[#allocation21_spill] sm:$0xff] %v6574_v35  ;;  %v5172_v12 = vpop.f32.mrf.mxu1  ;;  %v5162_v35 = vadd.f32 %v5161_v50, %v5160_v25  ;;  %v4271_v25 = vadd.f32 %v5171_v5, %v4206_v60 }
 0x303   : > { %v6576_v45 = vpop.f32.mrf.mxu0 }
 0x304   : > { %6736 = vst [vmem:[#allocation20_spill] sm:$0xff] %v6576_v45  ;;  %v5173_v20 = vpop.f32.mrf.mxu1  ;;  %v4336_v49 = vadd.f32 %v5211_v21, %v4271_v25 }
 0x305   : > { %v6583_v55 = vpop.f32.mrf.mxu0  ;;  %v5174_v34 = vadd.f32 %v5173_v20, %v5172_v12  ;;  %v4328_v20 = vadd.f32 %v5205_v52, %v4263_v48 }
 0x306   : > { %v6581_v31 = vpop.f32.mrf.mxu1  ;;  %6738 = vst [vmem:[#allocation17_spill] sm:$0xff] %v6583_v55 }
 0x307   : > { %6737 = vst [vmem:[#allocation22_spill] sm:$0xff] %v6581_v31  ;;  %v4195_v31 = vadd.f32 %v5122_v14, %v4130_v61  ;;  %v4276_v12 = vadd.f32 %v5174_v34, %v4211_v36 }
 0x308   : > { %v6585_v30 = vpop.f32.mrf.mxu1 }
 0x309   : > { %6739 = vst [vmem:[#allocation18_spill] sm:$0xff] %v6585_v30  ;;  %v5218_v32 = vpop.f32.mrf.mxu0  ;;  %v4268_v30 = vadd.f32 %v5168_v54, %v4203_v47  ;;  %v4260_v42 = vadd.f32 %v5162_v35, %v4195_v31  ;;  %v4149_v35 = vadd.f32 %v5097_v7, %v4768_v3 }
 0x30a   : > { %v5178_v45 = vpop.f32.mrf.mxu1 }
 0x30b   : > { %v5219_v50 = vpop.f32.mrf.mxu0  ;;  %v4333_v18 = vadd.f32 %v5208_v24, %v4268_v30  ;;  %v4325_v4 = vadd.f32 %v5202_v43, %v4260_v42  ;;  %v6743_v30 = vld [vmem:[#allocation21_spill] sm:$0xff]  ;;  %v4214_v10 = vadd.f32 %v5137_v23, %v4149_v35  ;;  %v6744_v51 = vld [vmem:[#allocation20_spill] sm:$0xff] }
 0x30c   : > { %v5179_v55 = vpop.f32.mrf.mxu1  ;;  %v5220_v31 = vadd.f32 %v5219_v50, %v5218_v32 }
 0x30d   : > { %v5180_v13 = vadd.f32 %v5179_v55, %v5178_v45  ;;  %v5221_v15 = vpop.f32.mrf.mxu0  ;;  %v6742_v55 = vld [vmem:[#allocation19_spill] sm:$0xff]  ;;  %v6745_v60 = vld [vmem:[#allocation17_spill] sm:$0xff] }
 0x30e   : > { %v5181_v44 = vpop.f32.mrf.mxu1  ;;  %v6740_v3 = vld [vmem:[#allocation22_spill] sm:$0xff]  ;;  %v5214_v61 = vadd.f32 %v6743_v30, %v6742_v55 }
 0x30f   : > { %v4284_v45 = vadd.f32 %v5180_v13, %v4219_v9  ;;  %v5222_v19 = vpop.f32.mrf.mxu0 }
 0x310   : > { %v5182_v47 = vpop.f32.mrf.mxu1  ;;  %v6741_v33 = vld [vmem:[#allocation18_spill] sm:$0xff]  ;;  %v4341_v37 = vadd.f32 %v5214_v61, %v4276_v12  ;;  %v5223_v5 = vadd.f32 %v5222_v19, %v5221_v15 }
 0x311   : > { %v5183_v22 = vadd.f32 %v5182_v47, %v5181_v44  ;;  %v5177_v58 = vadd.f32 %v6741_v33, %v6740_v3  ;;  %v4349_v59 = vadd.f32 %v5220_v31, %v4284_v45  ;;  %v5217_v44 = vadd.f32 %v6745_v60, %v6744_v51 }
 0x312   : > { %v5278_v29 = vpop.f32.mrf.mxu1 }
 0x313   : > { %v4398_v62 = vadd.f32 %v5278_v29, %v4333_v18  ;;  %v4287_v54 = vadd.f32 %v5183_v22, %v4222_v63  ;;  %v4279_v17 = vadd.f32 %v5177_v58, %v4214_v10 }
 0x314   : > { %v4389_v28 = vpop.f32.mrf.mxu1 }
 0x315   : > { %v4422_v57 = vmax.f32 %v4398_v62, 0.0  ;;  %v4390_v2 = vadd.f32 %v4389_v28, %v4325_v4  ;;  %v4352_v42 = vadd.f32 %v5223_v5, %v4287_v54  ;;  %v4344_v0 = vadd.f32 %v5217_v44, %v4279_v17 }
 0x316   : > { %v5279_v16 = vpop.f32.mrf.mxu1 }
 0x317   : > { %4430 = vst [vmem:[%s6608_s12 + $0x10] sm:$0xff] %v4422_v57  ;;  %v4420_v6 = vmax.f32 %v4390_v2, 0.0  ;;  %v4401_v40 = vadd.f32 %v5279_v16, %v4336_v49 }
 0x318   : > { %v4392_v46 = vpop.f32.mrf.mxu1 }
 0x319   : > { %4428 = vst [vmem:[%s6608_s12] sm:$0xff] %v4420_v6  ;;  %v4423_v53 = vmax.f32 %v4401_v40, 0.0  ;;  %v4393_v14 = vadd.f32 %v4392_v46, %v4328_v20 }
 0x31a   : > { %v5282_v41 = vpop.f32.mrf.mxu1 }
 0x31b   : > { %4431 = vst [vmem:[%s6608_s12 + $0x18] sm:$0xff] %v4423_v53  ;;  %v4421_v32 = vmax.f32 %v4393_v14, 0.0  ;;  %v4414_v11 = vadd.f32 %v5282_v41, %v4349_v59 }
 0x31c   : > { %v4405_v27 = vpop.f32.mrf.mxu1 }
 0x31d   : > { %4429 = vst [vmem:[%s6608_s12 + $0x8] sm:$0xff] %v4421_v32  ;;  %v4426_v39 = vmax.f32 %v4414_v11, 0.0  ;;  %v4406_v1 = vadd.f32 %v4405_v27, %v4341_v37 }
 0x31e   : > { %v5283_v24 = vpop.f32.mrf.mxu1 }
 0x31f   : > { %4434 = vst [vmem:[%s6608_s12 + $0x30] sm:$0xff] %v4426_v39  ;;  %v4424_v26 = vmax.f32 %v4406_v1, 0.0  ;;  %v4417_v7 = vadd.f32 %v5283_v24, %v4352_v42 }
 0x320   : > { %v4408_v25 = vpop.f32.mrf.mxu1 }
 0x321   : > { %4432 = vst [vmem:[%s6608_s12 + $0x20] sm:$0xff] %v4424_v26  ;;  %v4427_v50 = vmax.f32 %v4417_v7, 0.0  ;;  %v4409_v47 = vadd.f32 %v4408_v25, %v4344_v0 }
 0x323   : > { %4435 = vst [vmem:[%s6608_s12 + $0x38] sm:$0xff] %v4427_v50  ;;  %v4425_v56 = vmax.f32 %v4409_v47, 0.0 }
 0x325   : > { %4433 = vst [vmem:[%s6608_s12 + $0x28] sm:$0xff] %v4425_v56 }
 0x326   : > { %5693 = shalt.err (!%p5690_p9)
}
 0x327   : > { %s5694_s24 = scalar_lea.hbm %s6627_s13, 1024  ;;  %s5698_s10 = scalar_lea.hbm %s6677_s5, 2048 }
 0x328   : > { %p5695_p13 = scmp.ne.s32.totalorder %s6627_s13, %s5694_s24  ;;  %p5699_p4 = scmp.lt.s32.totalorder %s6627_s13, %s6677_s5 }
 0x329   : > { %p5700_p8 = scmp.lt.s32.totalorder %s5698_s10, %s5694_s24 }
 0x32a   : > { %p5696_p5 = pnand %p5695_p13, %p6746_p10 }
 0x32b   : > { %p5701_p3 = por %p5700_p8, %p5699_p4 }
 0x32c   : > { %p5697_p0 = pneg %p5696_p5 }
 0x32e   : > { %p5702_p11 = pnand %p5701_p3, %p5697_p0 }
 0x330   : > { %5705 = shalt.err (!%p5702_p11)
}
 0x331   : > { %s5759_s6 = smov 128   ;;  %s5760_s7 = smov 8  }
 0x332   : > { %5294 = dma.vmem_to_hbm [thread:$0]  (%p6746_p10), %s6621_s28, 1024, %s6627_s13, %s4437_s14, %s5759_s6, %s5759_s6, %s5760_s7  }
 0x333 PF: > { %s4465_s9 = sand.u32 1, %s5736_s18   ;;  %p6747_p1 = scmp.ne.s32.totalorder %s6689_s25, 0 }
 0x334   : > { %p6748_p2 = scmp.ge.s32.totalorder %s5748_s21, 2  ;;  %s4466_s17 = scalar_lea.sflag [#allocation8], %s4465_s9 }
 0x336   : > { %p5308_p6 = pnand %p6748_p2, %p6747_p1 }
 0x338   : > { %p5309_p12 = pneg %p5308_p6 }
 0x33a   : > { %5731 = dma.done.wait (%p5309_p12), %s4466_s17, 1024  }
 0x33b   : > { %5733 = vsyncadd (%p5309_p12), %s4466_s17, 4294966272  ;;  %p19_p7 = scmp.ge.s32.totalorder %s5863_s15, 4   ;;  %s6749_s18 = smov %s5740_s19 }
 0x33c   : > { %s6750_s19 = smov %s5744_s20  ;;  %s6751_s20 = smov %s5879_s27 }
 0x33d   : > { %s6752_s21 = smov %s5863_s15  ;;  %21 = sbr.rel (!%p19_p7) target bundleno = 6 (0x6), region = 100 }
 0x342   :  { %4471 = vsyncpa [#allocation7], 1 }
 0x343   :  { %4473 = vsyncpa [#allocation7 + $0x1], 1 }
 0x344   :  { %4474 = vsyncpa [#allocation10], 1 }
 0x345   :  { %4475 = vsyncpa [#allocation8], 1 }
 0x346   :  { %4477 = vsyncpa [#allocation8 + $0x1], 1 }

</bundles_post_ra>
